<compile_context>
chip_gen: v7x
topology: tpu7x:2x2x1
jax: 0.10.0
libtpu: 0.0.40
codegen_flags: <defaults>
</compile_context>

<pallas_src>
import functools

import jax
import jax.numpy as jnp
from jax import lax
from jax.experimental import pallas as pl
from jax.experimental.pallas import tpu as pltpu


# ------------------------------ fused kernel ---------------------------------

def _fused_block_kernel(x_ref, g1_ref, be1_ref, avg1_ref, w1_ref, add1_ref,
                        g2_ref, be2_ref, avg2_ref, w2_ref, b2_ref, *rest,
                        eps, inv_scale, has_shortcut):
    """Whole ResNet block for one batch element.

    x_ref:    (1, H, W, Cin)  f32
    g*/be*:   (1, C)          f32 GroupNorm affine params
    avg*_ref: (C, C)          f32 group-averaging matrix (1/(HW*cg) folded in)
    w1_ref:   (3, 3*Cin, Cout) bf16   conv1 weights, kw packed into K
    add1_ref: (1, 1, Cout)    f32     conv1 bias + time-embedding projection
    w2_ref:   (3, 3*Cout, Cout) bf16  conv2 weights
    b2_ref:   (1, Cout)       f32     conv2 bias
    [ws_ref, bs_ref]:         bf16 (Cin, Cout) / f32 (1, Cout) 1x1 shortcut
    o_ref:    (1, H, W, Cout) f32
    p1/p2:    VMEM im2col scratch, (H+2, W, 3*C) f32
    """
    if has_shortcut:
        ws_ref, bs_ref, o_ref, p1_ref, p2_ref = rest
    else:
        o_ref, p1_ref, p2_ref = rest

    _, H, W, Cin = x_ref.shape
    Cout = o_ref.shape[-1]
    HW = H * W

    def group_norm_silu(xf, avg_ref, gamma_ref, beta_ref):
        # xf: (HW, C) f32 -> (HW, C) f32
        s1 = jnp.sum(xf, axis=0, keepdims=True)                    # (1, C)
        s2 = jnp.sum(xf * xf, axis=0, keepdims=True)               # (1, C)
        mean = jnp.dot(s1, avg_ref[...], preferred_element_type=jnp.float32)
        msq = jnp.dot(s2, avg_ref[...], preferred_element_type=jnp.float32)
        inv = lax.rsqrt(msq - mean * mean + eps)
        a = gamma_ref[...] * inv
        b = beta_ref[...] - mean * a
        y = xf * a + b
        return y * jax.nn.sigmoid(y)                               # SiLU

    def scatter_im2col(p_ref, h, C):
        # h: (H, W, C).  p_ref[r, j, kw*C + c] = h_padded[r, j + kw, c]
        p_ref[...] = jnp.zeros_like(p_ref)                         # halo zeros
        p_ref[1:H + 1, :, C:2 * C] = h                             # kw = 1
        p_ref[1:H + 1, 1:W, 0:C] = h[:, 0:W - 1, :]                # kw = 0
        p_ref[1:H + 1, 0:W - 1, 2 * C:3 * C] = h[:, 1:W, :]        # kw = 2

    def conv3x3(p_ref, w_ref, C):
        # three K = 3*C matmuls (one per kh), bf16 inputs, f32 accumulation
        acc = jnp.zeros((HW, Cout), jnp.float32)
        for kh in range(3):
            patch = p_ref[kh:kh + H, :, :].reshape(HW, 3 * C)
            acc = acc + jnp.dot(patch.astype(jnp.bfloat16), w_ref[kh],
                                preferred_element_type=jnp.float32)
        return acc

    xf = x_ref[0].reshape(HW, Cin)                                 # (HW, Cin)

    # --- GroupNorm1 + SiLU -> im2col scratch ---
    h0 = group_norm_silu(xf, avg1_ref, g1_ref, be1_ref)
    scatter_im2col(p1_ref, h0.reshape(H, W, Cin), Cin)

    # --- conv1 + (bias + time-embedding projection) ---
    h1 = conv3x3(p1_ref, w1_ref, Cin) + add1_ref[0]                # (HW, Cout)

    # --- GroupNorm2 + SiLU (dropout p=0 -> identity) -> im2col scratch ---
    h2 = group_norm_silu(h1, avg2_ref, g2_ref, be2_ref)
    scatter_im2col(p2_ref, h2.reshape(H, W, Cout), Cout)

    # --- conv2 + bias ---
    h3 = conv3x3(p2_ref, w2_ref, Cout) + b2_ref[...]

    # --- shortcut + residual + output scaling ---
    if has_shortcut:
        sc = jnp.dot(xf.astype(jnp.bfloat16), ws_ref[...],
                     preferred_element_type=jnp.float32) + bs_ref[...]
    else:
        sc = xf
    o_ref[0] = (((sc + h3) * inv_scale).astype(o_ref.dtype)).reshape(H, W, Cout)


# ------------------------------- wrapper --------------------------------------

def pare_resnet_block_2d(x_nchw, temb, params, *, groups, groups_out, eps,
                         output_scale_factor):
    x = jnp.transpose(x_nchw, (0, 2, 3, 1)).astype(jnp.float32)    # NCHW -> NHWC
    N, H, W, Cin = x.shape
    Cout = params["conv1_w"].shape[-1]
    has_shortcut = (Cin != Cout)

    # Tiny time-embedding projection in plain XLA; fold conv1 bias in so the
    # kernel adds one per-sample vector.
    t = temb.astype(jnp.float32)
    t = t * jax.nn.sigmoid(t)
    add1 = (t @ params["temb_w"] + params["temb_b"]
            + params["conv1_b"]).reshape(N, 1, Cout)

    # Group-averaging matrices with 1/(HW * channels_per_group) folded in.
    def avg_mat(C, G):
        cg = C // G
        gid = jnp.arange(C) // cg
        return (gid[:, None] == gid[None, :]).astype(jnp.float32) / float(H * W * cg)

    avg1 = avg_mat(Cin, groups)
    avg2 = avg_mat(Cout, groups_out)

    # Pack kw into the contraction axis: (3, 3, C, Cout) -> (3, 3*C, Cout), bf16.
    w1 = params["conv1_w"].reshape(3, 3 * Cin, Cout).astype(jnp.bfloat16)
    w2 = params["conv2_w"].reshape(3, 3 * Cout, Cout).astype(jnp.bfloat16)

    kernel = functools.partial(_fused_block_kernel, eps=float(eps),
                               inv_scale=float(1.0 / output_scale_factor),
                               has_shortcut=has_shortcut)

    in_arrays = [
        x,
        params["norm1_g"].reshape(1, Cin), params["norm1_b"].reshape(1, Cin), avg1,
        w1, add1,
        params["norm2_g"].reshape(1, Cout), params["norm2_b"].reshape(1, Cout), avg2,
        w2, params["conv2_b"].reshape(1, Cout),
    ]
    in_specs = [
        pl.BlockSpec((1, H, W, Cin), lambda n: (n, 0, 0, 0)),
        pl.BlockSpec((1, Cin), lambda n: (0, 0)),
        pl.BlockSpec((1, Cin), lambda n: (0, 0)),
        pl.BlockSpec((Cin, Cin), lambda n: (0, 0)),
        pl.BlockSpec((3, 3 * Cin, Cout), lambda n: (0, 0, 0)),
        pl.BlockSpec((1, 1, Cout), lambda n: (n, 0, 0)),
        pl.BlockSpec((1, Cout), lambda n: (0, 0)),
        pl.BlockSpec((1, Cout), lambda n: (0, 0)),
        pl.BlockSpec((Cout, Cout), lambda n: (0, 0)),
        pl.BlockSpec((3, 3 * Cout, Cout), lambda n: (0, 0, 0)),
        pl.BlockSpec((1, Cout), lambda n: (0, 0)),
    ]
    if has_shortcut:
        in_arrays += [params["sc_w"].astype(jnp.bfloat16),
                      params["sc_b"].reshape(1, Cout)]
        in_specs += [pl.BlockSpec((Cin, Cout), lambda n: (0, 0)),
                     pl.BlockSpec((1, Cout), lambda n: (0, 0))]

    out = pl.pallas_call(
        kernel,
        out_shape=jax.ShapeDtypeStruct((N, H, W, Cout), jnp.float32),
        grid=(N,),
        in_specs=in_specs,
        out_specs=pl.BlockSpec((1, H, W, Cout), lambda n: (n, 0, 0, 0)),
        scratch_shapes=[pltpu.VMEM((H + 2, W, 3 * Cin), jnp.float32),
                        pltpu.VMEM((H + 2, W, 3 * Cout), jnp.float32)],
        compiler_params=pltpu.CompilerParams(
            dimension_semantics=("parallel",),
            vmem_limit_bytes=32 * 1024 * 1024),
    )(*in_arrays)
    return jnp.transpose(out, (0, 3, 1, 2))                        # NHWC -> NCHW


# ------------------------------ JAX reference ---------------------------------

def _reference(x_nchw, temb, params, groups, groups_out, eps, scale):
    def gn(x, g, b, G):
        N, C, H, W = x.shape
        xr = x.reshape(N, G, C // G, H, W)
        mean = xr.mean(axis=(2, 3, 4), keepdims=True)
        var = xr.var(axis=(2, 3, 4), keepdims=True)
        xn = ((xr - mean) / jnp.sqrt(var + eps)).reshape(N, C, H, W)
        return xn * g[None, :, None, None] + b[None, :, None, None]

    def silu(v):
        return v * jax.nn.sigmoid(v)

    def conv(x, w_hwio, b, pad):
        y = lax.conv_general_dilated(
            x, w_hwio, (1, 1), pad,
            dimension_numbers=('NCHW', 'HWIO', 'NCHW'),
            precision=lax.Precision.HIGHEST)
        return y + b[None, :, None, None]

    h = silu(gn(x_nchw, params["norm1_g"], params["norm1_b"], groups))
    h = conv(h, params["conv1_w"], params["conv1_b"], ((1, 1), (1, 1)))
    tp = silu(temb) @ params["temb_w"] + params["temb_b"]
    h = h + tp[:, :, None, None]
    h = silu(gn(h, params["norm2_g"], params["norm2_b"], groups_out))
    h = conv(h, params["conv2_w"], params["conv2_b"], ((1, 1), (1, 1)))
    sc_w = params["sc_w"].reshape(1, 1, *params["sc_w"].shape)
    xin = conv(x_nchw, sc_w, params["sc_b"], ((0, 0), (0, 0)))
    return (xin + h) / scale


# ------------------------------------ main ------------------------------------

if __name__ == "__main__":
    # Small configuration consistent with PareResnetBlock2D.__init__
    N, Cin, Cout, H, W = 2, 32, 64, 16, 16
    TEMB = 64
    GROUPS = 8
    GROUPS_OUT = 8
    EPS = 1e-6
    OUTPUT_SCALE_FACTOR = 1.0

    key = jax.random.PRNGKey(0)
    ks = jax.random.split(key, 12)

    params = {
        "norm1_g": 1.0 + 0.1 * jax.random.normal(ks[0], (Cin,), jnp.float32),
        "norm1_b": 0.1 * jax.random.normal(ks[1], (Cin,), jnp.float32),
        # conv weights stored HWIO (kh, kw, Cin, Cout)
        "conv1_w": 0.05 * jax.random.normal(ks[2], (3, 3, Cin, Cout), jnp.float32),
        "conv1_b": 0.05 * jax.random.normal(ks[3], (Cout,), jnp.float32),
        "temb_w": 0.05 * jax.random.normal(ks[4], (TEMB, Cout), jnp.float32),
        "temb_b": 0.05 * jax.random.normal(ks[5], (Cout,), jnp.float32),
        "norm2_g": 1.0 + 0.1 * jax.random.normal(ks[6], (Cout,), jnp.float32),
        "norm2_b": 0.1 * jax.random.normal(ks[7], (Cout,), jnp.float32),
        "conv2_w": 0.05 * jax.random.normal(ks[8], (3, 3, Cout, Cout), jnp.float32),
        "conv2_b": 0.05 * jax.random.normal(ks[9], (Cout,), jnp.float32),
        # 1x1 shortcut conv stored as (Cin, Cout) matrix
        "sc_w": 0.05 * jax.random.normal(ks[10], (Cin, Cout), jnp.float32),
        "sc_b": 0.05 * jax.random.normal(ks[11], (Cout,), jnp.float32),
    }

    xk, tk = jax.random.split(jax.random.PRNGKey(42))
    x_nchw = jax.random.normal(xk, (N, Cin, H, W), jnp.float32)
    temb = jax.random.normal(tk, (N, TEMB), jnp.float32)

    fwd = jax.jit(functools.partial(
        pare_resnet_block_2d, groups=GROUPS, groups_out=GROUPS_OUT, eps=EPS,
        output_scale_factor=OUTPUT_SCALE_FACTOR))
    out = fwd(x_nchw, temb, params)
    out = jax.block_until_ready(out)

    ref = _reference(x_nchw, temb, params, GROUPS, GROUPS_OUT, EPS,
                     OUTPUT_SCALE_FACTOR)
    max_err = float(jnp.max(jnp.abs(out - ref)))
    assert out.shape == (N, Cout, H, W), out.shape
    assert max_err < 5e-2, f"max abs error too large: {max_err}"

    print("KERNEL_OK")
</pallas_src>

<mosaic_0001>
module attributes {stable_mosaic.version = 11 : i64} {
  func.func @_fused_block_kernel(%arg0: i32, %arg1: memref<1x16x16x32xf32, #tpu.memory_space<vmem>>, %arg2: memref<1x32xf32, #tpu.memory_space<vmem>>, %arg3: memref<1x32xf32, #tpu.memory_space<vmem>>, %arg4: memref<32x32xf32, #tpu.memory_space<vmem>>, %arg5: memref<3x96x64xbf16, #tpu.memory_space<vmem>>, %arg6: memref<1x1x64xf32, #tpu.memory_space<vmem>>, %arg7: memref<1x64xf32, #tpu.memory_space<vmem>>, %arg8: memref<1x64xf32, #tpu.memory_space<vmem>>, %arg9: memref<64x64xf32, #tpu.memory_space<vmem>>, %arg10: memref<3x192x64xbf16, #tpu.memory_space<vmem>>, %arg11: memref<1x64xf32, #tpu.memory_space<vmem>>, %arg12: memref<32x64xbf16, #tpu.memory_space<vmem>>, %arg13: memref<1x64xf32, #tpu.memory_space<vmem>>, %arg14: memref<1x16x16x64xf32, #tpu.memory_space<vmem>>, %arg15: memref<18x16x96xf32, #tpu.memory_space<vmem>>, %arg16: memref<18x16x192xf32, #tpu.memory_space<vmem>>) attributes {dimension_semantics = [#tpu.dimension_semantics<parallel>], iteration_bounds = array<i64: 2>, scalar_prefetch = 0 : i64, scratch_operands = 2 : i64, tpu.core_type = #tpu.core_type<tc>, window_params = [{transform_indices = @transform_0, window_bounds = array<i64: 1, 16, 16, 32>}, {pipeline_mode = #tpu.pipeline_mode<synchronous>, transform_indices = @transform_1, window_bounds = array<i64: 1, 32>}, {pipeline_mode = #tpu.pipeline_mode<synchronous>, transform_indices = @transform_2, window_bounds = array<i64: 1, 32>}, {pipeline_mode = #tpu.pipeline_mode<synchronous>, transform_indices = @transform_3, window_bounds = array<i64: 32, 32>}, {pipeline_mode = #tpu.pipeline_mode<synchronous>, transform_indices = @transform_4, window_bounds = array<i64: 3, 96, 64>}, {transform_indices = @transform_5, window_bounds = array<i64: 1, 1, 64>}, {pipeline_mode = #tpu.pipeline_mode<synchronous>, transform_indices = @transform_6, window_bounds = array<i64: 1, 64>}, {pipeline_mode = #tpu.pipeline_mode<synchronous>, transform_indices = @transform_7, window_bounds = array<i64: 1, 64>}, {pipeline_mode = #tpu.pipeline_mode<synchronous>, transform_indices = @transform_8, window_bounds = array<i64: 64, 64>}, {pipeline_mode = #tpu.pipeline_mode<synchronous>, transform_indices = @transform_9, window_bounds = array<i64: 3, 192, 64>}, {pipeline_mode = #tpu.pipeline_mode<synchronous>, transform_indices = @transform_10, window_bounds = array<i64: 1, 64>}, {pipeline_mode = #tpu.pipeline_mode<synchronous>, transform_indices = @transform_11, window_bounds = array<i64: 32, 64>}, {pipeline_mode = #tpu.pipeline_mode<synchronous>, transform_indices = @transform_12, window_bounds = array<i64: 1, 64>}, {transform_indices = @transform_13, window_bounds = array<i64: 1, 16, 16, 64>}]} {
    %c0 = arith.constant 0 : index
    %c0_0 = arith.constant 0 : index
    %c0_1 = arith.constant 0 : index
    %c0_2 = arith.constant 0 : index
    %0 = vector.load %arg1[%c0, %c0_0, %c0_1, %c0_2] : memref<1x16x16x32xf32, #tpu.memory_space<vmem>>, vector<1x16x16x32xf32>
    %1 = vector.shape_cast %0 : vector<1x16x16x32xf32> to vector<16x16x32xf32>
    %2 = vector.shape_cast %1 : vector<16x16x32xf32> to vector<256x32xf32>
    %cst = arith.constant dense<0.000000e+00> : vector<32xf32>
    %3 = vector.multi_reduction <add>, %2, %cst [0] : vector<256x32xf32> to vector<32xf32>
    %4 = vector.shape_cast %3 : vector<32xf32> to vector<1x32xf32>
    %5 = arith.mulf %2, %2 : vector<256x32xf32>
    %cst_3 = arith.constant dense<0.000000e+00> : vector<32xf32>
    %6 = vector.multi_reduction <add>, %5, %cst_3 [0] : vector<256x32xf32> to vector<32xf32>
    %7 = vector.shape_cast %6 : vector<32xf32> to vector<1x32xf32>
    %c0_4 = arith.constant 0 : index
    %c0_5 = arith.constant 0 : index
    %8 = vector.load %arg4[%c0_4, %c0_5] : memref<32x32xf32, #tpu.memory_space<vmem>>, vector<32x32xf32>
    %cst_6 = arith.constant dense<0.000000e+00> : vector<1x32xf32>
    %9 = tpu.matmul %4, %8, %cst_6 {dimension_numbers = #tpu.dot_dimension_numbers<[1], [0], [0], [1], [0, 0, 1, 1], [], []>} : vector<1x32xf32>, vector<32x32xf32>, vector<1x32xf32> -> vector<1x32xf32>
    %c0_7 = arith.constant 0 : index
    %c0_8 = arith.constant 0 : index
    %10 = vector.load %arg4[%c0_7, %c0_8] : memref<32x32xf32, #tpu.memory_space<vmem>>, vector<32x32xf32>
    %cst_9 = arith.constant dense<0.000000e+00> : vector<1x32xf32>
    %11 = tpu.matmul %7, %10, %cst_9 {dimension_numbers = #tpu.dot_dimension_numbers<[1], [0], [0], [1], [0, 0, 1, 1], [], []>} : vector<1x32xf32>, vector<32x32xf32>, vector<1x32xf32> -> vector<1x32xf32>
    %12 = arith.mulf %9, %9 : vector<1x32xf32>
    %13 = arith.subf %11, %12 : vector<1x32xf32>
    %cst_10 = arith.constant 9.99999997E-7 : f32
    %14 = vector.broadcast %cst_10 : f32 to vector<1x32xf32>
    %15 = arith.addf %13, %14 : vector<1x32xf32>
    %16 = math.rsqrt %15 : vector<1x32xf32>
    %c0_11 = arith.constant 0 : index
    %c0_12 = arith.constant 0 : index
    %17 = vector.load %arg2[%c0_11, %c0_12] : memref<1x32xf32, #tpu.memory_space<vmem>>, vector<1x32xf32>
    %18 = arith.mulf %17, %16 : vector<1x32xf32>
    %c0_13 = arith.constant 0 : index
    %c0_14 = arith.constant 0 : index
    %19 = vector.load %arg3[%c0_13, %c0_14] : memref<1x32xf32, #tpu.memory_space<vmem>>, vector<1x32xf32>
    %20 = arith.mulf %9, %18 : vector<1x32xf32>
    %21 = arith.subf %19, %20 : vector<1x32xf32>
    %22 = vector.broadcast %18 : vector<1x32xf32> to vector<256x32xf32>
    %23 = arith.mulf %2, %22 : vector<256x32xf32>
    %24 = vector.broadcast %21 : vector<1x32xf32> to vector<256x32xf32>
    %25 = arith.addf %23, %24 : vector<256x32xf32>
    %26 = arith.negf %25 : vector<256x32xf32>
    %27 = math.exp %26 : vector<256x32xf32>
    %cst_15 = arith.constant 1.000000e+00 : f32
    %28 = vector.broadcast %cst_15 : f32 to vector<256x32xf32>
    %29 = arith.addf %28, %27 : vector<256x32xf32>
    %30 = arith.divf %28, %29 : vector<256x32xf32>
    %31 = arith.mulf %25, %30 : vector<256x32xf32>
    %32 = vector.shape_cast %31 : vector<256x32xf32> to vector<16x16x32xf32>
    %cst_16 = arith.constant 0.000000e+00 : f32
    %33 = vector.broadcast %cst_16 : f32 to vector<18x16x96xf32>
    %c0_17 = arith.constant 0 : index
    %c0_18 = arith.constant 0 : index
    %c0_19 = arith.constant 0 : index
    %34 = vector.load %arg15[%c0_17, %c0_18, %c0_19] : memref<18x16x96xf32, #tpu.memory_space<vmem>>, vector<18x16x96xf32>
    tpu.vector_store %arg15[%c0_17, %c0_18, %c0_19], %33 {strides = array<i32>} : memref<18x16x96xf32, #tpu.memory_space<vmem>>, vector<18x16x96xf32>,
    %c1 = arith.constant 1 : index
    %c0_20 = arith.constant 0 : index
    %c32 = arith.constant 32 : index
    %35 = vector.load %arg15[%c1, %c0_20, %c32] : memref<18x16x96xf32, #tpu.memory_space<vmem>>, vector<16x16x32xf32>
    tpu.vector_store %arg15[%c1, %c0_20, %c32], %32 {strides = array<i32>} : memref<18x16x96xf32, #tpu.memory_space<vmem>>, vector<16x16x32xf32>,
    %36 = vector.extract_strided_slice %32 {offsets = [0, 0, 0], sizes = [16, 15, 32], strides = [1, 1, 1]} : vector<16x16x32xf32> to vector<16x15x32xf32>
    %c1_21 = arith.constant 1 : index
    %c1_22 = arith.constant 1 : index
    %c0_23 = arith.constant 0 : index
    %37 = vector.load %arg15[%c1_21, %c1_22, %c0_23] : memref<18x16x96xf32, #tpu.memory_space<vmem>>, vector<16x15x32xf32>
    tpu.vector_store %arg15[%c1_21, %c1_22, %c0_23], %36 {strides = array<i32>} : memref<18x16x96xf32, #tpu.memory_space<vmem>>, vector<16x15x32xf32>,
    %38 = vector.extract_strided_slice %32 {offsets = [0, 1, 0], sizes = [16, 15, 32], strides = [1, 1, 1]} : vector<16x16x32xf32> to vector<16x15x32xf32>
    %c1_24 = arith.constant 1 : index
    %c0_25 = arith.constant 0 : index
    %c64 = arith.constant 64 : index
    %39 = vector.load %arg15[%c1_24, %c0_25, %c64] : memref<18x16x96xf32, #tpu.memory_space<vmem>>, vector<16x15x32xf32>
    tpu.vector_store %arg15[%c1_24, %c0_25, %c64], %38 {strides = array<i32>} : memref<18x16x96xf32, #tpu.memory_space<vmem>>, vector<16x15x32xf32>,
    %cst_26 = arith.constant 0.000000e+00 : f32
    %40 = vector.broadcast %cst_26 : f32 to vector<256x64xf32>
    %c0_27 = arith.constant 0 : index
    %c0_28 = arith.constant 0 : index
    %c0_29 = arith.constant 0 : index
    %41 = vector.load %arg15[%c0_27, %c0_28, %c0_29] : memref<18x16x96xf32, #tpu.memory_space<vmem>>, vector<16x16x96xf32>
    %42 = vector.shape_cast %41 : vector<16x16x96xf32> to vector<256x96xf32>
    %43 = arith.truncf %42 : vector<256x96xf32> to vector<256x96xbf16>
    %c0_30 = arith.constant 0 : index
    %c0_31 = arith.constant 0 : index
    %c0_32 = arith.constant 0 : index
    %44 = vector.load %arg5[%c0_30, %c0_31, %c0_32] : memref<3x96x64xbf16, #tpu.memory_space<vmem>>, vector<1x96x64xbf16>
    %45 = vector.shape_cast %44 : vector<1x96x64xbf16> to vector<96x64xbf16>
    %cst_33 = arith.constant dense<0.000000e+00> : vector<256x64xf32>
    %46 = tpu.matmul %43, %45, %cst_33 {dimension_numbers = #tpu.dot_dimension_numbers<[1], [0], [0], [1], [0, 0, 1, 1], [], []>} : vector<256x96xbf16>, vector<96x64xbf16>, vector<256x64xf32> -> vector<256x64xf32>
    %47 = arith.addf %40, %46 : vector<256x64xf32>
    %c1_34 = arith.constant 1 : index
    %c0_35 = arith.constant 0 : index
    %c0_36 = arith.constant 0 : index
    %48 = vector.load %arg15[%c1_34, %c0_35, %c0_36] : memref<18x16x96xf32, #tpu.memory_space<vmem>>, vector<16x16x96xf32>
    %49 = vector.shape_cast %48 : vector<16x16x96xf32> to vector<256x96xf32>
    %50 = arith.truncf %49 : vector<256x96xf32> to vector<256x96xbf16>
    %c1_37 = arith.constant 1 : index
    %c0_38 = arith.constant 0 : index
    %c0_39 = arith.constant 0 : index
    %51 = vector.load %arg5[%c1_37, %c0_38, %c0_39] : memref<3x96x64xbf16, #tpu.memory_space<vmem>>, vector<1x96x64xbf16>
    %52 = vector.shape_cast %51 : vector<1x96x64xbf16> to vector<96x64xbf16>
    %cst_40 = arith.constant dense<0.000000e+00> : vector<256x64xf32>
    %53 = tpu.matmul %50, %52, %cst_40 {dimension_numbers = #tpu.dot_dimension_numbers<[1], [0], [0], [1], [0, 0, 1, 1], [], []>} : vector<256x96xbf16>, vector<96x64xbf16>, vector<256x64xf32> -> vector<256x64xf32>
    %54 = arith.addf %47, %53 : vector<256x64xf32>
    %c2 = arith.constant 2 : index
    %c0_41 = arith.constant 0 : index
    %c0_42 = arith.constant 0 : index
    %55 = vector.load %arg15[%c2, %c0_41, %c0_42] : memref<18x16x96xf32, #tpu.memory_space<vmem>>, vector<16x16x96xf32>
    %56 = vector.shape_cast %55 : vector<16x16x96xf32> to vector<256x96xf32>
    %57 = arith.truncf %56 : vector<256x96xf32> to vector<256x96xbf16>
    %c2_43 = arith.constant 2 : index
    %c0_44 = arith.constant 0 : index
    %c0_45 = arith.constant 0 : index
    %58 = vector.load %arg5[%c2_43, %c0_44, %c0_45] : memref<3x96x64xbf16, #tpu.memory_space<vmem>>, vector<1x96x64xbf16>
    %59 = vector.shape_cast %58 : vector<1x96x64xbf16> to vector<96x64xbf16>
    %cst_46 = arith.constant dense<0.000000e+00> : vector<256x64xf32>
    %60 = tpu.matmul %57, %59, %cst_46 {dimension_numbers = #tpu.dot_dimension_numbers<[1], [0], [0], [1], [0, 0, 1, 1], [], []>} : vector<256x96xbf16>, vector<96x64xbf16>, vector<256x64xf32> -> vector<256x64xf32>
    %61 = arith.addf %54, %60 : vector<256x64xf32>
    %c0_47 = arith.constant 0 : index
    %c0_48 = arith.constant 0 : index
    %c0_49 = arith.constant 0 : index
    %62 = vector.load %arg6[%c0_47, %c0_48, %c0_49] : memref<1x1x64xf32, #tpu.memory_space<vmem>>, vector<1x1x64xf32>
    %63 = vector.shape_cast %62 : vector<1x1x64xf32> to vector<1x64xf32>
    %64 = vector.broadcast %63 : vector<1x64xf32> to vector<256x64xf32>
    %65 = arith.addf %61, %64 : vector<256x64xf32>
    %cst_50 = arith.constant dense<0.000000e+00> : vector<64xf32>
    %66 = vector.multi_reduction <add>, %65, %cst_50 [0] : vector<256x64xf32> to vector<64xf32>
    %67 = vector.shape_cast %66 : vector<64xf32> to vector<1x64xf32>
    %68 = arith.mulf %65, %65 : vector<256x64xf32>
    %cst_51 = arith.constant dense<0.000000e+00> : vector<64xf32>
    %69 = vector.multi_reduction <add>, %68, %cst_51 [0] : vector<256x64xf32> to vector<64xf32>
    %70 = vector.shape_cast %69 : vector<64xf32> to vector<1x64xf32>
    %c0_52 = arith.constant 0 : index
    %c0_53 = arith.constant 0 : index
    %71 = vector.load %arg9[%c0_52, %c0_53] : memref<64x64xf32, #tpu.memory_space<vmem>>, vector<64x64xf32>
    %cst_54 = arith.constant dense<0.000000e+00> : vector<1x64xf32>
    %72 = tpu.matmul %67, %71, %cst_54 {dimension_numbers = #tpu.dot_dimension_numbers<[1], [0], [0], [1], [0, 0, 1, 1], [], []>} : vector<1x64xf32>, vector<64x64xf32>, vector<1x64xf32> -> vector<1x64xf32>
    %c0_55 = arith.constant 0 : index
    %c0_56 = arith.constant 0 : index
    %73 = vector.load %arg9[%c0_55, %c0_56] : memref<64x64xf32, #tpu.memory_space<vmem>>, vector<64x64xf32>
    %cst_57 = arith.constant dense<0.000000e+00> : vector<1x64xf32>
    %74 = tpu.matmul %70, %73, %cst_57 {dimension_numbers = #tpu.dot_dimension_numbers<[1], [0], [0], [1], [0, 0, 1, 1], [], []>} : vector<1x64xf32>, vector<64x64xf32>, vector<1x64xf32> -> vector<1x64xf32>
    %75 = arith.mulf %72, %72 : vector<1x64xf32>
    %76 = arith.subf %74, %75 : vector<1x64xf32>
    %cst_58 = arith.constant 9.99999997E-7 : f32
    %77 = vector.broadcast %cst_58 : f32 to vector<1x64xf32>
    %78 = arith.addf %76, %77 : vector<1x64xf32>
    %79 = math.rsqrt %78 : vector<1x64xf32>
    %c0_59 = arith.constant 0 : index
    %c0_60 = arith.constant 0 : index
    %80 = vector.load %arg7[%c0_59, %c0_60] : memref<1x64xf32, #tpu.memory_space<vmem>>, vector<1x64xf32>
    %81 = arith.mulf %80, %79 : vector<1x64xf32>
    %c0_61 = arith.constant 0 : index
    %c0_62 = arith.constant 0 : index
    %82 = vector.load %arg8[%c0_61, %c0_62] : memref<1x64xf32, #tpu.memory_space<vmem>>, vector<1x64xf32>
    %83 = arith.mulf %72, %81 : vector<1x64xf32>
    %84 = arith.subf %82, %83 : vector<1x64xf32>
    %85 = vector.broadcast %81 : vector<1x64xf32> to vector<256x64xf32>
    %86 = arith.mulf %65, %85 : vector<256x64xf32>
    %87 = vector.broadcast %84 : vector<1x64xf32> to vector<256x64xf32>
    %88 = arith.addf %86, %87 : vector<256x64xf32>
    %89 = arith.negf %88 : vector<256x64xf32>
    %90 = math.exp %89 : vector<256x64xf32>
    %cst_63 = arith.constant 1.000000e+00 : f32
    %91 = vector.broadcast %cst_63 : f32 to vector<256x64xf32>
    %92 = arith.addf %91, %90 : vector<256x64xf32>
    %93 = arith.divf %91, %92 : vector<256x64xf32>
    %94 = arith.mulf %88, %93 : vector<256x64xf32>
    %95 = vector.shape_cast %94 : vector<256x64xf32> to vector<16x16x64xf32>
    %cst_64 = arith.constant 0.000000e+00 : f32
    %96 = vector.broadcast %cst_64 : f32 to vector<18x16x192xf32>
    %c0_65 = arith.constant 0 : index
    %c0_66 = arith.constant 0 : index
    %c0_67 = arith.constant 0 : index
    %97 = vector.load %arg16[%c0_65, %c0_66, %c0_67] : memref<18x16x192xf32, #tpu.memory_space<vmem>>, vector<18x16x192xf32>
    tpu.vector_store %arg16[%c0_65, %c0_66, %c0_67], %96 {strides = array<i32>} : memref<18x16x192xf32, #tpu.memory_space<vmem>>, vector<18x16x192xf32>,
    %c1_68 = arith.constant 1 : index
    %c0_69 = arith.constant 0 : index
    %c64_70 = arith.constant 64 : index
    %98 = vector.load %arg16[%c1_68, %c0_69, %c64_70] : memref<18x16x192xf32, #tpu.memory_space<vmem>>, vector<16x16x64xf32>
    tpu.vector_store %arg16[%c1_68, %c0_69, %c64_70], %95 {strides = array<i32>} : memref<18x16x192xf32, #tpu.memory_space<vmem>>, vector<16x16x64xf32>,
    %99 = vector.extract_strided_slice %95 {offsets = [0, 0, 0], sizes = [16, 15, 64], strides = [1, 1, 1]} : vector<16x16x64xf32> to vector<16x15x64xf32>
    %c1_71 = arith.constant 1 : index
    %c1_72 = arith.constant 1 : index
    %c0_73 = arith.constant 0 : index
    %100 = vector.load %arg16[%c1_71, %c1_72, %c0_73] : memref<18x16x192xf32, #tpu.memory_space<vmem>>, vector<16x15x64xf32>
    tpu.vector_store %arg16[%c1_71, %c1_72, %c0_73], %99 {strides = array<i32>} : memref<18x16x192xf32, #tpu.memory_space<vmem>>, vector<16x15x64xf32>,
    %101 = vector.extract_strided_slice %95 {offsets = [0, 1, 0], sizes = [16, 15, 64], strides = [1, 1, 1]} : vector<16x16x64xf32> to vector<16x15x64xf32>
    %c1_74 = arith.constant 1 : index
    %c0_75 = arith.constant 0 : index
    %c128 = arith.constant 128 : index
    %102 = vector.load %arg16[%c1_74, %c0_75, %c128] : memref<18x16x192xf32, #tpu.memory_space<vmem>>, vector<16x15x64xf32>
    tpu.vector_store %arg16[%c1_74, %c0_75, %c128], %101 {strides = array<i32>} : memref<18x16x192xf32, #tpu.memory_space<vmem>>, vector<16x15x64xf32>,
    %cst_76 = arith.constant 0.000000e+00 : f32
    %103 = vector.broadcast %cst_76 : f32 to vector<256x64xf32>
    %c0_77 = arith.constant 0 : index
    %c0_78 = arith.constant 0 : index
    %c0_79 = arith.constant 0 : index
    %104 = vector.load %arg16[%c0_77, %c0_78, %c0_79] : memref<18x16x192xf32, #tpu.memory_space<vmem>>, vector<16x16x192xf32>
    %105 = vector.shape_cast %104 : vector<16x16x192xf32> to vector<256x192xf32>
    %106 = arith.truncf %105 : vector<256x192xf32> to vector<256x192xbf16>
    %c0_80 = arith.constant 0 : index
    %c0_81 = arith.constant 0 : index
    %c0_82 = arith.constant 0 : index
    %107 = vector.load %arg10[%c0_80, %c0_81, %c0_82] : memref<3x192x64xbf16, #tpu.memory_space<vmem>>, vector<1x192x64xbf16>
    %108 = vector.shape_cast %107 : vector<1x192x64xbf16> to vector<192x64xbf16>
    %cst_83 = arith.constant dense<0.000000e+00> : vector<256x64xf32>
    %109 = tpu.matmul %106, %108, %cst_83 {dimension_numbers = #tpu.dot_dimension_numbers<[1], [0], [0], [1], [0, 0, 1, 1], [], []>} : vector<256x192xbf16>, vector<192x64xbf16>, vector<256x64xf32> -> vector<256x64xf32>
    %110 = arith.addf %103, %109 : vector<256x64xf32>
    %c1_84 = arith.constant 1 : index
    %c0_85 = arith.constant 0 : index
    %c0_86 = arith.constant 0 : index
    %111 = vector.load %arg16[%c1_84, %c0_85, %c0_86] : memref<18x16x192xf32, #tpu.memory_space<vmem>>, vector<16x16x192xf32>
    %112 = vector.shape_cast %111 : vector<16x16x192xf32> to vector<256x192xf32>
    %113 = arith.truncf %112 : vector<256x192xf32> to vector<256x192xbf16>
    %c1_87 = arith.constant 1 : index
    %c0_88 = arith.constant 0 : index
    %c0_89 = arith.constant 0 : index
    %114 = vector.load %arg10[%c1_87, %c0_88, %c0_89] : memref<3x192x64xbf16, #tpu.memory_space<vmem>>, vector<1x192x64xbf16>
    %115 = vector.shape_cast %114 : vector<1x192x64xbf16> to vector<192x64xbf16>
    %cst_90 = arith.constant dense<0.000000e+00> : vector<256x64xf32>
    %116 = tpu.matmul %113, %115, %cst_90 {dimension_numbers = #tpu.dot_dimension_numbers<[1], [0], [0], [1], [0, 0, 1, 1], [], []>} : vector<256x192xbf16>, vector<192x64xbf16>, vector<256x64xf32> -> vector<256x64xf32>
    %117 = arith.addf %110, %116 : vector<256x64xf32>
    %c2_91 = arith.constant 2 : index
    %c0_92 = arith.constant 0 : index
    %c0_93 = arith.constant 0 : index
    %118 = vector.load %arg16[%c2_91, %c0_92, %c0_93] : memref<18x16x192xf32, #tpu.memory_space<vmem>>, vector<16x16x192xf32>
    %119 = vector.shape_cast %118 : vector<16x16x192xf32> to vector<256x192xf32>
    %120 = arith.truncf %119 : vector<256x192xf32> to vector<256x192xbf16>
    %c2_94 = arith.constant 2 : index
    %c0_95 = arith.constant 0 : index
    %c0_96 = arith.constant 0 : index
    %121 = vector.load %arg10[%c2_94, %c0_95, %c0_96] : memref<3x192x64xbf16, #tpu.memory_space<vmem>>, vector<1x192x64xbf16>
    %122 = vector.shape_cast %121 : vector<1x192x64xbf16> to vector<192x64xbf16>
    %cst_97 = arith.constant dense<0.000000e+00> : vector<256x64xf32>
    %123 = tpu.matmul %120, %122, %cst_97 {dimension_numbers = #tpu.dot_dimension_numbers<[1], [0], [0], [1], [0, 0, 1, 1], [], []>} : vector<256x192xbf16>, vector<192x64xbf16>, vector<256x64xf32> -> vector<256x64xf32>
    %124 = arith.addf %117, %123 : vector<256x64xf32>
    %c0_98 = arith.constant 0 : index
    %c0_99 = arith.constant 0 : index
    %125 = vector.load %arg11[%c0_98, %c0_99] : memref<1x64xf32, #tpu.memory_space<vmem>>, vector<1x64xf32>
    %126 = vector.broadcast %125 : vector<1x64xf32> to vector<256x64xf32>
    %127 = arith.addf %124, %126 : vector<256x64xf32>
    %128 = arith.truncf %2 : vector<256x32xf32> to vector<256x32xbf16>
    %c0_100 = arith.constant 0 : index
    %c0_101 = arith.constant 0 : index
    %129 = vector.load %arg12[%c0_100, %c0_101] : memref<32x64xbf16, #tpu.memory_space<vmem>>, vector<32x64xbf16>
    %cst_102 = arith.constant dense<0.000000e+00> : vector<256x64xf32>
    %130 = tpu.matmul %128, %129, %cst_102 {dimension_numbers = #tpu.dot_dimension_numbers<[1], [0], [0], [1], [0, 0, 1, 1], [], []>} : vector<256x32xbf16>, vector<32x64xbf16>, vector<256x64xf32> -> vector<256x64xf32>
    %c0_103 = arith.constant 0 : index
    %c0_104 = arith.constant 0 : index
    %131 = vector.load %arg13[%c0_103, %c0_104] : memref<1x64xf32, #tpu.memory_space<vmem>>, vector<1x64xf32>
    %132 = vector.broadcast %131 : vector<1x64xf32> to vector<256x64xf32>
    %133 = arith.addf %130, %132 : vector<256x64xf32>
    %134 = arith.addf %133, %127 : vector<256x64xf32>
    %cst_105 = arith.constant 1.000000e+00 : f32
    %135 = vector.broadcast %cst_105 : f32 to vector<256x64xf32>
    %136 = arith.mulf %134, %135 : vector<256x64xf32>
    %137 = vector.shape_cast %136 : vector<256x64xf32> to vector<16x16x64xf32>
    %c0_106 = arith.constant 0 : index
    %c0_107 = arith.constant 0 : index
    %c0_108 = arith.constant 0 : index
    %c0_109 = arith.constant 0 : index
    %138 = vector.load %arg14[%c0_106, %c0_107, %c0_108, %c0_109] : memref<1x16x16x64xf32, #tpu.memory_space<vmem>>, vector<1x16x16x64xf32>
    %139 = vector.shape_cast %138 : vector<1x16x16x64xf32> to vector<16x16x64xf32>
    %140 = vector.shape_cast %137 : vector<16x16x64xf32> to vector<1x16x16x64xf32>
    tpu.vector_store %arg14[%c0_106, %c0_107, %c0_108, %c0_109], %140 {strides = array<i32>} : memref<1x16x16x64xf32, #tpu.memory_space<vmem>>, vector<1x16x16x64xf32>,
    return
  }
  func.func @transform_0(%arg0: i32) -> (i32, i32, i32, i32) {
    %c0_i32 = arith.constant 0 : i32
    %c0_i32_0 = arith.constant 0 : i32
    %c0_i32_1 = arith.constant 0 : i32
    %c0_i32_2 = arith.constant 0 : i32
    return %arg0, %c0_i32, %c0_i32_0, %c0_i32_1 : i32, i32, i32, i32
  }
  func.func @transform_1(%arg0: i32) -> (i32, i32) {
    %c0_i32 = arith.constant 0 : i32
    %c0_i32_0 = arith.constant 0 : i32
    %c0_i32_1 = arith.constant 0 : i32
    return %c0_i32, %c0_i32_0 : i32, i32
  }
  func.func @transform_2(%arg0: i32) -> (i32, i32) {
    %c0_i32 = arith.constant 0 : i32
    %c0_i32_0 = arith.constant 0 : i32
    %c0_i32_1 = arith.constant 0 : i32
    return %c0_i32, %c0_i32_0 : i32, i32
  }
  func.func @transform_3(%arg0: i32) -> (i32, i32) {
    %c0_i32 = arith.constant 0 : i32
    %c0_i32_0 = arith.constant 0 : i32
    %c0_i32_1 = arith.constant 0 : i32
    return %c0_i32, %c0_i32_0 : i32, i32
  }
  func.func @transform_4(%arg0: i32) -> (i32, i32, i32) {
    %c0_i32 = arith.constant 0 : i32
    %c0_i32_0 = arith.constant 0 : i32
    %c0_i32_1 = arith.constant 0 : i32
    %c0_i32_2 = arith.constant 0 : i32
    return %c0_i32, %c0_i32_0, %c0_i32_1 : i32, i32, i32
  }
  func.func @transform_5(%arg0: i32) -> (i32, i32, i32) {
    %c0_i32 = arith.constant 0 : i32
    %c0_i32_0 = arith.constant 0 : i32
    %c0_i32_1 = arith.constant 0 : i32
    return %arg0, %c0_i32, %c0_i32_0 : i32, i32, i32
  }
  func.func @transform_6(%arg0: i32) -> (i32, i32) {
    %c0_i32 = arith.constant 0 : i32
    %c0_i32_0 = arith.constant 0 : i32
    %c0_i32_1 = arith.constant 0 : i32
    return %c0_i32, %c0_i32_0 : i32, i32
  }
  func.func @transform_7(%arg0: i32) -> (i32, i32) {
    %c0_i32 = arith.constant 0 : i32
    %c0_i32_0 = arith.constant 0 : i32
    %c0_i32_1 = arith.constant 0 : i32
    return %c0_i32, %c0_i32_0 : i32, i32
  }
  func.func @transform_8(%arg0: i32) -> (i32, i32) {
    %c0_i32 = arith.constant 0 : i32
    %c0_i32_0 = arith.constant 0 : i32
    %c0_i32_1 = arith.constant 0 : i32
    return %c0_i32, %c0_i32_0 : i32, i32
  }
  func.func @transform_9(%arg0: i32) -> (i32, i32, i32) {
    %c0_i32 = arith.constant 0 : i32
    %c0_i32_0 = arith.constant 0 : i32
    %c0_i32_1 = arith.constant 0 : i32
    %c0_i32_2 = arith.constant 0 : i32
    return %c0_i32, %c0_i32_0, %c0_i32_1 : i32, i32, i32
  }
  func.func @transform_10(%arg0: i32) -> (i32, i32) {
    %c0_i32 = arith.constant 0 : i32
    %c0_i32_0 = arith.constant 0 : i32
    %c0_i32_1 = arith.constant 0 : i32
    return %c0_i32, %c0_i32_0 : i32, i32
  }
  func.func @transform_11(%arg0: i32) -> (i32, i32) {
    %c0_i32 = arith.constant 0 : i32
    %c0_i32_0 = arith.constant 0 : i32
    %c0_i32_1 = arith.constant 0 : i32
    return %c0_i32, %c0_i32_0 : i32, i32
  }
  func.func @transform_12(%arg0: i32) -> (i32, i32) {
    %c0_i32 = arith.constant 0 : i32
    %c0_i32_0 = arith.constant 0 : i32
    %c0_i32_1 = arith.constant 0 : i32
    return %c0_i32, %c0_i32_0 : i32, i32
  }
  func.func @transform_13(%arg0: i32) -> (i32, i32, i32, i32) {
    %c0_i32 = arith.constant 0 : i32
    %c0_i32_0 = arith.constant 0 : i32
    %c0_i32_1 = arith.constant 0 : i32
    %c0_i32_2 = arith.constant 0 : i32
    return %arg0, %c0_i32, %c0_i32_0, %c0_i32_1 : i32, i32, i32, i32
  }
}

</mosaic_0001>

<bundles_post_ra>
// kernel: pare_resnet_block_2d.1
= control target key start
LH: loop header
LB: loop body
LE: loop exit
PB: predicated region body
PF: predicated region fallthrough
CT: control target
= control target key end

     0   :  { %s9611_s0 = inlined_call_operand.vmem [shape: f32[2,16,16,32], index: 0, kind: input, shape index: {}]   ;;  %s9612_s1 = inlined_call_operand.vmem [shape: f32[1,32], index: 1, kind: input, shape index: {}]   ;;  %s9613_s2 = inlined_call_operand.vmem [shape: f32[1,32], index: 2, kind: input, shape index: {}]   ;;  %s9614_s3 = inlined_call_operand.vmem [shape: f32[32,32], index: 3, kind: input, shape index: {}]   ;;  %s9615_s4 = inlined_call_operand.vmem [shape: bf16[3,96,64], index: 4, kind: input, shape index: {}]   ;;  %s9616_s5 = inlined_call_operand.vmem [shape: f32[2,1,64], index: 5, kind: input, shape index: {}]   ;;  %s9617_s6 = inlined_call_operand.vmem [shape: f32[1,64], index: 6, kind: input, shape index: {}]   ;;  %s9618_s7 = inlined_call_operand.vmem [shape: f32[1,64], index: 7, kind: input, shape index: {}]   ;;  %s9619_s8 = inlined_call_operand.vmem [shape: f32[64,64], index: 8, kind: input, shape index: {}]   ;;  %s9620_s9 = inlined_call_operand.vmem [shape: bf16[3,192,64], index: 9, kind: input, shape index: {}]   ;;  %s9621_s10 = inlined_call_operand.vmem [shape: f32[1,64], index: 10, kind: input, shape index: {}]   ;;  %s9622_s11 = inlined_call_operand.vmem [shape: bf16[32,64], index: 11, kind: input, shape index: {}]   ;;  %s9623_s12 = inlined_call_operand.vmem [shape: f32[1,64], index: 12, kind: input, shape index: {}]   ;;  %s9624_s13 = inlined_call_operand.hbm [shape: f32[2,16,16,64], index: 13, kind: output, shape index: {}]  }
   0x1   :  { %9632 = sst [smem:[#allocation21_spill]] %s9611_s0 }
   0x2   :  { %9633 = sst [smem:[#allocation22_spill]] %s9612_s1 }
   0x3   :  { %18 = vsyncpa [#allocation5], 0 }
   0x4   :  { %20 = vsyncpa [#allocation5 + $0x1], 0  ;;  %s6547_s25 = smov 0   ;;  %s6549_s26 = smov 0  }
   0x5   :  { %s6551_s27 = smov 0   ;;  %s6553_s28 = smov 0  }
   0x6 LB: > { %s6568_s29 = sadd.s32 4294967295, %s6466_s28   ;;  %s5237_s30 = sadd.s32 4294967294, %s6466_s28   ;;  %s6466_s28 = sphi %s6553_s28, %s9674_s28   ;;  %s6462_s27 = sphi %s6551_s27, %s9673_s27   ;;  %s6458_s26 = sphi %s6549_s26, %s9672_s26   ;;  %s6454_s25 = sphi %s6547_s25, %s9671_s25  }
   0x7   : > { %s6572_s14 = sadd.s32 1, %s6466_s28   ;;  %s316_s15 = sadd.s32 1, %s6462_s27 }
   0x8   : > { %s313_s16 = ssub.s32 %s6466_s28, %s6572_s14  ;;  %p326_p0 = scmp.ne.s32.totalorder %s6462_s27, %s6458_s26 }
   0x9   : > { %p314_p1 = scmp.eq.s32.totalorder %s313_s16, 0  ;;  %p327_p2 = scmp.eq.s32.totalorder %s6568_s29, 1 }
   0xa   : > { %p332_p3 = scmp.ne.s32.totalorder %s6458_s26, %s6454_s25  ;;  %p333_p4 = scmp.eq.s32.totalorder %s5237_s30, 1 }
   0xb   : > { %s6583_s17 = scalar_select %p314_p1, %s6462_s27, %s316_s15  }
   0xc   : > { %p6585_p5 = por %p327_p2, %p326_p0  ;;  %p6589_p6 = por %p333_p4, %p332_p3 }
   0xd   : > { %p5240_p7 = scmp.ge.s32.totalorder %s6466_s28, 1  ;;  %p398_p8 = scmp.lt.s32.totalorder %s6466_s28, 3 }
   0xf   : > { %p399_p9 = pnand %p5240_p7, %p398_p8 }
  0x11   : > { %402 = sbr.rel (%p399_p9) target bundleno = 1934 (0x78e), region = 72 }
  0x18   : > { %v657_v0 = vld [vmem:[%s9614_s3] sm:$0xff]  ;;  %v658_v1 = vld [vmem:[%s9614_s3 + $0x8] sm:$0xff]  ;;  %v659_v2 = vld [vmem:[%s9614_s3 + $0x10] sm:$0xff]  ;;  %v9625_v3 = vmov 0.0|0.0   ;;  %v9627_v6 = vmov 0.0   ;;  %p445_p10 = scmp.lt.s32.totalorder %s6568_s29, 1 }
  0x19   : > { %5902 = vmatprep.subr.bf16.mxu0 %v9625_v3  ;;  %v5903_v4 = vpack.c.bf16 %v658_v1, %v657_v0  ;;  %5908 = vmatprep.subr.bf16.mxu1 %v9625_v3  ;;  %v660_v5 = vld [vmem:[%s9614_s3 + $0x18] sm:$0xff]  ;;  %3101 = vst [vmem:[#allocation3] sm:$0xff] %v9627_v6  ;;  %3105 = vst [vmem:[#allocation3 + $0x20] sm:$0xff] %v9627_v6  ;;  %vm6470_vm0 = vmmov 0   ;;  %vm486_vm1 = vcmask 261120   ;;  %s9636_s0 = sld [smem:[#allocation21_spill]] }
  0x1a   : > { %3107 = vst [vmem:[#allocation3 + $0x30] sm:$0xff] %v9627_v6  ;;  %3109 = vst [vmem:[#allocation3 + $0x40] sm:$0xff] %v9627_v6  ;;  %5682 = vmatprep.mubr.msk.f32.mxu0 %vm6470_vm0, %v9627_v6  ;;  %5693 = vmatprep.mubr.msk.f32.mxu1 %vm6470_vm0, %v9627_v6  ;;  %v5906_v7 = vpack.c.bf16 %v660_v5, %v659_v2  ;;  %s6648_s20 = scalar_select %p445_p10, %s6568_s29, 1  ;;  %vm1116_vm2 = vcmask 785408   ;;  %vm1282_vm3 = vcmask 523520   ;;  %vm1316_vm4 = vcmask 260096  }
  0x1b   : > { %3111 = vst [vmem:[#allocation3 + $0x50] sm:$0xff] %v9627_v6  ;;  %3113 = vst [vmem:[#allocation3 + $0x60] sm:$0xff] %v9627_v6  ;;  %5904 = vmatpush3.bf16.msra.mxu0 %v5903_v4  ;;  %5910 = vmatpush3.bf16.msra.mxu1 %v5903_v4  ;;  %s9639_s1 = sld [smem:[#allocation22_spill]]  ;;  %s6471_s30 = smov 32   ;;  %vm1446_vm5 = vcmask 785920   ;;  %vm1444_vm6 = vcmask 785921  }
  0x1c   : > { %3115 = vst [vmem:[#allocation3 + $0x70] sm:$0xff] %v9627_v6  ;;  %3117 = vst [vmem:[#allocation3 + $0x80] sm:$0xff] %v9627_v6  ;;  %5905 = vmatprep.subr.bf16.mxu0 %v9625_v3  ;;  %5911 = vmatprep.subr.bf16.mxu1 %v9625_v3  ;;  %s5560_s21 = sshll.u32 %s6648_s20, 8  ;;  %s9630_s23 = smov 64   ;;  %vm2467_vm7 = vcmask 523264   ;;  %vm3531_vm8 = vcmask 522240  }
  0x1d   : > { %3119 = vst [vmem:[#allocation3 + $0x90] sm:$0xff] %v9627_v6  ;;  %3121 = vst [vmem:[#allocation3 + $0xa0] sm:$0xff] %v9627_v6  ;;  %s452_s22 = scalar_lea.vmem %s9616_s5, %s6648_s20  ;;  %vm3449_vm9 = vcmask 1046528   ;;  %vm3335_vm10 = vcmask 1040384   ;;  %vm3302_vm11 = vcmask 1048064   ;;  %vm3416_vm12 = vcmask 523265  }
  0x1e   : > { %3123 = vst [vmem:[#allocation3 + $0xb0] sm:$0xff] %v9627_v6  ;;  %3125 = vst [vmem:[#allocation3 + $0xc0] sm:$0xff] %v9627_v6 }
  0x1f   : > { %3127 = vst [vmem:[#allocation3 + $0xd0] sm:$0xff] %v9627_v6  ;;  %3129 = vst [vmem:[#allocation3 + $0xe0] sm:$0xff] %v9627_v6  ;;  %s6656_s24 = scalar_lea.vmem %s9636_s0, %s5560_s21  ;;  %5907 = vmatpush3.bf16.msra.mxu0 %v5906_v7  ;;  %5913 = vmatpush3.bf16.msra.mxu1 %v5906_v7 }
  0x20   : > { %3131 = vst [vmem:[#allocation3 + $0xf0] sm:$0xff] %v9627_v6  ;;  %3133 = vst [vmem:[#allocation3 + $0x100] sm:$0xff] %v9627_v6  ;;  %v6659_v8 = vld [vmem:[%s6656_s24] sm:$0xff]  ;;  %v6662_v9 = vld [vmem:[%s6656_s24 + $0x8] sm:$0xff]  ;;  %5914 = vmatprep.subr.bf16.mxu1 %v9625_v3 }
  0x21   : > { %3135 = vst [vmem:[#allocation3 + $0x110] sm:$0xff] %v9627_v6  ;;  %3137 = vst [vmem:[#allocation3 + $0x120] sm:$0xff] %v9627_v6  ;;  %v6665_v10 = vld [vmem:[%s6656_s24 + $0x10] sm:$0xff]  ;;  %v6668_v11 = vld [vmem:[%s6656_s24 + $0x18] sm:$0xff]  ;;  %v487_v12 = vsel %vm486_vm1, %v6659_v8, 0.0  ;;  %v488_v13 = vsel %vm486_vm1, %v6662_v9, 0.0  ;;  %v556_v61 = vmul.f32 %v6659_v8, %v6659_v8  ;;  %v557_v62 = vmul.f32 %v6662_v9, %v6662_v9 }
  0x22   : > { %3139 = vst [vmem:[#allocation3 + $0x130] sm:$0xff] %v9627_v6  ;;  %3141 = vst [vmem:[#allocation3 + $0x140] sm:$0xff] %v9627_v6  ;;  %v490_v14 = vsel %vm486_vm1, %v6665_v10, 0.0  ;;  %v6678_v15 = vld [vmem:[%s6656_s24 + $0x20] sm:$0xff]  ;;  %v489_v16 = vadd.f32 %v488_v13, %v487_v12  ;;  %v6681_v17 = vld [vmem:[%s6656_s24 + $0x28] sm:$0xff]  ;;  %v492_v20 = vsel %vm486_vm1, %v6668_v11, 0.0  ;;  %v558_v63 = vmul.f32 %v6665_v10, %v6665_v10 }
  0x23   : > { %3143 = vst [vmem:[#allocation3 + $0x150] sm:$0xff] %v9627_v6  ;;  %3145 = vst [vmem:[#allocation3 + $0x160] sm:$0xff] %v9627_v6  ;;  %v6684_v18 = vld [vmem:[%s6656_s24 + $0x30] sm:$0xff]  ;;  %v6687_v19 = vld [vmem:[%s6656_s24 + $0x38] sm:$0xff]  ;;  %v494_v28 = vsel %vm486_vm1, %v6678_v15, 0.0  ;;  %v496_v33 = vsel %vm486_vm1, %v6681_v17, 0.0  ;;  %v559_v2 = vmul.f32 %v6668_v11, %v6668_v11  ;;  %v560_v5 = vmul.f32 %v6678_v15, %v6678_v15 }
  0x24   : > { %3147 = vst [vmem:[#allocation3 + $0x170] sm:$0xff] %v9627_v6  ;;  %3149 = vst [vmem:[#allocation3 + $0x180] sm:$0xff] %v9627_v6  ;;  %v6692_v21 = vld [vmem:[%s6656_s24 + $0x40] sm:$0xff]  ;;  %v6695_v22 = vld [vmem:[%s6656_s24 + $0x48] sm:$0xff]  ;;  %v491_v24 = vadd.f32 %v490_v14, %v489_v16  ;;  %v498_v34 = vsel %vm486_vm1, %v6684_v18, 0.0  ;;  %v500_v38 = vsel %vm486_vm1, %v6687_v19, 0.0 }
  0x25   : > { %3151 = vst [vmem:[#allocation3 + $0x190] sm:$0xff] %v9627_v6  ;;  %3153 = vst [vmem:[#allocation3 + $0x1a0] sm:$0xff] %v9627_v6  ;;  %v6698_v23 = vld [vmem:[%s6656_s24 + $0x50] sm:$0xff]  ;;  %v6701_v25 = vld [vmem:[%s6656_s24 + $0x58] sm:$0xff]  ;;  %v502_v39 = vsel %vm486_vm1, %v6692_v21, 0.0  ;;  %v504_v40 = vsel %vm486_vm1, %v6695_v22, 0.0 }
  0x26   : > { %3155 = vst [vmem:[#allocation3 + $0x1b0] sm:$0xff] %v9627_v6  ;;  %3157 = vst [vmem:[#allocation3 + $0x1c0] sm:$0xff] %v9627_v6  ;;  %v6704_v26 = vld [vmem:[%s6656_s24 + $0x60] sm:$0xff]  ;;  %v6707_v27 = vld [vmem:[%s6656_s24 + $0x68] sm:$0xff]  ;;  %v493_v32 = vadd.f32 %v492_v20, %v491_v24  ;;  %v506_v44 = vsel %vm486_vm1, %v6698_v23, 0.0  ;;  %v508_v45 = vsel %vm486_vm1, %v6701_v25, 0.0 }
  0x27   : > { %3159 = vst [vmem:[#allocation3 + $0x1d0] sm:$0xff] %v9627_v6  ;;  %3161 = vst [vmem:[#allocation3 + $0x1e0] sm:$0xff] %v9627_v6  ;;  %v6712_v29 = vld [vmem:[%s6656_s24 + $0x70] sm:$0xff]  ;;  %v6715_v30 = vld [vmem:[%s6656_s24 + $0x78] sm:$0xff]  ;;  %v510_v46 = vsel %vm486_vm1, %v6704_v26, 0.0  ;;  %v512_v47 = vsel %vm486_vm1, %v6707_v27, 0.0 }
  0x28   : > { %3163 = vst [vmem:[#allocation3 + $0x1f0] sm:$0xff] %v9627_v6  ;;  %3165 = vst [vmem:[#allocation3 + $0x200] sm:$0xff] %v9627_v6  ;;  %v6718_v31 = vld [vmem:[%s6656_s24 + $0x80] sm:$0xff]  ;;  %v6725_v35 = vld [vmem:[%s6656_s24 + $0x88] sm:$0xff]  ;;  %v495_v43 = vadd.f32 %v494_v28, %v493_v32  ;;  %v514_v48 = vsel %vm486_vm1, %v6712_v29, 0.0  ;;  %v6757_v49 = vsel %vm486_vm1, %v6715_v30, 0.0  ;;  %v561_v32 = vmul.f32 %v6681_v17, %v6681_v17 }
  0x29   : > { %3167 = vst [vmem:[#allocation3 + $0x210] sm:$0xff] %v9627_v6  ;;  %9637 = vst [vmem:[#allocation7_spill] sm:$0xff] %v6718_v31  ;;  %v6728_v36 = vld [vmem:[%s6656_s24 + $0x90] sm:$0xff]  ;;  %v6731_v37 = vld [vmem:[%s6656_s24 + $0x98] sm:$0xff]  ;;  %v6761_v50 = vsel %vm486_vm1, %v6718_v31, 0.0  ;;  %v6765_v52 = vsel %vm486_vm1, %v6725_v35, 0.0 }
  0x2a   : > { %v6740_v41 = vld [vmem:[%s6656_s24 + $0xa0] sm:$0xff]  ;;  %v6743_v42 = vld [vmem:[%s6656_s24 + $0xa8] sm:$0xff]  ;;  %v497_v51 = vadd.f32 %v496_v33, %v495_v43  ;;  %v6769_v53 = vsel %vm486_vm1, %v6728_v36, 0.0  ;;  %v6773_v54 = vsel %vm486_vm1, %v6731_v37, 0.0  ;;  %v6784_v59 = vld [vmem:[%s6656_s24 + $0xb0] sm:$0xff]  ;;  %v588_v7 = vsel %vm486_vm1, %v556_v61, 0.0 }
  0x2b   : > { %v6777_v55 = vsel %vm486_vm1, %v6740_v41, 0.0  ;;  %v6781_v56 = vsel %vm486_vm1, %v6743_v42, 0.0  ;;  %v6787_v60 = vld [vmem:[%s6656_s24 + $0xb8] sm:$0xff]  ;;  %v6796_v0 = vld [vmem:[%s6656_s24 + $0xc0] sm:$0xff]  ;;  %v589_v12 = vsel %vm486_vm1, %v557_v62, 0.0  ;;  %v591_v13 = vsel %vm486_vm1, %v558_v63, 0.0 }
  0x2c   : > { %v499_v57 = vadd.f32 %v498_v34, %v497_v51  ;;  %v530_v16 = vsel %vm486_vm1, %v6784_v59, 0.0  ;;  %v532_v20 = vsel %vm486_vm1, %v6787_v60, 0.0  ;;  %v590_v24 = vadd.f32 %v589_v12, %v588_v7 }
  0x2d   : > { %v534_v28 = vsel %vm486_vm1, %v6796_v0, 0.0  ;;  %v562_v33 = vmul.f32 %v6684_v18, %v6684_v18  ;;  %v593_v34 = vsel %vm486_vm1, %v559_v2, 0.0  ;;  %v565_v51 = vmul.f32 %v6695_v22, %v6695_v22 }
  0x2e   : > { %v501_v58 = vadd.f32 %v500_v38, %v499_v57  ;;  %v592_v43 = vadd.f32 %v591_v13, %v590_v24  ;;  %v566_v57 = vmul.f32 %v6698_v23, %v6698_v23  ;;  %v568_v62 = vmul.f32 %v6704_v26, %v6704_v26 }
  0x2f   : > { %v569_v63 = vmul.f32 %v6707_v27, %v6707_v27  ;;  %v570_v2 = vmul.f32 %v6712_v29, %v6712_v29  ;;  %v572_v7 = vmul.f32 %v6718_v31, %v6718_v31  ;;  %v597_v12 = vsel %vm486_vm1, %v561_v32, 0.0 }
  0x30   : > { %v503_v1 = vadd.f32 %v502_v39, %v501_v58  ;;  %v563_v39 = vmul.f32 %v6687_v19, %v6687_v19  ;;  %v567_v58 = vmul.f32 %v6701_v25, %v6701_v25 }
  0x31   : > { %v613_v32 = vsel %vm486_vm1, %v569_v63, 0.0 }
  0x32   : > { %v505_v4 = vadd.f32 %v504_v40, %v503_v1  ;;  %v564_v40 = vmul.f32 %v6692_v21, %v6692_v21  ;;  %v594_v1 = vadd.f32 %v593_v34, %v592_v43  ;;  %v601_v24 = vsel %vm486_vm1, %v563_v39, 0.0 }
  0x33   : > { %v607_v43 = vsel %vm486_vm1, %v566_v57, 0.0  ;;  %v609_v31 = vsel %vm486_vm1, %v567_v58, 0.0  ;;  %v619_v39 = vsel %vm486_vm1, %v572_v7, 0.0 }
  0x34   : > { %v507_v14 = vadd.f32 %v506_v44, %v505_v4  ;;  %v6821_v44 = vld [vmem:[%s6656_s24 + $0xc8] sm:$0xff]  ;;  %v571_v4 = vmul.f32 %v6715_v30, %v6715_v30  ;;  %v603_v34 = vsel %vm486_vm1, %v564_v40, 0.0 }
  0x36   : > { %v509_v38 = vadd.f32 %v508_v45, %v507_v14  ;;  %v595_v45 = vsel %vm486_vm1, %v560_v5, 0.0  ;;  %v599_v14 = vsel %vm486_vm1, %v562_v33, 0.0  ;;  %v617_v33 = vsel %vm486_vm1, %v571_v4, 0.0 }
  0x37   : > { %v596_v13 = vadd.f32 %v595_v45, %v594_v1  ;;  %v615_v45 = vsel %vm486_vm1, %v570_v2, 0.0 }
  0x38   : > { %v511_v61 = vadd.f32 %v510_v46, %v509_v38  ;;  %v536_v46 = vsel %vm486_vm1, %v6821_v44, 0.0  ;;  %v605_v38 = vsel %vm486_vm1, %v565_v51, 0.0 }
  0x39   : > { %v598_v6 = vadd.f32 %v597_v12, %v596_v13 }
  0x3a   : > { %v513_v5 = vadd.f32 %v512_v47, %v511_v61  ;;  %v611_v47 = vsel %vm486_vm1, %v568_v62, 0.0 }
  0x3b   : > { %v600_v51 = vadd.f32 %v599_v14, %v598_v6 }
  0x3c   : > { %v515_v3 = vadd.f32 %v514_v48, %v513_v5 }
  0x3d   : > { %v602_v48 = vadd.f32 %v601_v24, %v600_v51  ;;  %v6877_v24 = vld [vmem:[%s6656_s24 + $0xe0] sm:$0xff] }
  0x3e   : > { %v517_v40 = vadd.f32 %v6757_v49, %v515_v3  ;;  %v6862_v49 = vld [vmem:[%s6656_s24 + $0xd0] sm:$0xff] }
  0x3f   : > { %v604_v61 = vadd.f32 %v603_v34, %v602_v48 }
  0x40   : > { %v519_v57 = vadd.f32 %v6761_v50, %v517_v40  ;;  %v6893_v40 = vld [vmem:[%s6656_s24 + $0xf0] sm:$0xff] }
  0x41   : > { %v606_v63 = vadd.f32 %v605_v38, %v604_v61 }
  0x42   : > { %v521_v58 = vadd.f32 %v6765_v52, %v519_v57  ;;  %v573_v52 = vmul.f32 %v6725_v35, %v6725_v35 }
  0x43   : > { %v608_v2 = vadd.f32 %v607_v43, %v606_v63 }
  0x44   : > { %v523_v62 = vadd.f32 %v6769_v53, %v521_v58  ;;  %v6867_v53 = vld [vmem:[%s6656_s24 + $0xd8] sm:$0xff]  ;;  %v621_v14 = vsel %vm486_vm1, %v573_v52, 0.0  ;;  %v578_v58 = vmul.f32 %v6784_v59, %v6784_v59 }
  0x45   : > { %v610_v12 = vadd.f32 %v609_v31, %v608_v2  ;;  %v546_v2 = vsel %vm486_vm1, %v6893_v40, 0.0 }
  0x46   : > { %v525_v1 = vadd.f32 %v6773_v54, %v523_v62  ;;  %v6901_v62 = vld [vmem:[%s6656_s24 + $0xf8] sm:$0xff]  ;;  %v631_v52 = vsel %vm486_vm1, %v578_v58, 0.0 }
  0x47   : > { %v612_v6 = vadd.f32 %v611_v47, %v610_v12  ;;  %v6885_v47 = vld [vmem:[%s6656_s24 + $0xe8] sm:$0xff] }
  0x48   : > { %v527_v4 = vadd.f32 %v6777_v55, %v525_v1  ;;  %v574_v55 = vmul.f32 %v6728_v36, %v6728_v36  ;;  %v544_v48 = vsel %vm486_vm1, %v6885_v47, 0.0 }
  0x49   : > { %v614_v7 = vadd.f32 %v613_v32, %v612_v6 }
  0x4a   : > { %v529_v3 = vadd.f32 %v6781_v56, %v527_v4  ;;  %v538_v56 = vsel %vm486_vm1, %v6862_v49, 0.0  ;;  %v623_v43 = vsel %vm486_vm1, %v574_v55, 0.0  ;;  %v579_v4 = vmul.f32 %v6787_v60, %v6787_v60 }
  0x4b   : > { %v616_v54 = vadd.f32 %v615_v45, %v614_v7  ;;  %v580_v7 = vmul.f32 %v6796_v0, %v6796_v0  ;;  %v581_v55 = vmul.f32 %v6821_v44, %v6821_v44 }
  0x4c   : > { %v531_v50 = vadd.f32 %v530_v16, %v529_v3  ;;  %v575_v16 = vmul.f32 %v6731_v37, %v6731_v37 }
  0x4d   : > { %v618_v13 = vadd.f32 %v617_v33, %v616_v54  ;;  %v542_v33 = vsel %vm486_vm1, %v6877_v24, 0.0 }
  0x4e   : > { %v533_v5 = vadd.f32 %v532_v20, %v531_v50  ;;  %v540_v20 = vsel %vm486_vm1, %v6867_v53, 0.0  ;;  %v548_v50 = vsel %vm486_vm1, %v6901_v62, 0.0 }
  0x4f   : > { %v620_v38 = vadd.f32 %v619_v39, %v618_v13  ;;  %v625_v39 = vsel %vm486_vm1, %v575_v16, 0.0  ;;  %v582_v16 = vmul.f32 %v6862_v49, %v6862_v49 }
  0x50   : > { %v535_v31 = vadd.f32 %v534_v28, %v533_v5  ;;  %v576_v28 = vmul.f32 %v6740_v41, %v6740_v41 }
  0x51   : > { %v622_v45 = vadd.f32 %v621_v14, %v620_v38  ;;  %v635_v14 = vsel %vm486_vm1, %v580_v7, 0.0 }
  0x52   : > { %v537_v34 = vadd.f32 %v536_v46, %v535_v31  ;;  %v577_v46 = vmul.f32 %v6743_v42, %v6743_v42  ;;  %v627_v61 = vsel %vm486_vm1, %v576_v28, 0.0  ;;  %v633_v31 = vsel %vm486_vm1, %v579_v4, 0.0 }
  0x53   : > { %v624_v57 = vadd.f32 %v623_v43, %v622_v45  ;;  %v637_v28 = vsel %vm486_vm1, %v581_v55, 0.0  ;;  %v584_v45 = vmul.f32 %v6877_v24, %v6877_v24  ;;  %v587_v4 = vmul.f32 %v6901_v62, %v6901_v62 }
  0x54   : > { %v539_v32 = vadd.f32 %v538_v56, %v537_v34  ;;  %v629_v12 = vsel %vm486_vm1, %v577_v46, 0.0 }
  0x55   : > { %v626_v1 = vadd.f32 %v625_v39, %v624_v57 }
  0x56   : > { %v541_v51 = vadd.f32 %v540_v20, %v539_v32  ;;  %v583_v20 = vmul.f32 %v6867_v53, %v6867_v53 }
  0x57   : > { %v628_v6 = vadd.f32 %v627_v61, %v626_v1  ;;  %v586_v61 = vmul.f32 %v6893_v40, %v6893_v40 }
  0x58   : > { %v543_v63 = vadd.f32 %v542_v33, %v541_v51  ;;  %v639_v33 = vsel %vm486_vm1, %v582_v16, 0.0  ;;  %v585_v51 = vmul.f32 %v6885_v47, %v6885_v47  ;;  %v641_v57 = vsel %vm486_vm1, %v583_v20, 0.0 }
  0x59   : > { %v630_v54 = vadd.f32 %v629_v12, %v628_v6 }
  0x5a   : > { %v545_v3 = vadd.f32 %v544_v48, %v543_v63  ;;  %v643_v63 = vsel %vm486_vm1, %v584_v45, 0.0  ;;  %v645_v12 = vsel %vm486_vm1, %v585_v51, 0.0  ;;  %v811_v51 = vld [vmem:[%s9639_s1] sm:$0x1]  ;;  %s6474_s1 = smov [#allocation4]  }
  0x5b   : > { %v632_v56 = vadd.f32 %v631_v52, %v630_v54  ;;  %v649_v52 = vsel %vm486_vm1, %v587_v4, 0.0 }
  0x5c   : > { %v547_v5 = vadd.f32 %v546_v2, %v545_v3 }
  0x5d   : > { %v634_v38 = vadd.f32 %v633_v31, %v632_v56 }
  0x5e   : > { %v549_v13 = vadd.f32 %v548_v50, %v547_v5  ;;  %v647_v50 = vsel %vm486_vm1, %v586_v61, 0.0  ;;  %v813_v61 = vld [vmem:[%s9613_s2] sm:$0x1] }
  0x5f   : > { %v636_v32 = vadd.f32 %v635_v14, %v634_v38 }
  0x60   : > { %v550_v34 = vrot.slane %v549_v13, 4 }
  0x61   : > { %v638_v39 = vadd.f32 %v637_v28, %v636_v32 }
  0x62   : > { %v551_v43 = vadd.f32 %v550_v34, %v549_v13  ;;  %v9638_v34 = vmov 0.0  }
  0x63   : > { %v640_v58 = vadd.f32 %v639_v33, %v638_v39  ;;  %1121 = vst.msk [vmem:[#allocation2 + $0x20] sm:$0xff] %vm1116_vm2, %v9638_v34  ;;  %1117 = vst.msk [vmem:[#allocation2] sm:$0xff] %vm1116_vm2, %v9638_v34 }
  0x64   : > { %v552_v46 = vrot.slane %v551_v43, 2  ;;  %1118 = vst.msk [vmem:[#allocation2 + $0x8] sm:$0xff] %vm1116_vm2, %v9638_v34  ;;  %1119 = vst.msk [vmem:[#allocation2 + $0x10] sm:$0xff] %vm1116_vm2, %v9638_v34 }
  0x65   : > { %v642_v2 = vadd.f32 %v641_v57, %v640_v58  ;;  %1120 = vst.msk [vmem:[#allocation2 + $0x18] sm:$0xff] %vm1116_vm2, %v9638_v34  ;;  %1122 = vst.msk [vmem:[#allocation2 + $0x28] sm:$0xff] %vm1116_vm2, %v9638_v34 }
  0x66   : > { %v553_v48 = vadd.f32 %v552_v46, %v551_v43  ;;  %v817_v46 = vlaneseq  ;;  %1123 = vst.msk [vmem:[#allocation2 + $0x30] sm:$0xff] %vm1116_vm2, %v9638_v34  ;;  %1124 = vst.msk [vmem:[#allocation2 + $0x38] sm:$0xff] %vm1116_vm2, %v9638_v34 }
  0x67   : > { %v644_v6 = vadd.f32 %v643_v63, %v642_v2  ;;  %1125 = vst.msk [vmem:[#allocation2 + $0x40] sm:$0xff] %vm1116_vm2, %v9638_v34  ;;  %1126 = vst.msk [vmem:[#allocation2 + $0x48] sm:$0xff] %vm1116_vm2, %v9638_v34 }
  0x68   : > { %v554_v1 = vrot.slane %v553_v48, 1  ;;  %v818_v39 = vshrl.u32 %v817_v46, 7  ;;  %1127 = vst.msk [vmem:[#allocation2 + $0x50] sm:$0xff] %vm1116_vm2, %v9638_v34  ;;  %1128 = vst.msk [vmem:[#allocation2 + $0x58] sm:$0xff] %vm1116_vm2, %v9638_v34 }
  0x69   : > { %v646_v7 = vadd.f32 %v645_v12, %v644_v6 }
  0x6a   : > { %v555_v3 = vadd.f32 %v554_v1, %v553_v48  ;;  %v6943_v57 = vsub.s32 0, %v818_v39 }
  0x6b   : > { %v648_v5 = vadd.f32 %v647_v50, %v646_v7 }
  0x6c   : > { %5683 = vmatmul.mubr.msk.f32.vlgmr.msra.gmra.mrb[0].mxu0 %vm486_vm1, %v555_v3 }
  0x6d   : > { %v650_v54 = vadd.f32 %v649_v52, %v648_v5 }
  0x6f   : > { %v651_v55 = vrot.slane %v650_v54, 4 }
  0x71   : > { %v652_v31 = vadd.f32 %v651_v55, %v650_v54 }
  0x73   : > { %v653_v13 = vrot.slane %v652_v31, 2 }
  0x75   : > { %v654_v56 = vadd.f32 %v653_v13, %v652_v31 }
  0x77   : > { %v655_v16 = vrot.slane %v654_v56, 1 }
  0x79   : > { %v656_v14 = vadd.f32 %v655_v16, %v654_v56 }
  0x7b   : > { %5694 = vmatmul.mubr.msk.f32.vlgmr.msra.gmra.mrb[0].mxu1 %vm486_vm1, %v656_v14 }
  0x7c   : > { %5844 = vmatprep.mubr.msk.f32.mxu1 %vm6470_vm0, %v9638_v34 }
 0x13f   : > { %v730_v38 = vpop.f32.mrb[0].mxu0 }
 0x140   : > { %v5684_v20 = vpop.f32.mrb[1].mxu0  ;;  %v807_v28 = vmul.f32 %v730_v38, %v730_v38 }
 0x14e   : > { %v803_v43 = vpop.f32.mrb[0].mxu1 }
 0x14f   : > { %v808_v32 = vsub.f32 %v803_v43, %v807_v28  ;;  %v5695_v45 = vpop.f32.mrb[1].mxu1 }
 0x151   : > { %v809_v33 = vadd.f32 1e-06, %v808_v32 }
 0x153   : > { %6109 = vrsqrt.f32 %v809_v33 }
 0x15d   : > { %v6110_v48 = vpop.eup %6109 }
 0x15e   : > { %v812_v58 = vmul.f32 %v6110_v48, %v811_v51  ;;  %v9640_v48 = vld [vmem:[#allocation7_spill] sm:$0xff] }
 0x160   : > { %v814_v63 = vmul.f32 %v812_v58, %v730_v38  ;;  %v6949_v1 = vrot.slane %v812_v58, %v6943_v57 }
 0x162   : > { %v815_v2 = vsub.f32 %v813_v61, %v814_v63  ;;  %v824_v4 = vmul.f32 %v6949_v1, %v6665_v10  ;;  %v822_v12 = vmul.f32 %v6949_v1, %v6659_v8  ;;  %v825_v3 = vmul.f32 %v6949_v1, %v6668_v11 }
 0x163   : > { %v823_v50 = vmul.f32 %v6949_v1, %v6662_v9  ;;  %v827_v7 = vmul.f32 %v6949_v1, %v6681_v17  ;;  %v826_v52 = vmul.f32 %v6949_v1, %v6678_v15  ;;  %v829_v10 = vmul.f32 %v6949_v1, %v6687_v19 }
 0x164   : > { %v6958_v6 = vrot.slane %v815_v2, %v6943_v57  ;;  %v828_v8 = vmul.f32 %v6949_v1, %v6684_v18  ;;  %v831_v11 = vmul.f32 %v6949_v1, %v6695_v22  ;;  %v830_v5 = vmul.f32 %v6949_v1, %v6692_v21 }
 0x165   : > { %v833_v38 = vmul.f32 %v6949_v1, %v6701_v25  ;;  %v832_v20 = vmul.f32 %v6949_v1, %v6698_v23  ;;  %v835_v28 = vmul.f32 %v6949_v1, %v6707_v27  ;;  %v834_v43 = vmul.f32 %v6949_v1, %v6704_v26 }
 0x166   : > { %v6975_v9 = vadd.f32 %v6958_v6, %v824_v4  ;;  %v6978_v17 = vadd.f32 %v6958_v6, %v822_v12  ;;  %v6981_v15 = vadd.f32 %v6958_v6, %v825_v3  ;;  %v6984_v19 = vadd.f32 %v6958_v6, %v823_v50 }
 0x167   : > { %v6987_v18 = vadd.f32 %v6958_v6, %v827_v7  ;;  %v6990_v22 = vadd.f32 %v6958_v6, %v826_v52  ;;  %v6993_v21 = vadd.f32 %v6958_v6, %v829_v10  ;;  %v6996_v54 = vadd.f32 %v6958_v6, %v828_v8 }
 0x168   : > { %v5248_v55 = vmul.f32 -1.442695, %v6975_v9  ;;  %v5246_v31 = vmul.f32 -1.442695, %v6978_v17  ;;  %v5249_v13 = vmul.f32 -1.442695, %v6981_v15  ;;  %v7002_v56 = vadd.f32 %v6958_v6, %v831_v11 }
 0x169   : > { %v5247_v16 = vmul.f32 -1.442695, %v6984_v19  ;;  %v7006_v14 = vadd.f32 %v6958_v6, %v830_v5  ;;  %v7017_v32 = vadd.f32 %v6958_v6, %v833_v38  ;;  %v7020_v45 = vadd.f32 %v6958_v6, %v832_v20 }
 0x16a   : > { %6111 = vpow2.f32 %v5248_v55  ;;  %v7023_v25 = vadd.f32 %v6958_v6, %v835_v28  ;;  %v7026_v23 = vadd.f32 %v6958_v6, %v834_v43  ;;  %v837_v27 = vmul.f32 %v6949_v1, %v6715_v30  ;;  %v6054_v28 = vld [vmem:[%s9615_s4 + $0x38] sm:$0xff]  }
 0x16b   : > { %6113 = vpow2.f32 %v5246_v31  ;;  %v836_v26 = vmul.f32 %v6949_v1, %v6712_v29  ;;  %v5251_v46 = vmul.f32 -1.442695, %v6987_v18  ;;  %v839_v51 = vmul.f32 %v6949_v1, %v6725_v35 }
 0x16c   : > { %6115 = vpow2.f32 %v5249_v13  ;;  %v7033_v33 = vadd.f32 %v6958_v6, %v837_v27  ;;  %v838_v58 = vmul.f32 %v6949_v1, %v9640_v48  ;;  %v5250_v30 = vmul.f32 -1.442695, %v6990_v22 }
 0x16d   : > { %6117 = vpow2.f32 %v5247_v16  ;;  %v7037_v39 = vadd.f32 %v6958_v6, %v836_v26  ;;  %v841_v61 = vmul.f32 %v6949_v1, %v6731_v37  ;;  %v840_v29 = vmul.f32 %v6949_v1, %v6728_v36 }
 0x16e   : > { %v5253_v63 = vmul.f32 -1.442695, %v6993_v21  ;;  %v7050_v2 = vadd.f32 %v6958_v6, %v839_v51  ;;  %v7053_v4 = vadd.f32 %v6958_v6, %v838_v58  ;;  %v5252_v35 = vmul.f32 -1.442695, %v6996_v54  ;;  %v6055_v51 = vld [vmem:[%s9615_s4 + $0x40] sm:$0xff]  }
 0x16f   : > { %v7057_v12 = vadd.f32 %v6958_v6, %v841_v61  ;;  %v7060_v3 = vadd.f32 %v6958_v6, %v840_v29  ;;  %v843_v37 = vmul.f32 %v6949_v1, %v6743_v42  ;;  %6119 = vpow2.f32 %v5251_v46  ;;  %v6053_v42 = vld [vmem:[%s9615_s4 + $0x30] sm:$0xff]  }
 0x170   : > { %v842_v36 = vmul.f32 %v6949_v1, %v6740_v41  ;;  %6121 = vpow2.f32 %v5250_v30  ;;  %v845_v11 = vmul.f32 %v6949_v1, %v6787_v60  ;;  %v844_v55 = vmul.f32 %v6949_v1, %v6784_v59  ;;  %5696 = vmatprep.subr.bf16.mxu0 %v6053_v42 }
 0x171   : > { %v7067_v7 = vadd.f32 %v6958_v6, %v843_v37  ;;  %6123 = vpow2.f32 %v5253_v63  ;;  %v847_v20 = vmul.f32 %v6949_v1, %v6821_v44  ;;  %5697 = vmatpush3.bf16.msra.mxu0 %v6053_v42  ;;  %v846_v59 = vmul.f32 %v6949_v1, %v6796_v0 }
 0x172   : > { %v7070_v8 = vadd.f32 %v6958_v6, %v842_v36  ;;  %6125 = vpow2.f32 %v5252_v35  ;;  %v7080_v16 = vadd.f32 %v6958_v6, %v845_v11  ;;  %v7083_v60 = vadd.f32 %v6958_v6, %v844_v55  ;;  %5698 = vmatprep.subr.bf16.mxu0 %v6054_v28 }
 0x173   : > { %v7093_v43 = vadd.f32 %v6958_v6, %v847_v20  ;;  %v7096_v27 = vadd.f32 %v6958_v6, %v846_v59  ;;  %v849_v26 = vmul.f32 %v6949_v1, %v6867_v53  ;;  %v848_v44 = vmul.f32 %v6949_v1, %v6862_v49 }
 0x174   : > { %v6112_v50 = vpop.eup %6111  ;;  %v5255_v58 = vmul.f32 -1.442695, %v7002_v56  ;;  %v851_v53 = vmul.f32 %v6949_v1, %v6885_v47  ;;  %v5254_v49 = vmul.f32 -1.442695, %v7006_v14  ;;  %v850_v29 = vmul.f32 %v6949_v1, %v6877_v24 }
 0x175   : > { %v6114_v52 = vpop.eup %6113  ;;  %v990_v10 = vadd.f32 1.0, %v6112_v50  ;;  %5699 = vmatpush3.bf16.msra.mxu0 %v6054_v28  ;;  %v7103_v46 = vadd.f32 %v6958_v6, %v849_v26  ;;  %v7110_v30 = vadd.f32 %v6958_v6, %v848_v44  ;;  %v5257_v35 = vmul.f32 -1.442695, %v7017_v32 }
 0x176   : > { %v6116_v5 = vpop.eup %6115  ;;  %v988_v41 = vadd.f32 1.0, %v6114_v52  ;;  %5700 = vmatprep.subr.bf16.mxu0 %v6055_v51  ;;  %v7123_v37 = vadd.f32 %v6958_v6, %v851_v53  ;;  %v7126_v47 = vadd.f32 %v6958_v6, %v850_v29  ;;  %v6056_v52 = vld [vmem:[%s9615_s4 + $0x48] sm:$0xff]   ;;  %v5256_v55 = vmul.f32 -1.442695, %v7020_v45 }
 0x177   : > { %v6118_v31 = vpop.eup %6117  ;;  %6127 = vrcp.f32 %v990_v10  ;;  %v991_v13 = vadd.f32 1.0, %v6116_v5  ;;  %v853_v5 = vmul.f32 %v6949_v1, %v6901_v62  ;;  %v5259_v28 = vmul.f32 -1.442695, %v7023_v25 }
 0x178   : > { %6129 = vrcp.f32 %v988_v41  ;;  %v989_v38 = vadd.f32 1.0, %v6118_v31  ;;  %v852_v31 = vmul.f32 %v6949_v1, %v6893_v40 }
 0x179   : > { %6131 = vrcp.f32 %v991_v13  ;;  %v6120_v0 = vpop.eup %6119  ;;  %5701 = vmatpush3.bf16.msra.mxu0 %v6055_v51  ;;  %v7199_v13 = vadd.f32 %v6958_v6, %v853_v5  ;;  %v5258_v51 = vmul.f32 -1.442695, %v7026_v23  ;;  %v5262_v5 = vmul.f32 -1.442695, %v7053_v4 }
 0x17a   : > { %6133 = vrcp.f32 %v989_v38  ;;  %v6122_v48 = vpop.eup %6121  ;;  %v993_v50 = vadd.f32 1.0, %v6120_v0  ;;  %5702 = vmatprep.subr.bf16.mxu0 %v6056_v52  ;;  %v7206_v1 = vadd.f32 %v6958_v6, %v852_v31 }
 0x17b   : > { %v7114_v61 = vpop.eup %6123  ;;  %v992_v11 = vadd.f32 1.0, %v6122_v48  ;;  %6135 = vpow2.f32 %v5255_v58 }
 0x17c   : > { %v7119_v63 = vpop.eup %6125  ;;  %6137 = vpow2.f32 %v5254_v49  ;;  %v995_v62 = vadd.f32 1.0, %v7114_v61 }
 0x17d   : > { %6139 = vpow2.f32 %v5257_v35  ;;  %5703 = vmatpush3.bf16.msra.mxu0 %v6056_v52  ;;  %v994_v40 = vadd.f32 1.0, %v7119_v63  ;;  %v5261_v35 = vmul.f32 -1.442695, %v7033_v33 }
 0x17e   : > { %6141 = vrcp.f32 %v993_v50 }
 0x17f   : > { %6143 = vrcp.f32 %v992_v11 }
 0x180   : > { %6145 = vpow2.f32 %v5256_v55 }
 0x181   : > { %v6128_v36 = vpop.eup %6127  ;;  %6147 = vrcp.f32 %v995_v62 }
 0x182   : > { %v6130_v24 = vpop.eup %6129  ;;  %v7132_v10 = vmul.f32 %v6128_v36, %v6975_v9  ;;  %v6369_v9 = vld [vmem:[#allocation3] sm:$0xff]  ;;  %6149 = vrcp.f32 %v994_v40  ;;  %v5265_v40 = vmul.f32 -1.442695, %v7057_v12 }
 0x183   : > { %1129 = vst.msk [vmem:[#allocation2 + $0x60] sm:$0xff] %vm1116_vm2, %v6369_v9  ;;  %1130 = vst.msk [vmem:[#allocation2 + $0x68] sm:$0xff] %vm1116_vm2, %v6369_v9  ;;  %v6132_v34 = vpop.eup %6131  ;;  %v7183_v42 = vmul.f32 %v6130_v24, %v6978_v17  ;;  %v6057_v17 = vld [vmem:[%s9615_s4 + $0x50] sm:$0xff]   ;;  %6151 = vpow2.f32 %v5259_v28 }
 0x184   : > { %1131 = vst.msk [vmem:[#allocation2 + $0x70] sm:$0xff] %vm1116_vm2, %v6369_v9  ;;  %1132 = vst.msk [vmem:[#allocation2 + $0x78] sm:$0xff] %vm1116_vm2, %v6369_v9  ;;  %v6134_v41 = vpop.eup %6133  ;;  %1189 = vrot.lane.b32.xlu1 %v7132_v10, %s6471_s30  ;;  %v7202_v38 = vmul.f32 %v6132_v34, %v6981_v15  ;;  %5704 = vmatprep.subr.bf16.mxu0 %v6057_v17  ;;  %v6058_v15 = vld [vmem:[%s9615_s4 + $0x58] sm:$0xff]  }
 0x185   : > { %1133 = vst.msk [vmem:[#allocation2 + $0x80] sm:$0xff] %vm1116_vm2, %v6369_v9  ;;  %1134 = vst.msk [vmem:[#allocation2 + $0x88] sm:$0xff] %vm1116_vm2, %v6369_v9  ;;  %1185 = vrot.lane.b32.xlu0 %v7183_v42, %s6471_s30  ;;  %v7209_v20 = vmul.f32 %v6134_v41, %v6984_v19  ;;  %5705 = vmatpush3.bf16.msra.mxu0 %v6057_v17  ;;  %v6136_v6 = vpop.eup %6135 }
 0x186   : > { %1135 = vst.msk [vmem:[#allocation2 + $0x90] sm:$0xff] %vm1116_vm2, %v6369_v9  ;;  %1136 = vst.msk [vmem:[#allocation2 + $0x98] sm:$0xff] %vm1116_vm2, %v6369_v9  ;;  %5706 = vmatprep.subr.bf16.mxu0 %v6058_v15  ;;  %v6138_v19 = vpop.eup %6137  ;;  %v997_v0 = vadd.f32 1.0, %v6136_v6  ;;  %v5264_v6 = vmul.f32 -1.442695, %v7060_v3 }
 0x187   : > { %1137 = vst.msk [vmem:[#allocation2 + $0xa0] sm:$0xff] %vm1116_vm2, %v6369_v9  ;;  %1138 = vst.msk [vmem:[#allocation2 + $0xa8] sm:$0xff] %vm1116_vm2, %v6369_v9  ;;  %v6140_v59 = vpop.eup %6139  ;;  %v996_v53 = vadd.f32 1.0, %v6138_v19 }
 0x188   : > { %1139 = vst.msk [vmem:[#allocation2 + $0xb0] sm:$0xff] %vm1116_vm2, %v6369_v9  ;;  %1140 = vst.msk [vmem:[#allocation2 + $0xb8] sm:$0xff] %vm1116_vm2, %v6369_v9  ;;  %1191 = vrot.lane.b32.xlu1 %v7202_v38, %s6471_s30  ;;  %v6142_v26 = vpop.eup %6141  ;;  %v999_v29 = vadd.f32 1.0, %v6140_v59  ;;  %6153 = vrcp.f32 %v997_v0 }
 0x189   : > { %1141 = vst.msk [vmem:[#allocation2 + $0xc0] sm:$0xff] %vm1116_vm2, %v6369_v9  ;;  %1142 = vst.msk [vmem:[#allocation2 + $0xc8] sm:$0xff] %vm1116_vm2, %v6369_v9  ;;  %1187 = vrot.lane.b32.xlu0 %v7209_v20, %s6471_s30  ;;  %5707 = vmatpush3.bf16.msra.mxu0 %v6058_v15  ;;  %v6144_v44 = vpop.eup %6143  ;;  %v7229_v58 = vmul.f32 %v6142_v26, %v6987_v18  ;;  %6155 = vpow2.f32 %v5258_v51  ;;  %v5260_v18 = vmul.f32 -1.442695, %v7037_v39  ;;  %v5269_v51 = vmul.f32 -1.442695, %v7080_v16 }
 0x18a   : > { %1143 = vst.msk [vmem:[#allocation2 + $0xd0] sm:$0xff] %vm1116_vm2, %v6369_v9  ;;  %1144 = vst.msk [vmem:[#allocation2 + $0xd8] sm:$0xff] %vm1116_vm2, %v6369_v9  ;;  %v6146_v48 = vpop.eup %6145  ;;  %v7232_v49 = vmul.f32 %v6144_v44, %v6990_v22  ;;  %6157 = vrcp.f32 %v996_v53  ;;  %v5266_v44 = vmul.f32 -1.442695, %v7070_v8 }
 0x18b   : > { %1145 = vst.msk [vmem:[#allocation2 + $0xe0] sm:$0xff] %vm1116_vm2, %v6369_v9  ;;  %1146 = vst.msk [vmem:[#allocation2 + $0xe8] sm:$0xff] %vm1116_vm2, %v6369_v9  ;;  %v6148_v61 = vpop.eup %6147  ;;  %v998_v22 = vadd.f32 1.0, %v6146_v48  ;;  %6159 = vrcp.f32 %v999_v29 }
 0x18c   : > { %1147 = vst.msk [vmem:[#allocation2 + $0xf0] sm:$0xff] %vm1116_vm2, %v6369_v9  ;;  %1148 = vst.msk [vmem:[#allocation2 + $0xf8] sm:$0xff] %vm1116_vm2, %v6369_v9  ;;  %1350 = vrot.lane.b32.xlu1 %v7209_v20, %s9630_s23  ;;  %v6150_v63 = vpop.eup %6149  ;;  %v7241_v36 = vmul.f32 %v6148_v61, %v6993_v21  ;;  %6161 = vpow2.f32 %v5261_v35 }
 0x18d   : > { %1149 = vst.msk [vmem:[#allocation2 + $0x100] sm:$0xff] %vm1116_vm2, %v6369_v9  ;;  %1150 = vst.msk [vmem:[#allocation2 + $0x108] sm:$0xff] %vm1116_vm2, %v6369_v9  ;;  %1348 = vrot.lane.b32.xlu0 %v7183_v42, %s9630_s23  ;;  %v7244_v50 = vmul.f32 %v6150_v63, %v6996_v54  ;;  %6163 = vpow2.f32 %v5260_v18  ;;  %v6152_v52 = vpop.eup %6151 }
 0x18e   : > { %1151 = vst.msk [vmem:[#allocation2 + $0x110] sm:$0xff] %vm1116_vm2, %v6369_v9  ;;  %1152 = vst.msk [vmem:[#allocation2 + $0x118] sm:$0xff] %vm1116_vm2, %v6369_v9  ;;  %6165 = vrcp.f32 %v998_v22  ;;  %v1001_v24 = vadd.f32 1.0, %v6152_v52  ;;  %v5263_v9 = vmul.f32 -1.442695, %v7050_v2 }
 0x18f   : > { %v5268_v52 = vmul.f32 -1.442695, %v7083_v60 }
 0x190   : > { %1354 = vrot.lane.b32.xlu1 %v7202_v38, %s9630_s23  ;;  %6167 = vrcp.f32 %v1001_v24 }
 0x191   : > { %1352 = vrot.lane.b32.xlu0 %v7132_v10, %s9630_s23  ;;  %6169 = vpow2.f32 %v5263_v9 }
 0x192   : > { %v6154_v21 = vpop.eup %6153  ;;  %6171 = vpow2.f32 %v5262_v5  ;;  %v5270_v5 = vmul.f32 -1.442695, %v7096_v27 }
 0x193   : > { %v6156_v54 = vpop.eup %6155  ;;  %v7261_v55 = vmul.f32 %v6154_v21, %v7002_v56 }
 0x194   : > { %1195 = vrot.lane.b32.xlu1 %v7229_v58, %s6471_s30  ;;  %v6158_v11 = vpop.eup %6157  ;;  %v1000_v31 = vadd.f32 1.0, %v6156_v54 }
 0x195   : > { %1193 = vrot.lane.b32.xlu0 %v7232_v49, %s6471_s30  ;;  %v6160_v34 = vpop.eup %6159  ;;  %v7264_v62 = vmul.f32 %v6158_v11, %v7006_v14 }
 0x196   : > { %v6162_v41 = vpop.eup %6161  ;;  %v7273_v19 = vmul.f32 %v6160_v34, %v7017_v32  ;;  %6173 = vrcp.f32 %v1000_v31 }
 0x197   : > { %v6164_v17 = vpop.eup %6163  ;;  %v1003_v56 = vadd.f32 1.0, %v6162_v41  ;;  %6175 = vpow2.f32 %v5265_v40 }
 0x198   : > { %1199 = vrot.lane.b32.xlu1 %v7241_v36, %s6471_s30  ;;  %v6166_v15 = vpop.eup %6165  ;;  %v1002_v14 = vadd.f32 1.0, %v6164_v17  ;;  %6177 = vpow2.f32 %v5264_v6 }
 0x199   : > { %1197 = vrot.lane.b32.xlu0 %v7244_v50, %s6471_s30  ;;  %v7276_v59 = vmul.f32 %v6166_v15, %v7020_v45  ;;  %6179 = vrcp.f32 %v1003_v56  ;;  %v5267_v45 = vmul.f32 -1.442695, %v7067_v7 }
 0x19a   : > { %6181 = vrcp.f32 %v1002_v14  ;;  %v6168_v32 = vpop.eup %6167 }
 0x19b   : > { %v6170_v28 = vpop.eup %6169  ;;  %v7294_v29 = vmul.f32 %v6168_v32, %v7023_v25  ;;  %6183 = vpow2.f32 %v5267_v45  ;;  %v5273_v32 = vmul.f32 -1.442695, %v7103_v46 }
 0x19c   : > { %1358 = vrot.lane.b32.xlu1 %v7229_v58, %s9630_s23  ;;  %v6172_v26 = vpop.eup %6171  ;;  %v1005_v53 = vadd.f32 1.0, %v6170_v28  ;;  %6185 = vpow2.f32 %v5266_v44  ;;  %v7336_v28 = vld [vmem:[%s9615_s4] sm:$0xff]  }
 0x19d   : > { %1356 = vrot.lane.b32.xlu0 %v7232_v49, %s9630_s23  ;;  %v1004_v63 = vadd.f32 1.0, %v6172_v26  ;;  %6187 = vpow2.f32 %v5269_v51  ;;  %5740 = vmatprep.subr.bf16.mxu0 %v7336_v28 }
 0x19e   : > { %6189 = vrcp.f32 %v1005_v53 }
 0x19f   : > { %6191 = vrcp.f32 %v1004_v63 }
 0x1a0   : > { %1362 = vrot.lane.b32.xlu1 %v7241_v36, %s9630_s23  ;;  %v6174_v0 = vpop.eup %6173  ;;  %6193 = vpow2.f32 %v5268_v52 }
 0x1a1   : > { %1360 = vrot.lane.b32.xlu0 %v7244_v50, %s9630_s23  ;;  %v6176_v48 = vpop.eup %6175  ;;  %v7297_v18 = vmul.f32 %v6174_v0, %v7026_v23 }
 0x1a2   : > { %v6178_v61 = vpop.eup %6177  ;;  %v1007_v25 = vadd.f32 1.0, %v6176_v48  ;;  %v5275_v48 = vmul.f32 -1.442695, %v7123_v37 }
 0x1a3   : > { %v6180_v35 = vpop.eup %6179  ;;  %v1006_v54 = vadd.f32 1.0, %v6178_v61  ;;  %v5274_v61 = vmul.f32 -1.442695, %v7126_v47 }
 0x1a4   : > { %1203 = vrot.lane.b32.xlu1 %v7261_v55, %s6471_s30  ;;  %v6182_v22 = vpop.eup %6181  ;;  %v7305_v21 = vmul.f32 %v6180_v35, %v7033_v33  ;;  %6195 = vrcp.f32 %v1007_v25 }
 0x1a5   : > { %1201 = vrot.lane.b32.xlu0 %v7264_v62, %s6471_s30  ;;  %v7308_v23 = vmul.f32 %v6182_v22, %v7037_v39  ;;  %6197 = vrcp.f32 %v1006_v54  ;;  %v6184_v24 = vpop.eup %6183  ;;  %v5271_v39 = vmul.f32 -1.442695, %v7093_v43  ;;  %v5277_v54 = vmul.f32 -1.442695, %v7199_v13 }
 0x1a6   : > { %v6186_v33 = vpop.eup %6185  ;;  %v1009_v41 = vadd.f32 1.0, %v6184_v24 }
 0x1a7   : > { %v6188_v11 = vpop.eup %6187  ;;  %v1008_v40 = vadd.f32 1.0, %v6186_v33  ;;  %6199 = vpow2.f32 %v5271_v39  ;;  %v5276_v33 = vmul.f32 -1.442695, %v7206_v1 }
 0x1a8   : > { %1207 = vrot.lane.b32.xlu1 %v7273_v19, %s6471_s30  ;;  %v6190_v9 = vpop.eup %6189  ;;  %v1011_v56 = vadd.f32 1.0, %v6188_v11  ;;  %6201 = vpow2.f32 %v5270_v5 }
 0x1a9   : > { %1205 = vrot.lane.b32.xlu0 %v7276_v59, %s6471_s30  ;;  %v6192_v34 = vpop.eup %6191  ;;  %v7325_v17 = vmul.f32 %v6190_v9, %v7050_v2  ;;  %6203 = vrcp.f32 %v1009_v41  ;;  %v5272_v2 = vmul.f32 -1.442695, %v7110_v30 }
 0x1aa   : > { %v6194_v31 = vpop.eup %6193  ;;  %v7328_v6 = vmul.f32 %v6192_v34, %v7053_v4  ;;  %6205 = vrcp.f32 %v1008_v40 }
 0x1ab   : > { %v1010_v45 = vadd.f32 1.0, %v6194_v31  ;;  %6207 = vrcp.f32 %v1011_v56 }
 0x1ac   : > { %1366 = vrot.lane.b32.xlu1 %v7261_v55, %s9630_s23  ;;  %6209 = vpow2.f32 %v5273_v32 }
 0x1ad   : > { %1364 = vrot.lane.b32.xlu0 %v7264_v62, %s9630_s23  ;;  %6211 = vpow2.f32 %v5272_v2 }
 0x1ae   : > { %v6196_v15 = vpop.eup %6195  ;;  %6213 = vrcp.f32 %v1010_v45 }
 0x1af   : > { %v6198_v14 = vpop.eup %6197  ;;  %v7342_v4 = vmul.f32 %v6196_v15, %v7057_v12 }
 0x1b0   : > { %1370 = vrot.lane.b32.xlu1 %v7273_v19, %s9630_s23  ;;  %v7346_v26 = vmul.f32 %v6198_v14, %v7060_v3 }
 0x1b1   : > { %1368 = vrot.lane.b32.xlu0 %v7276_v59, %s9630_s23  ;;  %v6200_v44 = vpop.eup %6199 }
 0x1b2   : > { %v6202_v12 = vpop.eup %6201  ;;  %v1013_v0 = vadd.f32 1.0, %v6200_v44 }
 0x1b3   : > { %v6204_v3 = vpop.eup %6203  ;;  %v1012_v22 = vadd.f32 1.0, %v6202_v12 }
 0x1b4   : > { %1211 = vrot.lane.b32.xlu1 %v7294_v29, %s6471_s30  ;;  %v6206_v51 = vpop.eup %6205  ;;  %v7363_v35 = vmul.f32 %v6204_v3, %v7067_v7  ;;  %6215 = vrcp.f32 %v1013_v0 }
 0x1b5   : > { %1209 = vrot.lane.b32.xlu0 %v7297_v18, %s6471_s30  ;;  %v6208_v53 = vpop.eup %6207  ;;  %v7366_v25 = vmul.f32 %v6206_v51, %v7070_v8  ;;  %6217 = vpow2.f32 %v5275_v48 }
 0x1b6   : > { %v6210_v63 = vpop.eup %6209  ;;  %6219 = vpow2.f32 %v5274_v61  ;;  %v7375_v11 = vmul.f32 %v6208_v53, %v7080_v16 }
 0x1b7   : > { %v6212_v52 = vpop.eup %6211  ;;  %v1015_v7 = vadd.f32 1.0, %v6210_v63  ;;  %6221 = vrcp.f32 %v1012_v22 }
 0x1b8   : > { %1215 = vrot.lane.b32.xlu1 %v7305_v21, %s6471_s30  ;;  %v6214_v24 = vpop.eup %6213  ;;  %v1014_v8 = vadd.f32 1.0, %v6212_v52  ;;  %6223 = vpow2.f32 %v5277_v54 }
 0x1b9   : > { %1213 = vrot.lane.b32.xlu0 %v7308_v23, %s6471_s30  ;;  %v7378_v39 = vmul.f32 %v6214_v24, %v7083_v60  ;;  %6225 = vpow2.f32 %v5276_v33 }
 0x1ba   : > { %6227 = vrcp.f32 %v1015_v7 }
 0x1bb   : > { %6229 = vrcp.f32 %v1014_v8 }
 0x1bc   : > { %1374 = vrot.lane.b32.xlu1 %v7294_v29, %s9630_s23 }
 0x1bd   : > { %1372 = vrot.lane.b32.xlu0 %v7297_v18, %s9630_s23 }
 0x1be   : > { %v6216_v16 = vpop.eup %6215 }
 0x1bf   : > { %v6218_v9 = vpop.eup %6217  ;;  %v7393_v40 = vmul.f32 %v6216_v16, %v7093_v43 }
 0x1c0   : > { %1378 = vrot.lane.b32.xlu1 %v7305_v21, %s9630_s23  ;;  %v6220_v60 = vpop.eup %6219  ;;  %v1017_v41 = vadd.f32 1.0, %v6218_v9 }
 0x1c1   : > { %1376 = vrot.lane.b32.xlu0 %v7308_v23, %s9630_s23  ;;  %v6222_v34 = vpop.eup %6221  ;;  %v1016_v15 = vadd.f32 1.0, %v6220_v60  ;;  %v6062_v60 = vld [vmem:[%s9615_s4 + $0x18] sm:$0xff]  }
 0x1c2   : > { %v6224_v5 = vpop.eup %6223  ;;  %v7396_v14 = vmul.f32 %v6222_v34, %v7096_v27  ;;  %6231 = vrcp.f32 %v1017_v41 }
 0x1c3   : > { %v6226_v31 = vpop.eup %6225  ;;  %v1019_v2 = vadd.f32 1.0, %v6224_v5  ;;  %6233 = vrcp.f32 %v1016_v15  ;;  %v6063_v15 = vld [vmem:[%s9615_s4 + $0x20] sm:$0xff]  }
 0x1c4   : > { %1219 = vrot.lane.b32.xlu1 %v7325_v17, %s6471_s30  ;;  %v6228_v56 = vpop.eup %6227  ;;  %v1018_v43 = vadd.f32 1.0, %v6226_v31 }
 0x1c5   : > { %1217 = vrot.lane.b32.xlu0 %v7328_v6, %s6471_s30  ;;  %v6230_v32 = vpop.eup %6229  ;;  %v7403_v45 = vmul.f32 %v6228_v56, %v7103_v46  ;;  %6235 = vrcp.f32 %v1019_v2 }
 0x1c6   : > { %v7406_v44 = vmul.f32 %v6230_v32, %v7110_v30  ;;  %6237 = vrcp.f32 %v1018_v43 }
 0x1c8   : > { %1223 = vrot.lane.b32.xlu1 %v7342_v4, %s6471_s30 }
 0x1c9   : > { %1221 = vrot.lane.b32.xlu0 %v7346_v26, %s6471_s30 }
 0x1cc   : > { %1382 = vrot.lane.b32.xlu1 %v7325_v17, %s9630_s23  ;;  %v6232_v27 = vpop.eup %6231 }
 0x1cd   : > { %1380 = vrot.lane.b32.xlu0 %v7328_v6, %s9630_s23  ;;  %v6234_v46 = vpop.eup %6233  ;;  %v7421_v30 = vmul.f32 %v6232_v27, %v7123_v37 }
 0x1ce   : > { %v7424_v3 = vmul.f32 %v6234_v46, %v7126_v47 }
 0x1cf   : > { %v6236_v12 = vpop.eup %6235 }
 0x1d0   : > { %1386 = vrot.lane.b32.xlu1 %v7342_v4, %s9630_s23  ;;  %v6238_v0 = vpop.eup %6237  ;;  %v7431_v48 = vmul.f32 %v6236_v12, %v7199_v13 }
 0x1d1   : > { %1384 = vrot.lane.b32.xlu0 %v7346_v26, %s9630_s23  ;;  %v7435_v53 = vmul.f32 %v6238_v0, %v7206_v1 }
 0x1d4   : > { %1227 = vrot.lane.b32.xlu1 %v7363_v35, %s6471_s30 }
 0x1d5   : > { %1225 = vrot.lane.b32.xlu0 %v7366_v25, %s6471_s30 }
 0x1d8   : > { %1231 = vrot.lane.b32.xlu1 %v7375_v11, %s6471_s30 }
 0x1d9   : > { %1229 = vrot.lane.b32.xlu0 %v7378_v39, %s6471_s30 }
 0x1dc   : > { %1390 = vrot.lane.b32.xlu1 %v7363_v35, %s9630_s23 }
 0x1dd   : > { %1388 = vrot.lane.b32.xlu0 %v7366_v25, %s9630_s23 }
 0x1e0   : > { %1394 = vrot.lane.b32.xlu1 %v7375_v11, %s9630_s23 }
 0x1e1   : > { %1392 = vrot.lane.b32.xlu0 %v7378_v39, %s9630_s23 }
 0x1e4   : > { %1235 = vrot.lane.b32.xlu1 %v7393_v40, %s6471_s30 }
 0x1e5   : > { %1233 = vrot.lane.b32.xlu0 %v7396_v14, %s6471_s30 }
 0x1e8   : > { %1239 = vrot.lane.b32.xlu1 %v7403_v45, %s6471_s30 }
 0x1e9   : > { %1237 = vrot.lane.b32.xlu0 %v7406_v44, %s6471_s30 }
 0x1ec   : > { %1398 = vrot.lane.b32.xlu1 %v7393_v40, %s9630_s23 }
 0x1ed   : > { %1396 = vrot.lane.b32.xlu0 %v7396_v14, %s9630_s23 }
 0x1f0   : > { %1402 = vrot.lane.b32.xlu1 %v7403_v45, %s9630_s23 }
 0x1f1   : > { %1400 = vrot.lane.b32.xlu0 %v7406_v44, %s9630_s23 }
 0x1f4   : > { %1243 = vrot.lane.b32.xlu1 %v7421_v30, %s6471_s30 }
 0x1f5   : > { %1241 = vrot.lane.b32.xlu0 %v7424_v3, %s6471_s30 }
 0x1f6   : > { %v1190_v51 = vpop.permute.xlu1 %1189 }
 0x1f7   : > { %1285 = vst.msk [vmem:[#allocation2 + $0x20] sm:$0xff] %vm1282_vm3, %v1190_v51  ;;  %v1186_v37 = vpop.permute.xlu0 %1185 }
 0x1f8   : > { %1283 = vst.msk [vmem:[#allocation2 + $0x10] sm:$0xff] %vm1282_vm3, %v1186_v37  ;;  %1247 = vrot.lane.b32.xlu1 %v7431_v48, %s6471_s30 }
 0x1f9   : > { %1245 = vrot.lane.b32.xlu0 %v7435_v53, %s6471_s30  ;;  %s9642_s30 = smov 64  }
 0x1fa   : > { %v1192_v47 = vpop.permute.xlu1 %1191 }
 0x1fb   : > { %1286 = vst.msk [vmem:[#allocation2 + $0x28] sm:$0xff] %vm1282_vm3, %v1192_v47  ;;  %v1188_v13 = vpop.permute.xlu0 %1187 }
 0x1fc   : > { %1318 = vst.msk [vmem:[#allocation2 + $0x21] sm:$0xff] %vm486_vm1, %v7132_v10  ;;  %1406 = vrot.lane.b32.xlu1 %v7421_v30, %s9630_s23 }
 0x1fd   : > { %1319 = vst.msk [vmem:[#allocation2 + $0x29] sm:$0x7f] %vm1316_vm4, %v7202_v38  ;;  %1404 = vrot.lane.b32.xlu0 %v7424_v3, %s9630_s23 }
 0x1fe   : > { %1284 = vst.msk [vmem:[#allocation2 + $0x18] sm:$0xff] %vm1282_vm3, %v1188_v13  ;;  %v1351_v10 = vpop.permute.xlu1 %1350 }
 0x1ff   : > { %1315 = vst.msk [vmem:[#allocation2 + $0x11] sm:$0xff] %vm486_vm1, %v7183_v42  ;;  %v1349_v38 = vpop.permute.xlu0 %1348 }
 0x200   : > { %1317 = vst.msk [vmem:[#allocation2 + $0x19] sm:$0x7f] %vm1316_vm4, %v7209_v20  ;;  %1410 = vrot.lane.b32.xlu1 %v7431_v48, %s9630_s23 }
 0x201   : > { %1447 = vst.msk [vmem:[#allocation2 + $0x17] sm:$0xff] %vm1446_vm5, %v1351_v10  ;;  %1408 = vrot.lane.b32.xlu0 %v7435_v53, %s9630_s23  ;;  %s5561_s23 = sshll.u32 %s6568_s29, 12 }
 0x202   : > { %1445 = vst.msk [vmem:[#allocation2 + $0xf] sm:$0xfe] %vm1444_vm6, %v1349_v38  ;;  %v1355_v42 = vpop.permute.xlu1 %1354  ;;  %s9558_s20 = scalar_lea.hbm %s9624_s13, %s5561_s23 }
 0x203   : > { %1449 = vst.msk [vmem:[#allocation2 + $0x27] sm:$0xff] %vm1446_vm5, %v1355_v42  ;;  %v1353_v1 = vpop.permute.xlu0 %1352 }
 0x204   : > { %1448 = vst.msk [vmem:[#allocation2 + $0x1f] sm:$0xfe] %vm1444_vm6, %v1353_v1 }
 0x206   : > { %v1196_v20 = vpop.permute.xlu1 %1195 }
 0x207   : > { %1288 = vst.msk [vmem:[#allocation2 + $0x38] sm:$0xff] %vm1282_vm3, %v1196_v20  ;;  %v1194_v63 = vpop.permute.xlu0 %1193 }
 0x208   : > { %v1539_v61 = vld [vmem:[#allocation2 + $0x18] sm:$0xff]  ;;  %1321 = vst.msk [vmem:[#allocation2 + $0x39] sm:$0x7f] %vm1316_vm4, %v7229_v58 }
 0x209   : > { %v1538_v22 = vld [vmem:[#allocation2 + $0x10] sm:$0xff]  ;;  %1287 = vst.msk [vmem:[#allocation2 + $0x30] sm:$0xff] %vm1282_vm3, %v1194_v63 }
 0x20a   : > { %v7468_v52 = vpack.c.bf16 %v1539_v61, %v1538_v22  ;;  %1320 = vst.msk [vmem:[#allocation2 + $0x31] sm:$0xff] %vm486_vm1, %v7232_v49  ;;  %v1200_v54 = vpop.permute.xlu1 %1199  ;;  %v1541_v24 = vld [vmem:[#allocation2 + $0x28] sm:$0xff] }
 0x20b   : > { %1290 = vst.msk [vmem:[#allocation2 + $0x48] sm:$0xff] %vm1282_vm3, %v1200_v54  ;;  %v1198_v33 = vpop.permute.xlu0 %1197  ;;  %v1540_v7 = vld [vmem:[#allocation2 + $0x20] sm:$0xff]  ;;  %v6060_v49 = vld [vmem:[%s9615_s4 + $0x8] sm:$0xff]  }
 0x20c   : > { %5708 = vmatprep.mubr.msk.bf16.mxu0 %vm1116_vm2, %v7468_v52  ;;  %1323 = vst.msk [vmem:[#allocation2 + $0x49] sm:$0x7f] %vm1316_vm4, %v7241_v36  ;;  %v7478_v58 = vpack.c.bf16 %v1541_v24, %v1540_v7  ;;  %v6061_v36 = vld [vmem:[%s9615_s4 + $0x10] sm:$0xff]  }
 0x20d   : > { %1289 = vst.msk [vmem:[#allocation2 + $0x40] sm:$0xff] %vm1282_vm3, %v1198_v33 }
 0x20e   : > { %1322 = vst.msk [vmem:[#allocation2 + $0x41] sm:$0xff] %vm486_vm1, %v7244_v50  ;;  %5709 = vmatmul.mubr.msk.bf16.vlgmr.msra.gmra.mrb[4].mxu0 %vm1116_vm2, %v7478_v58  ;;  %v1359_v8 = vpop.permute.xlu1 %1358 }
 0x20f   : > { %1451 = vst.msk [vmem:[#allocation2 + $0x37] sm:$0xff] %vm1446_vm5, %v1359_v8  ;;  %v1357_v16 = vpop.permute.xlu0 %1356  ;;  %5741 = vmatpush3.bf16.msra.mxu0 %v7336_v28 }
 0x210   : > { %1450 = vst.msk [vmem:[#allocation2 + $0x2f] sm:$0xfe] %vm1444_vm6, %v1357_v16  ;;  %5742 = vmatprep.subr.bf16.mxu0 %v6060_v49 }
 0x212   : > { %v1363_v9 = vpop.permute.xlu1 %1362 }
 0x213   : > { %1453 = vst.msk [vmem:[#allocation2 + $0x47] sm:$0xff] %vm1446_vm5, %v1363_v9  ;;  %v1361_v50 = vpop.permute.xlu0 %1360  ;;  %5743 = vmatpush3.bf16.msra.mxu0 %v6060_v49 }
 0x214   : > { %1452 = vst.msk [vmem:[#allocation2 + $0x3f] sm:$0xfe] %vm1444_vm6, %v1361_v50  ;;  %5744 = vmatprep.subr.bf16.mxu0 %v6061_v36 }
 0x216   : > { %v1204_v28 = vpop.permute.xlu1 %1203  ;;  %v1543_v34 = vld [vmem:[#allocation2 + $0x38] sm:$0xff] }
 0x217   : > { %1292 = vst.msk [vmem:[#allocation2 + $0x58] sm:$0xff] %vm1282_vm3, %v1204_v28  ;;  %v1202_v5 = vpop.permute.xlu0 %1201  ;;  %v1542_v41 = vld [vmem:[#allocation2 + $0x30] sm:$0xff]  ;;  %5745 = vmatpush3.bf16.msra.mxu0 %v6061_v36 }
 0x218   : > { %1325 = vst.msk [vmem:[#allocation2 + $0x59] sm:$0x7f] %vm1316_vm4, %v7261_v55  ;;  %v7502_v31 = vpack.c.bf16 %v1543_v34, %v1542_v41  ;;  %5746 = vmatprep.subr.bf16.mxu0 %v6062_v60 }
 0x219   : > { %1291 = vst.msk [vmem:[#allocation2 + $0x50] sm:$0xff] %vm1282_vm3, %v1202_v5 }
 0x21a   : > { %1324 = vst.msk [vmem:[#allocation2 + $0x51] sm:$0xff] %vm486_vm1, %v7264_v62  ;;  %5712 = vmatprep.mubr.msk.bf16.mxu0 %vm1116_vm2, %v7502_v31  ;;  %v1208_v56 = vpop.permute.xlu1 %1207  ;;  %v1545_v32 = vld [vmem:[#allocation2 + $0x48] sm:$0xff] }
 0x21b   : > { %1294 = vst.msk [vmem:[#allocation2 + $0x68] sm:$0xff] %vm1282_vm3, %v1208_v56  ;;  %v1206_v55 = vpop.permute.xlu0 %1205  ;;  %v1544_v2 = vld [vmem:[#allocation2 + $0x40] sm:$0xff]  ;;  %5747 = vmatpush3.bf16.msra.mxu0 %v6062_v60  ;;  %v6064_v62 = vld [vmem:[%s9615_s4 + $0x28] sm:$0xff]  }
 0x21c   : > { %1327 = vst.msk [vmem:[#allocation2 + $0x69] sm:$0x7f] %vm1316_vm4, %v7273_v19  ;;  %v7515_v43 = vpack.c.bf16 %v1545_v32, %v1544_v2  ;;  %5748 = vmatprep.subr.bf16.mxu0 %v6063_v15  ;;  %v7529_v19 = vld [vmem:[%s9615_s4 + $0x60] sm:$0xff]  }
 0x21d   : > { %1293 = vst.msk [vmem:[#allocation2 + $0x60] sm:$0xff] %vm1282_vm3, %v1206_v55 }
 0x21e   : > { %1326 = vst.msk [vmem:[#allocation2 + $0x61] sm:$0xff] %vm486_vm1, %v7276_v59  ;;  %5713 = vmatmul.mubr.msk.bf16.gmra.mrb[8].mxu0 %vm1116_vm2, %v7515_v43  ;;  %v1367_v27 = vpop.permute.xlu1 %1366 }
 0x21f   : > { %1455 = vst.msk [vmem:[#allocation2 + $0x57] sm:$0xff] %vm1446_vm5, %v1367_v27  ;;  %v1365_v46 = vpop.permute.xlu0 %1364  ;;  %5749 = vmatpush3.bf16.msra.mxu0 %v6063_v15 }
 0x220   : > { %1454 = vst.msk [vmem:[#allocation2 + $0x4f] sm:$0xfe] %vm1444_vm6, %v1365_v46  ;;  %5750 = vmatprep.subr.bf16.mxu0 %v6064_v62 }
 0x222   : > { %v1371_v12 = vpop.permute.xlu1 %1370 }
 0x223   : > { %1457 = vst.msk [vmem:[#allocation2 + $0x67] sm:$0xff] %vm1446_vm5, %v1371_v12  ;;  %v1369_v59 = vpop.permute.xlu0 %1368  ;;  %5751 = vmatpush3.bf16.msra.mxu0 %v6064_v62 }
 0x224   : > { %1456 = vst.msk [vmem:[#allocation2 + $0x5f] sm:$0xfe] %vm1444_vm6, %v1369_v59  ;;  %5784 = vmatprep.subr.bf16.mxu0 %v7529_v19 }
 0x226   : > { %v1212_v0 = vpop.permute.xlu1 %1211  ;;  %v1547_v51 = vld [vmem:[#allocation2 + $0x58] sm:$0xff] }
 0x227   : > { %1296 = vst.msk [vmem:[#allocation2 + $0x78] sm:$0xff] %vm1282_vm3, %v1212_v0  ;;  %v1210_v37 = vpop.permute.xlu0 %1209  ;;  %v1546_v47 = vld [vmem:[#allocation2 + $0x50] sm:$0xff] }
 0x228   : > { %1329 = vst.msk [vmem:[#allocation2 + $0x79] sm:$0x7f] %vm1316_vm4, %v7294_v29  ;;  %v7538_v13 = vpack.c.bf16 %v1547_v51, %v1546_v47 }
 0x229   : > { %1295 = vst.msk [vmem:[#allocation2 + $0x70] sm:$0xff] %vm1282_vm3, %v1210_v37 }
 0x22a   : > { %1328 = vst.msk [vmem:[#allocation2 + $0x71] sm:$0xff] %vm486_vm1, %v7297_v18  ;;  %5716 = vmatprep.mubr.msk.bf16.mxu0 %vm1116_vm2, %v7538_v13  ;;  %v1216_v10 = vpop.permute.xlu1 %1215  ;;  %v1549_v38 = vld [vmem:[#allocation2 + $0x68] sm:$0xff] }
 0x22b   : > { %1298 = vst.msk [vmem:[#allocation2 + $0x88] sm:$0xff] %vm1282_vm3, %v1216_v10  ;;  %v1214_v42 = vpop.permute.xlu0 %1213  ;;  %v1548_v1 = vld [vmem:[#allocation2 + $0x60] sm:$0xff] }
 0x22c   : > { %1331 = vst.msk [vmem:[#allocation2 + $0x89] sm:$0x7f] %vm1316_vm4, %v7305_v21  ;;  %v7548_v29 = vpack.c.bf16 %v1549_v38, %v1548_v1 }
 0x22d   : > { %1297 = vst.msk [vmem:[#allocation2 + $0x80] sm:$0xff] %vm1282_vm3, %v1214_v42 }
 0x22e   : > { %1330 = vst.msk [vmem:[#allocation2 + $0x81] sm:$0xff] %vm486_vm1, %v7308_v23  ;;  %5717 = vmatmul.mubr.msk.bf16.gmra.mrb[12].mxu0 %vm1116_vm2, %v7548_v29  ;;  %v1375_v18 = vpop.permute.xlu1 %1374 }
 0x22f   : > { %1459 = vst.msk [vmem:[#allocation2 + $0x77] sm:$0xff] %vm1446_vm5, %v1375_v18  ;;  %v1373_v20 = vpop.permute.xlu0 %1372 }
 0x230   : > { %1458 = vst.msk [vmem:[#allocation2 + $0x6f] sm:$0xfe] %vm1444_vm6, %v1373_v20 }
 0x232   : > { %v1379_v61 = vpop.permute.xlu1 %1378 }
 0x233   : > { %1461 = vst.msk [vmem:[#allocation2 + $0x87] sm:$0xff] %vm1446_vm5, %v1379_v61  ;;  %v1377_v21 = vpop.permute.xlu0 %1376 }
 0x234   : > { %1460 = vst.msk [vmem:[#allocation2 + $0x7f] sm:$0xfe] %vm1444_vm6, %v1377_v21 }
 0x236   : > { %v1220_v63 = vpop.permute.xlu1 %1219  ;;  %v1551_v22 = vld [vmem:[#allocation2 + $0x78] sm:$0xff] }
 0x237   : > { %1300 = vst.msk [vmem:[#allocation2 + $0x98] sm:$0xff] %vm1282_vm3, %v1220_v63  ;;  %v1218_v23 = vpop.permute.xlu0 %1217  ;;  %v1550_v54 = vld [vmem:[#allocation2 + $0x70] sm:$0xff] }
 0x238   : > { %1333 = vst.msk [vmem:[#allocation2 + $0x99] sm:$0x7f] %vm1316_vm4, %v7325_v17  ;;  %v7562_v24 = vpack.c.bf16 %v1551_v22, %v1550_v54 }
 0x239   : > { %1299 = vst.msk [vmem:[#allocation2 + $0x90] sm:$0xff] %vm1282_vm3, %v1218_v23 }
 0x23a   : > { %1332 = vst.msk [vmem:[#allocation2 + $0x91] sm:$0xff] %vm486_vm1, %v7328_v6  ;;  %5720 = vmatprep.mubr.msk.bf16.mxu0 %vm1116_vm2, %v7562_v24  ;;  %v1224_v33 = vpop.permute.xlu1 %1223  ;;  %v1553_v7 = vld [vmem:[#allocation2 + $0x88] sm:$0xff] }
 0x23b   : > { %1302 = vst.msk [vmem:[#allocation2 + $0xa8] sm:$0xff] %vm1282_vm3, %v1224_v33  ;;  %v1222_v49 = vpop.permute.xlu0 %1221  ;;  %v1552_v8 = vld [vmem:[#allocation2 + $0x80] sm:$0xff] }
 0x23c   : > { %1335 = vst.msk [vmem:[#allocation2 + $0xa9] sm:$0x7f] %vm1316_vm4, %v7342_v4  ;;  %v7572_v17 = vpack.c.bf16 %v1553_v7, %v1552_v8  ;;  %v1478_v33 = vld [vmem:[#allocation2] sm:$0xff] }
 0x23d   : > { %1301 = vst.msk [vmem:[#allocation2 + $0xa0] sm:$0xff] %vm1282_vm3, %v1222_v49 }
 0x23e   : > { %1334 = vst.msk [vmem:[#allocation2 + $0xa1] sm:$0xff] %vm486_vm1, %v7346_v26  ;;  %5721 = vmatmul.mubr.msk.bf16.gmra.mrb[16].mxu0 %vm1116_vm2, %v7572_v17  ;;  %v1383_v6 = vpop.permute.xlu1 %1382 }
 0x23f   : > { %1463 = vst.msk [vmem:[#allocation2 + $0x97] sm:$0xff] %vm1446_vm5, %v1383_v6  ;;  %v1381_v16 = vpop.permute.xlu0 %1380 }
 0x240   : > { %1462 = vst.msk [vmem:[#allocation2 + $0x8f] sm:$0xfe] %vm1444_vm6, %v1381_v16  ;;  %v6066_v16 = vld [vmem:[%s9615_s4 + $0x68] sm:$0xff]  }
 0x242   : > { %v1387_v36 = vpop.permute.xlu1 %1386 }
 0x243   : > { %1465 = vst.msk [vmem:[#allocation2 + $0xa7] sm:$0xff] %vm1446_vm5, %v1387_v36  ;;  %v1385_v4 = vpop.permute.xlu0 %1384  ;;  %v6067_v36 = vld [vmem:[%s9615_s4 + $0x70] sm:$0xff]  }
 0x244   : > { %1464 = vst.msk [vmem:[#allocation2 + $0x9f] sm:$0xfe] %vm1444_vm6, %v1385_v4  ;;  %v6068_v4 = vld [vmem:[%s9615_s4 + $0x78] sm:$0xff]  }
 0x246   : > { %v1228_v9 = vpop.permute.xlu1 %1227  ;;  %v1555_v50 = vld [vmem:[#allocation2 + $0x98] sm:$0xff] }
 0x247   : > { %1304 = vst.msk [vmem:[#allocation2 + $0xb8] sm:$0xff] %vm1282_vm3, %v1228_v9  ;;  %v1226_v26 = vpop.permute.xlu0 %1225  ;;  %v1554_v60 = vld [vmem:[#allocation2 + $0x90] sm:$0xff] }
 0x248   : > { %1337 = vst.msk [vmem:[#allocation2 + $0xb9] sm:$0x7f] %vm1316_vm4, %v7363_v35  ;;  %v7586_v28 = vpack.c.bf16 %v1555_v50, %v1554_v60  ;;  %v2641_v50 = vld [vmem:[%s9619_s8 + $0x18] sm:$0xff]  ;;  %v9641_v60 = vmov 0.0|0.0  }
 0x249   : > { %1303 = vst.msk [vmem:[#allocation2 + $0xb0] sm:$0xff] %vm1282_vm3, %v1226_v26 }
 0x24a   : > { %1336 = vst.msk [vmem:[#allocation2 + $0xb1] sm:$0xff] %vm486_vm1, %v7366_v25  ;;  %5724 = vmatprep.mubr.msk.bf16.mxu0 %vm1116_vm2, %v7586_v28  ;;  %v1232_v34 = vpop.permute.xlu1 %1231  ;;  %v1557_v5 = vld [vmem:[#allocation2 + $0xa8] sm:$0xff] }
 0x24b   : > { %1306 = vst.msk [vmem:[#allocation2 + $0xc8] sm:$0xff] %vm1282_vm3, %v1232_v34  ;;  %v1230_v41 = vpop.permute.xlu0 %1229  ;;  %v1556_v15 = vld [vmem:[#allocation2 + $0xa0] sm:$0xff]  ;;  %v2643_v34 = vld [vmem:[%s9619_s8 + $0x28] sm:$0xff] }
 0x24c   : > { %1339 = vst.msk [vmem:[#allocation2 + $0xc9] sm:$0x7f] %vm1316_vm4, %v7375_v11  ;;  %v7596_v35 = vpack.c.bf16 %v1557_v5, %v1556_v15  ;;  %v2645_v15 = vld [vmem:[%s9619_s8 + $0x38] sm:$0xff] }
 0x24d   : > { %1305 = vst.msk [vmem:[#allocation2 + $0xc0] sm:$0xff] %vm1282_vm3, %v1230_v41  ;;  %v2644_v41 = vld [vmem:[%s9619_s8 + $0x30] sm:$0xff] }
 0x24e   : > { %1338 = vst.msk [vmem:[#allocation2 + $0xc1] sm:$0xff] %vm486_vm1, %v7378_v39  ;;  %5725 = vmatmul.mubr.msk.bf16.gmra.mrb[20].mxu0 %vm1116_vm2, %v7596_v35  ;;  %v1391_v25 = vpop.permute.xlu1 %1390 }
 0x24f   : > { %1467 = vst.msk [vmem:[#allocation2 + $0xb7] sm:$0xff] %vm1446_vm5, %v1391_v25  ;;  %v1389_v56 = vpop.permute.xlu0 %1388  ;;  %v7849_v25 = vld [vmem:[%s452_s22] ss:$0 sm:$0xff] }
 0x250   : > { %1466 = vst.msk [vmem:[#allocation2 + $0xaf] sm:$0xfe] %vm1444_vm6, %v1389_v56 }
 0x252   : > { %v1395_v32 = vpop.permute.xlu1 %1394 }
 0x253   : > { %1469 = vst.msk [vmem:[#allocation2 + $0xc7] sm:$0xff] %vm1446_vm5, %v1395_v32  ;;  %v1393_v11 = vpop.permute.xlu0 %1392 }
 0x254   : > { %1468 = vst.msk [vmem:[#allocation2 + $0xbf] sm:$0xfe] %vm1444_vm6, %v1393_v11 }
 0x256   : > { %v1236_v55 = vpop.permute.xlu1 %1235  ;;  %v1559_v2 = vld [vmem:[#allocation2 + $0xb8] sm:$0xff] }
 0x257   : > { %1308 = vst.msk [vmem:[#allocation2 + $0xd8] sm:$0xff] %vm1282_vm3, %v1236_v55  ;;  %v1234_v39 = vpop.permute.xlu0 %1233  ;;  %v1558_v62 = vld [vmem:[#allocation2 + $0xb0] sm:$0xff] }
 0x258   : > { %1341 = vst.msk [vmem:[#allocation2 + $0xd9] sm:$0x7f] %vm1316_vm4, %v7393_v40  ;;  %v7610_v27 = vpack.c.bf16 %v1559_v2, %v1558_v62 }
 0x259   : > { %1307 = vst.msk [vmem:[#allocation2 + $0xd0] sm:$0xff] %vm1282_vm3, %v1234_v39 }
 0x25a   : > { %1340 = vst.msk [vmem:[#allocation2 + $0xd1] sm:$0xff] %vm486_vm1, %v7396_v14  ;;  %5728 = vmatprep.mubr.msk.bf16.mxu0 %vm1116_vm2, %v7610_v27  ;;  %v1240_v46 = vpop.permute.xlu1 %1239  ;;  %v1561_v12 = vld [vmem:[#allocation2 + $0xc8] sm:$0xff] }
 0x25b   : > { %1310 = vst.msk [vmem:[#allocation2 + $0xe8] sm:$0xff] %vm1282_vm3, %v1240_v46  ;;  %v1238_v59 = vpop.permute.xlu0 %1237  ;;  %v1560_v0 = vld [vmem:[#allocation2 + $0xc0] sm:$0xff] }
 0x25c   : > { %1343 = vst.msk [vmem:[#allocation2 + $0xe9] sm:$0x7f] %vm1316_vm4, %v7403_v45  ;;  %v7620_v40 = vpack.c.bf16 %v1561_v12, %v1560_v0 }
 0x25d   : > { %1309 = vst.msk [vmem:[#allocation2 + $0xe0] sm:$0xff] %vm1282_vm3, %v1238_v59 }
 0x25e   : > { %1342 = vst.msk [vmem:[#allocation2 + $0xe1] sm:$0xff] %vm486_vm1, %v7406_v44  ;;  %5729 = vmatmul.mubr.msk.bf16.gmra.mrb[24].mxu0 %vm1116_vm2, %v7620_v40  ;;  %v1399_v14 = vpop.permute.xlu1 %1398 }
 0x25f   : > { %1471 = vst.msk [vmem:[#allocation2 + $0xd7] sm:$0xff] %vm1446_vm5, %v1399_v14  ;;  %v1397_v51 = vpop.permute.xlu0 %1396 }
 0x260   : > { %1470 = vst.msk [vmem:[#allocation2 + $0xcf] sm:$0xfe] %vm1444_vm6, %v1397_v51 }
 0x262   : > { %v1403_v37 = vpop.permute.xlu1 %1402 }
 0x263   : > { %1473 = vst.msk [vmem:[#allocation2 + $0xe7] sm:$0xff] %vm1446_vm5, %v1403_v37  ;;  %v1401_v45 = vpop.permute.xlu0 %1400 }
 0x264   : > { %1472 = vst.msk [vmem:[#allocation2 + $0xdf] sm:$0xfe] %vm1444_vm6, %v1401_v45 }
 0x266   : > { %v1244_v47 = vpop.permute.xlu1 %1243  ;;  %v1563_v10 = vld [vmem:[#allocation2 + $0xd8] sm:$0xff] }
 0x267   : > { %1312 = vst.msk [vmem:[#allocation2 + $0xf8] sm:$0xff] %vm1282_vm3, %v1244_v47  ;;  %v1242_v44 = vpop.permute.xlu0 %1241  ;;  %v1562_v38 = vld [vmem:[#allocation2 + $0xd0] sm:$0xff] }
 0x268   : > { %1345 = vst.msk [vmem:[#allocation2 + $0xf9] sm:$0x7f] %vm1316_vm4, %v7421_v30  ;;  %v7634_v42 = vpack.c.bf16 %v1563_v10, %v1562_v38 }
 0x269   : > { %1311 = vst.msk [vmem:[#allocation2 + $0xf0] sm:$0xff] %vm1282_vm3, %v1242_v44 }
 0x26a   : > { %1344 = vst.msk [vmem:[#allocation2 + $0xf1] sm:$0xff] %vm486_vm1, %v7424_v3  ;;  %5732 = vmatprep.mubr.msk.bf16.mxu0 %vm1116_vm2, %v7634_v42  ;;  %v1248_v1 = vpop.permute.xlu1 %1247  ;;  %v1565_v18 = vld [vmem:[#allocation2 + $0xe8] sm:$0xff] }
 0x26b   : > { %1314 = vst.msk [vmem:[#allocation2 + $0x108] sm:$0xff] %vm1282_vm3, %v1248_v1  ;;  %v1246_v20 = vpop.permute.xlu0 %1245  ;;  %v1564_v61 = vld [vmem:[#allocation2 + $0xe0] sm:$0xff] }
 0x26c   : > { %1347 = vst.msk [vmem:[#allocation2 + $0x109] sm:$0x7f] %vm1316_vm4, %v7431_v48  ;;  %v7644_v30 = vpack.c.bf16 %v1565_v18, %v1564_v61 }
 0x26d   : > { %1313 = vst.msk [vmem:[#allocation2 + $0x100] sm:$0xff] %vm1282_vm3, %v1246_v20 }
 0x26e   : > { %1346 = vst.msk [vmem:[#allocation2 + $0x101] sm:$0xff] %vm486_vm1, %v7435_v53  ;;  %5733 = vmatmul.mubr.msk.bf16.gmra.mrb[28].mxu0 %vm1116_vm2, %v7644_v30  ;;  %v1407_v3 = vpop.permute.xlu1 %1406  ;;  %v1479_v53 = vld [vmem:[#allocation2 + $0x8] sm:$0xff] }
 0x26f   : > { %1475 = vst.msk [vmem:[#allocation2 + $0xf7] sm:$0xff] %vm1446_vm5, %v1407_v3  ;;  %v1405_v21 = vpop.permute.xlu0 %1404  ;;  %v1510_v8 = vpack.c.bf16 %v1479_v53, %v1478_v33 }
 0x270   : > { %1474 = vst.msk [vmem:[#allocation2 + $0xef] sm:$0xfe] %vm1444_vm6, %v1405_v21 }
 0x272   : > { %v1411_v63 = vpop.permute.xlu1 %1410 }
 0x273   : > { %1477 = vst.msk [vmem:[#allocation2 + $0x107] sm:$0xff] %vm1446_vm5, %v1411_v63  ;;  %v1409_v48 = vpop.permute.xlu0 %1408 }
 0x274   : > { %1476 = vst.msk [vmem:[#allocation2 + $0xff] sm:$0xfe] %vm1444_vm6, %v1409_v48 }
 0x276   : > { %v1567_v22 = vld [vmem:[#allocation2 + $0xf8] sm:$0xff] }
 0x277   : > { %v1566_v23 = vld [vmem:[#allocation2 + $0xf0] sm:$0xff] }
 0x278   : > { %v1584_v54 = vpack.c.bf16 %v1567_v22, %v1566_v23 }
 0x27a   : > { %5736 = vmatprep.mubr.msk.bf16.mxu0 %vm1116_vm2, %v1584_v54  ;;  %v1569_v7 = vld [vmem:[#allocation2 + $0x108] sm:$0xff] }
 0x27b   : > { %v1568_v49 = vld [vmem:[#allocation2 + $0x100] sm:$0xff] }
 0x27c   : > { %v1585_v6 = vpack.c.bf16 %v1569_v7, %v1568_v49 }
 0x27e   : > { %5737 = vmatmul.mubr.msk.bf16.gmra.mrb[32].mxu0 %vm1116_vm2, %v1585_v6 }
 0x27f   : > { %5752 = vmatprep.mubr.msk.bf16.mxu0 %vm1116_vm2, %v1510_v8 }
 0x286   : > { %5753 = vmatmul.mubr.msk.bf16.vlgmr.msra.gmra.mrb[4].mxu0 %vm1116_vm2, %v7468_v52  ;;  %v6069_v52 = vld [vmem:[%s9615_s4 + $0x80] sm:$0xff]  }
 0x287   : > { %5785 = vmatpush3.bf16.msra.mxu0 %v7529_v19  ;;  %5756 = vmatprep.mubr.msk.bf16.mxu0 %vm1116_vm2, %v7478_v58  ;;  %v6070_v19 = vld [vmem:[%s9615_s4 + $0x88] sm:$0xff]  }
 0x288   : > { %5786 = vmatprep.subr.bf16.mxu0 %v6066_v16 }
 0x28b   : > { %5787 = vmatpush3.bf16.msra.mxu0 %v6066_v16 }
 0x28c   : > { %5788 = vmatprep.subr.bf16.mxu0 %v6067_v36 }
 0x28e   : > { %5757 = vmatmul.mubr.msk.bf16.gmra.mrb[8].mxu0 %vm1116_vm2, %v7502_v31 }
 0x28f   : > { %5760 = vmatprep.mubr.msk.bf16.mxu0 %vm1116_vm2, %v7515_v43  ;;  %5789 = vmatpush3.bf16.msra.mxu0 %v6067_v36 }
 0x290   : > { %5790 = vmatprep.subr.bf16.mxu0 %v6068_v4 }
 0x293   : > { %5791 = vmatpush3.bf16.msra.mxu0 %v6068_v4 }
 0x294   : > { %5792 = vmatprep.subr.bf16.mxu0 %v6069_v52 }
 0x296   : > { %5761 = vmatmul.mubr.msk.bf16.gmra.mrb[12].mxu0 %vm1116_vm2, %v7538_v13 }
 0x297   : > { %5764 = vmatprep.mubr.msk.bf16.mxu0 %vm1116_vm2, %v7548_v29  ;;  %5793 = vmatpush3.bf16.msra.mxu0 %v6069_v52 }
 0x298   : > { %5794 = vmatprep.subr.bf16.mxu0 %v6070_v19 }
 0x29b   : > { %5795 = vmatpush3.bf16.msra.mxu0 %v6070_v19 }
 0x29e   : > { %5765 = vmatmul.mubr.msk.bf16.gmra.mrb[16].mxu0 %vm1116_vm2, %v7562_v24 }
 0x29f   : > { %5768 = vmatprep.mubr.msk.bf16.mxu0 %vm1116_vm2, %v7572_v17 }
 0x2a6   : > { %5769 = vmatmul.mubr.msk.bf16.gmra.mrb[20].mxu0 %vm1116_vm2, %v7586_v28 }
 0x2a7   : > { %5772 = vmatprep.mubr.msk.bf16.mxu0 %vm1116_vm2, %v7596_v35 }
 0x2ae   : > { %5773 = vmatmul.mubr.msk.bf16.gmra.mrb[24].mxu0 %vm1116_vm2, %v7610_v27 }
 0x2af   : > { %5776 = vmatprep.mubr.msk.bf16.mxu0 %vm1116_vm2, %v7620_v40 }
 0x2b6   : > { %5777 = vmatmul.mubr.msk.bf16.gmra.mrb[28].mxu0 %vm1116_vm2, %v7634_v42 }
 0x2b7   : > { %5780 = vmatprep.mubr.msk.bf16.mxu0 %vm1116_vm2, %v7644_v30 }
 0x2be   : > { %5781 = vmatmul.mubr.msk.bf16.gmra.mrb[32].mxu0 %vm1116_vm2, %v1584_v54 }
 0x2bf   : > { %5796 = vmatprep.mubr.msk.bf16.mxu0 %vm1116_vm2, %v7478_v58  ;;  %v2120_v58 = vld [vmem:[#allocation2 + $0x110] sm:$0xff] }
 0x2c6   : > { %5797 = vmatmul.mubr.msk.bf16.vlgmr.msra.gmra.mrb[4].mxu0 %vm1116_vm2, %v7502_v31  ;;  %v2121_v31 = vld [vmem:[#allocation2 + $0x118] sm:$0xff] }
 0x2c7   : > { %5800 = vmatprep.mubr.msk.bf16.mxu0 %vm1116_vm2, %v7515_v43  ;;  %v2137_v43 = vpack.c.bf16 %v2121_v31, %v2120_v58 }
 0x2ce   : > { %5801 = vmatmul.mubr.msk.bf16.gmra.mrb[8].mxu0 %vm1116_vm2, %v7538_v13  ;;  %v7731_v13 = vld [vmem:[#allocation3] sm:$0xff] }
 0x2cf   : > { %5804 = vmatprep.mubr.msk.bf16.mxu0 %vm1116_vm2, %v7548_v29  ;;  %3102 = vst.msk [vmem:[#allocation3 + $0x8] sm:$0xff] %vm2467_vm7, %v7731_v13  ;;  %3104 = vst.msk [vmem:[#allocation3 + $0x18] sm:$0xff] %vm2467_vm7, %v7731_v13  ;;  %v2638_v29 = vld [vmem:[%s9619_s8] sm:$0xff] }
 0x2d0   : > { %3106 = vst.msk [vmem:[#allocation3 + $0x28] sm:$0xff] %vm2467_vm7, %v7731_v13  ;;  %3108 = vst.msk [vmem:[#allocation3 + $0x38] sm:$0xff] %vm2467_vm7, %v7731_v13 }
 0x2d1   : > { %3110 = vst.msk [vmem:[#allocation3 + $0x48] sm:$0xff] %vm2467_vm7, %v7731_v13  ;;  %3112 = vst.msk [vmem:[#allocation3 + $0x58] sm:$0xff] %vm2467_vm7, %v7731_v13 }
 0x2d2   : > { %3114 = vst.msk [vmem:[#allocation3 + $0x68] sm:$0xff] %vm2467_vm7, %v7731_v13  ;;  %3116 = vst.msk [vmem:[#allocation3 + $0x78] sm:$0xff] %vm2467_vm7, %v7731_v13 }
 0x2d3   : > { %3118 = vst.msk [vmem:[#allocation3 + $0x88] sm:$0xff] %vm2467_vm7, %v7731_v13  ;;  %3120 = vst.msk [vmem:[#allocation3 + $0x98] sm:$0xff] %vm2467_vm7, %v7731_v13 }
 0x2d4   : > { %3122 = vst.msk [vmem:[#allocation3 + $0xa8] sm:$0xff] %vm2467_vm7, %v7731_v13  ;;  %3124 = vst.msk [vmem:[#allocation3 + $0xb8] sm:$0xff] %vm2467_vm7, %v7731_v13 }
 0x2d5   : > { %3126 = vst.msk [vmem:[#allocation3 + $0xc8] sm:$0xff] %vm2467_vm7, %v7731_v13  ;;  %3128 = vst.msk [vmem:[#allocation3 + $0xd8] sm:$0xff] %vm2467_vm7, %v7731_v13 }
 0x2d6   : > { %5805 = vmatmul.mubr.msk.bf16.gmra.mrb[12].mxu0 %vm1116_vm2, %v7562_v24  ;;  %3130 = vst.msk [vmem:[#allocation3 + $0xe8] sm:$0xff] %vm2467_vm7, %v7731_v13  ;;  %3132 = vst.msk [vmem:[#allocation3 + $0xf8] sm:$0xff] %vm2467_vm7, %v7731_v13  ;;  %v2639_v24 = vld [vmem:[%s9619_s8 + $0x8] sm:$0xff] }
 0x2d7   : > { %5808 = vmatprep.mubr.msk.bf16.mxu0 %vm1116_vm2, %v7572_v17  ;;  %3134 = vst.msk [vmem:[#allocation3 + $0x108] sm:$0xff] %vm2467_vm7, %v7731_v13  ;;  %3136 = vst.msk [vmem:[#allocation3 + $0x118] sm:$0xff] %vm2467_vm7, %v7731_v13  ;;  %v2640_v17 = vld [vmem:[%s9619_s8 + $0x10] sm:$0xff]  ;;  %v7814_v9 = vpack.c.bf16 %v2639_v24, %v2638_v29 }
 0x2d8   : > { %3138 = vst.msk [vmem:[#allocation3 + $0x128] sm:$0xff] %vm2467_vm7, %v7731_v13  ;;  %3140 = vst.msk [vmem:[#allocation3 + $0x138] sm:$0xff] %vm2467_vm7, %v7731_v13  ;;  %v7820_v26 = vpack.c.bf16 %v2641_v50, %v2640_v17 }
 0x2d9   : > { %3142 = vst.msk [vmem:[#allocation3 + $0x148] sm:$0xff] %vm2467_vm7, %v7731_v13  ;;  %3144 = vst.msk [vmem:[#allocation3 + $0x158] sm:$0xff] %vm2467_vm7, %v7731_v13  ;;  %5916 = vmatpush3.bf16.msra.mxu1 %v7814_v9 }
 0x2da   : > { %3146 = vst.msk [vmem:[#allocation3 + $0x168] sm:$0xff] %vm2467_vm7, %v7731_v13  ;;  %3148 = vst.msk [vmem:[#allocation3 + $0x178] sm:$0xff] %vm2467_vm7, %v7731_v13  ;;  %5917 = vmatprep.subr.bf16.mxu1 %v9641_v60 }
 0x2db   : > { %3150 = vst.msk [vmem:[#allocation3 + $0x188] sm:$0xff] %vm2467_vm7, %v7731_v13  ;;  %3152 = vst.msk [vmem:[#allocation3 + $0x198] sm:$0xff] %vm2467_vm7, %v7731_v13 }
 0x2dc   : > { %3154 = vst.msk [vmem:[#allocation3 + $0x1a8] sm:$0xff] %vm2467_vm7, %v7731_v13  ;;  %3156 = vst.msk [vmem:[#allocation3 + $0x1b8] sm:$0xff] %vm2467_vm7, %v7731_v13 }
 0x2dd   : > { %3158 = vst.msk [vmem:[#allocation3 + $0x1c8] sm:$0xff] %vm2467_vm7, %v7731_v13  ;;  %3160 = vst.msk [vmem:[#allocation3 + $0x1d8] sm:$0xff] %vm2467_vm7, %v7731_v13  ;;  %5919 = vmatpush3.bf16.msra.mxu1 %v7820_v26 }
 0x2de   : > { %5809 = vmatmul.mubr.msk.bf16.gmra.mrb[16].mxu0 %vm1116_vm2, %v7586_v28  ;;  %3162 = vst.msk [vmem:[#allocation3 + $0x1e8] sm:$0xff] %vm2467_vm7, %v7731_v13  ;;  %3164 = vst.msk [vmem:[#allocation3 + $0x1f8] sm:$0xff] %vm2467_vm7, %v7731_v13  ;;  %v2642_v28 = vld [vmem:[%s9619_s8 + $0x20] sm:$0xff]  ;;  %5920 = vmatprep.subr.bf16.mxu1 %v9641_v60 }
 0x2df   : > { %5812 = vmatprep.mubr.msk.bf16.mxu0 %vm1116_vm2, %v7596_v35  ;;  %3166 = vst.msk [vmem:[#allocation3 + $0x208] sm:$0xff] %vm2467_vm7, %v7731_v13  ;;  %3168 = vst.msk [vmem:[#allocation3 + $0x218] sm:$0xff] %vm2467_vm7, %v7731_v13  ;;  %v7830_v5 = vpack.c.bf16 %v2643_v34, %v2642_v28  ;;  %v7840_v35 = vpack.c.bf16 %v2645_v15, %v2644_v41 }
 0x2e0   : > { %3170 = vst.msk [vmem:[#allocation3 + $0x228] sm:$0xff] %vm2467_vm7, %v7731_v13  ;;  %3172 = vst.msk [vmem:[#allocation3 + $0x238] sm:$0xff] %vm2467_vm7, %v7731_v13 }
 0x2e1   : > { %5922 = vmatpush3.bf16.msra.mxu1 %v7830_v5 }
 0x2e2   : > { %5923 = vmatprep.subr.bf16.mxu1 %v9641_v60 }
 0x2e5   : > { %5925 = vmatpush3.bf16.msra.mxu1 %v7840_v35 }
 0x2e6   : > { %5813 = vmatmul.mubr.msk.bf16.gmra.mrb[20].mxu0 %vm1116_vm2, %v7610_v27  ;;  %5926 = vmatprep.subr.bf16.mxu1 %v9641_v60 }
 0x2e7   : > { %5816 = vmatprep.mubr.msk.bf16.mxu0 %vm1116_vm2, %v7620_v40 }
 0x2ee   : > { %5817 = vmatmul.mubr.msk.bf16.gmra.mrb[24].mxu0 %vm1116_vm2, %v7634_v42 }
 0x2ef   : > { %5820 = vmatprep.mubr.msk.bf16.mxu0 %vm1116_vm2, %v7644_v30 }
 0x2f6   : > { %5821 = vmatmul.mubr.msk.bf16.gmra.mrb[28].mxu0 %vm1116_vm2, %v1584_v54 }
 0x2f7   : > { %5824 = vmatprep.mubr.msk.bf16.mxu0 %vm1116_vm2, %v1585_v6 }
 0x2fe   : > { %5825 = vmatmul.mubr.msk.bf16.gmra.mrb[32].mxu0 %vm1116_vm2, %v2137_v43 }
 0x399   : > { %v5798_v56 = vpop.f32.mrb[4].mxu0 }
 0x39a   : > { %v7852_v32 = vadd.f32 %v5798_v56, %v7849_v25  ;;  %v2269_v11 = vpop.f32.mrb[5].mxu0 }
 0x39b   : > { %v7855_v55 = vadd.f32 %v7849_v25, %v2269_v11  ;;  %v5799_v2 = vpop.f32.mrb[6].mxu0 }
 0x39c   : > { %v7858_v39 = vadd.f32 %v5799_v2, %v7849_v25  ;;  %v2272_v62 = vpop.f32.mrb[7].mxu0  ;;  %v2539_v12 = vmul.f32 %v7852_v32, %v7852_v32  ;;  %v2471_v37 = vsel %vm2467_vm7, %v7852_v32, 0.0 }
 0x39d   : > { %v2537_v27 = vmul.f32 %v7855_v55, %v7855_v55  ;;  %v7863_v46 = vadd.f32 %v7849_v25, %v2272_v62  ;;  %v2468_v59 = vsel %vm2467_vm7, %v7855_v55, 0.0 }
 0x39e   : > { %v2540_v14 = vmul.f32 %v7858_v39, %v7858_v39  ;;  %v2572_v18 = vsel %vm2467_vm7, %v2539_v12, 0.0  ;;  %v2473_v20 = vsel %vm2467_vm7, %v7858_v39, 0.0 }
 0x39f   : > { %v2469_v0 = vsel %vm2467_vm7, %v7863_v46, 0.0  ;;  %v2538_v40 = vmul.f32 %v7863_v46, %v7863_v46  ;;  %v2569_v45 = vsel %vm2467_vm7, %v2537_v27, 0.0 }
 0x3a0   : > { %v2470_v51 = vadd.f32 %v2469_v0, %v2468_v59  ;;  %v2574_v3 = vsel %vm2467_vm7, %v2540_v14, 0.0 }
 0x3a1   : > { %v2570_v47 = vsel %vm2467_vm7, %v2538_v40, 0.0  ;;  %v5802_v10 = vpop.f32.mrb[8].mxu0 }
 0x3a2   : > { %v2472_v44 = vadd.f32 %v2471_v37, %v2470_v51  ;;  %v2571_v38 = vadd.f32 %v2570_v47, %v2569_v45  ;;  %v7880_v42 = vadd.f32 %v5802_v10, %v7849_v25  ;;  %v2285_v1 = vpop.f32.mrb[9].mxu0 }
 0x3a3   : > { %v7886_v61 = vadd.f32 %v7849_v25, %v2285_v1  ;;  %v5803_v30 = vpop.f32.mrb[10].mxu0 }
 0x3a4   : > { %v2573_v21 = vadd.f32 %v2572_v18, %v2571_v38  ;;  %v2474_v63 = vadd.f32 %v2473_v20, %v2472_v44  ;;  %v2288_v48 = vpop.f32.mrb[11].mxu0  ;;  %v7894_v54 = vadd.f32 %v5803_v30, %v7849_v25  ;;  %v2543_v6 = vmul.f32 %v7880_v42, %v7880_v42 }
 0x3a5   : > { %v2475_v22 = vsel %vm2467_vm7, %v7886_v61, 0.0  ;;  %v2541_v23 = vmul.f32 %v7886_v61, %v7886_v61  ;;  %v7897_v33 = vadd.f32 %v7849_v25, %v2288_v48  ;;  %v2479_v52 = vsel %vm2467_vm7, %v7880_v42, 0.0 }
 0x3a6   : > { %v2476_v53 = vadd.f32 %v2475_v22, %v2474_v63  ;;  %v2575_v7 = vadd.f32 %v2574_v3, %v2573_v21  ;;  %v2544_v58 = vmul.f32 %v7894_v54, %v7894_v54  ;;  %v2481_v17 = vsel %vm2467_vm7, %v7894_v54, 0.0 }
 0x3a7   : > { %v2576_v49 = vsel %vm2467_vm7, %v2541_v23, 0.0  ;;  %v2477_v8 = vsel %vm2467_vm7, %v7897_v33, 0.0  ;;  %v2542_v4 = vmul.f32 %v7897_v33, %v7897_v33  ;;  %v2580_v41 = vsel %vm2467_vm7, %v2543_v6, 0.0 }
 0x3a8   : > { %v2577_v16 = vadd.f32 %v2576_v49, %v2575_v7  ;;  %v2478_v36 = vadd.f32 %v2477_v8, %v2476_v53  ;;  %v2582_v59 = vsel %vm2467_vm7, %v2544_v58, 0.0 }
 0x3a9   : > { %v5806_v19 = vpop.f32.mrb[12].mxu0  ;;  %v2578_v43 = vsel %vm2467_vm7, %v2542_v4, 0.0 }
 0x3aa   : > { %v2480_v31 = vadd.f32 %v2479_v52, %v2478_v36  ;;  %v7912_v29 = vadd.f32 %v5806_v19, %v7849_v25  ;;  %v2301_v24 = vpop.f32.mrb[13].mxu0  ;;  %v2579_v50 = vadd.f32 %v2578_v43, %v2577_v16 }
 0x3ab   : > { %v7917_v28 = vadd.f32 %v7849_v25, %v2301_v24  ;;  %v5807_v34 = vpop.f32.mrb[14].mxu0 }
 0x3ac   : > { %v2482_v15 = vadd.f32 %v2481_v17, %v2480_v31  ;;  %v7921_v56 = vadd.f32 %v5807_v34, %v7849_v25  ;;  %v2304_v11 = vpop.f32.mrb[15].mxu0  ;;  %v2581_v2 = vadd.f32 %v2580_v41, %v2579_v50  ;;  %v2547_v45 = vmul.f32 %v7912_v29, %v7912_v29 }
 0x3ad   : > { %v2483_v62 = vsel %vm2467_vm7, %v7917_v28, 0.0  ;;  %v2545_v27 = vmul.f32 %v7917_v28, %v7917_v28  ;;  %v7928_v12 = vadd.f32 %v7849_v25, %v2304_v11  ;;  %v2487_v10 = vsel %vm2467_vm7, %v7912_v29, 0.0 }
 0x3ae   : > { %v2484_v0 = vadd.f32 %v2483_v62, %v2482_v15  ;;  %v2583_v40 = vadd.f32 %v2582_v59, %v2581_v2  ;;  %v2548_v18 = vmul.f32 %v7921_v56, %v7921_v56  ;;  %v2489_v21 = vsel %vm2467_vm7, %v7921_v56, 0.0 }
 0x3af   : > { %v2584_v14 = vsel %vm2467_vm7, %v2545_v27, 0.0  ;;  %v2485_v51 = vsel %vm2467_vm7, %v7928_v12, 0.0  ;;  %v2546_v37 = vmul.f32 %v7928_v12, %v7928_v12  ;;  %v2588_v23 = vsel %vm2467_vm7, %v2547_v45, 0.0 }
 0x3b0   : > { %v2486_v47 = vadd.f32 %v2485_v51, %v2484_v0  ;;  %v2585_v44 = vadd.f32 %v2584_v14, %v2583_v40  ;;  %v2590_v4 = vsel %vm2467_vm7, %v2548_v18, 0.0 }
 0x3b1   : > { %v2586_v38 = vsel %vm2467_vm7, %v2546_v37, 0.0  ;;  %v5810_v1 = vpop.f32.mrb[16].mxu0 }
 0x3b2   : > { %v2488_v20 = vadd.f32 %v2487_v10, %v2486_v47  ;;  %v7944_v30 = vadd.f32 %v5810_v1, %v7849_v25  ;;  %v2317_v3 = vpop.f32.mrb[17].mxu0  ;;  %v2587_v63 = vadd.f32 %v2586_v38, %v2585_v44 }
 0x3b3   : > { %v7949_v48 = vadd.f32 %v7849_v25, %v2317_v3  ;;  %v5811_v22 = vpop.f32.mrb[18].mxu0 }
 0x3b4   : > { %v2490_v53 = vadd.f32 %v2489_v21, %v2488_v20  ;;  %v7953_v7 = vadd.f32 %v5811_v22, %v7849_v25  ;;  %v2320_v49 = vpop.f32.mrb[19].mxu0  ;;  %v2589_v8 = vadd.f32 %v2588_v23, %v2587_v63  ;;  %v2551_v24 = vmul.f32 %v7944_v30, %v7944_v30 }
 0x3b5   : > { %v2491_v6 = vsel %vm2467_vm7, %v7949_v48, 0.0  ;;  %v2549_v16 = vmul.f32 %v7949_v48, %v7949_v48  ;;  %v7960_v36 = vadd.f32 %v7849_v25, %v2320_v49  ;;  %v2495_v50 = vsel %vm2467_vm7, %v7944_v30, 0.0 }
 0x3b6   : > { %v2492_v52 = vadd.f32 %v2491_v6, %v2490_v53  ;;  %v2591_v19 = vadd.f32 %v2590_v4, %v2589_v8  ;;  %v2552_v11 = vmul.f32 %v7953_v7, %v7953_v7  ;;  %v2497_v59 = vsel %vm2467_vm7, %v7953_v7, 0.0 }
 0x3b7   : > { %v2592_v58 = vsel %vm2467_vm7, %v2549_v16, 0.0  ;;  %v2493_v31 = vsel %vm2467_vm7, %v7960_v36, 0.0  ;;  %v2550_v43 = vmul.f32 %v7960_v36, %v7960_v36  ;;  %v2596_v51 = vsel %vm2467_vm7, %v2551_v24, 0.0 }
 0x3b8   : > { %v2494_v17 = vadd.f32 %v2493_v31, %v2492_v52  ;;  %v2593_v34 = vadd.f32 %v2592_v58, %v2591_v19  ;;  %v2598_v18 = vsel %vm2467_vm7, %v2552_v11, 0.0 }
 0x3b9   : > { %v2594_v41 = vsel %vm2467_vm7, %v2550_v43, 0.0  ;;  %v5814_v15 = vpop.f32.mrb[20].mxu0 }
 0x3ba   : > { %v2496_v2 = vadd.f32 %v2495_v50, %v2494_v17  ;;  %v7976_v62 = vadd.f32 %v5814_v15, %v7849_v25  ;;  %v2333_v27 = vpop.f32.mrb[21].mxu0  ;;  %v2595_v0 = vadd.f32 %v2594_v41, %v2593_v34 }
 0x3bb   : > { %v7981_v40 = vadd.f32 %v7849_v25, %v2333_v27  ;;  %v5815_v14 = vpop.f32.mrb[22].mxu0 }
 0x3bc   : > { %v2498_v37 = vadd.f32 %v2497_v59, %v2496_v2  ;;  %v7985_v45 = vadd.f32 %v5815_v14, %v7849_v25  ;;  %v2336_v47 = vpop.f32.mrb[23].mxu0  ;;  %v2597_v10 = vadd.f32 %v2596_v51, %v2595_v0  ;;  %v2555_v23 = vmul.f32 %v7976_v62, %v7976_v62 }
 0x3bd   : > { %v2499_v44 = vsel %vm2467_vm7, %v7981_v40, 0.0  ;;  %v2553_v38 = vmul.f32 %v7981_v40, %v7981_v40  ;;  %v7992_v1 = vadd.f32 %v7849_v25, %v2336_v47  ;;  %v2503_v49 = vsel %vm2467_vm7, %v7976_v62, 0.0 }
 0x3be   : > { %v2500_v20 = vadd.f32 %v2499_v44, %v2498_v37  ;;  %v2599_v3 = vadd.f32 %v2598_v18, %v2597_v10  ;;  %v2556_v4 = vmul.f32 %v7985_v45, %v7985_v45  ;;  %v2505_v31 = vsel %vm2467_vm7, %v7985_v45, 0.0 }
 0x3bf   : > { %v2600_v21 = vsel %vm2467_vm7, %v2553_v38, 0.0  ;;  %v2501_v63 = vsel %vm2467_vm7, %v7992_v1, 0.0  ;;  %v2554_v22 = vmul.f32 %v7992_v1, %v7992_v1  ;;  %v2604_v50 = vsel %vm2467_vm7, %v2555_v23, 0.0 }
 0x3c0   : > { %v2502_v53 = vadd.f32 %v2501_v63, %v2500_v20  ;;  %v2601_v8 = vadd.f32 %v2600_v21, %v2599_v3  ;;  %v2606_v0 = vsel %vm2467_vm7, %v2556_v4, 0.0 }
 0x3c1   : > { %v2602_v6 = vsel %vm2467_vm7, %v2554_v22, 0.0  ;;  %v5818_v16 = vpop.f32.mrb[24].mxu0 }
 0x3c2   : > { %v2504_v52 = vadd.f32 %v2503_v49, %v2502_v53  ;;  %v8008_v19 = vadd.f32 %v5818_v16, %v7849_v25  ;;  %v2349_v58 = vpop.f32.mrb[25].mxu0  ;;  %v2603_v43 = vadd.f32 %v2602_v6, %v2601_v8 }
 0x3c3   : > { %v8013_v24 = vadd.f32 %v7849_v25, %v2349_v58  ;;  %v5819_v17 = vpop.f32.mrb[26].mxu0 }
 0x3c4   : > { %v2506_v34 = vadd.f32 %v2505_v31, %v2504_v52  ;;  %v8017_v41 = vadd.f32 %v5819_v17, %v7849_v25  ;;  %v2352_v15 = vpop.f32.mrb[27].mxu0  ;;  %v2605_v11 = vadd.f32 %v2604_v50, %v2603_v43  ;;  %v2559_v44 = vmul.f32 %v8008_v19, %v8008_v19 }
 0x3c5   : > { %v2507_v2 = vsel %vm2467_vm7, %v8013_v24, 0.0  ;;  %v2557_v27 = vmul.f32 %v8013_v24, %v8013_v24  ;;  %v8024_v59 = vadd.f32 %v7849_v25, %v2352_v15  ;;  %v2511_v18 = vsel %vm2467_vm7, %v8008_v19, 0.0 }
 0x3c6   : > { %v2508_v14 = vadd.f32 %v2507_v2, %v2506_v34  ;;  %v2607_v51 = vadd.f32 %v2606_v0, %v2605_v11  ;;  %v2560_v63 = vmul.f32 %v8017_v41, %v8017_v41  ;;  %v2513_v49 = vsel %vm2467_vm7, %v8017_v41, 0.0 }
 0x3c7   : > { %v2608_v37 = vsel %vm2467_vm7, %v2557_v27, 0.0  ;;  %v2509_v47 = vsel %vm2467_vm7, %v8024_v59, 0.0  ;;  %v2558_v10 = vmul.f32 %v8024_v59, %v8024_v59  ;;  %v2612_v4 = vsel %vm2467_vm7, %v2559_v44, 0.0 }
 0x3c8   : > { %v2510_v38 = vadd.f32 %v2509_v47, %v2508_v14  ;;  %v2609_v20 = vadd.f32 %v2608_v37, %v2607_v51  ;;  %v2614_v15 = vsel %vm2467_vm7, %v2560_v63, 0.0 }
 0x3c9   : > { %v2610_v3 = vsel %vm2467_vm7, %v2558_v10, 0.0  ;;  %v5822_v21 = vpop.f32.mrb[28].mxu0 }
 0x3ca   : > { %v2512_v22 = vadd.f32 %v2511_v18, %v2510_v38  ;;  %v8040_v23 = vadd.f32 %v5822_v21, %v7849_v25  ;;  %v2365_v53 = vpop.f32.mrb[29].mxu0  ;;  %v2611_v8 = vadd.f32 %v2610_v3, %v2609_v20 }
 0x3cb   : > { %v8045_v6 = vadd.f32 %v7849_v25, %v2365_v53  ;;  %v5823_v16 = vpop.f32.mrb[30].mxu0 }
 0x3cc   : > { %v2514_v52 = vadd.f32 %v2513_v49, %v2512_v22  ;;  %v8049_v58 = vadd.f32 %v5823_v16, %v7849_v25  ;;  %v2368_v31 = vpop.f32.mrb[31].mxu0  ;;  %v2613_v43 = vadd.f32 %v2612_v4, %v2611_v8  ;;  %v2563_v51 = vmul.f32 %v8040_v23, %v8040_v23 }
 0x3cd   : > { %v2515_v17 = vsel %vm2467_vm7, %v8045_v6, 0.0  ;;  %v2561_v50 = vmul.f32 %v8045_v6, %v8045_v6  ;;  %v8056_v34 = vadd.f32 %v7849_v25, %v2368_v31  ;;  %v2519_v47 = vsel %vm2467_vm7, %v8040_v23, 0.0 }
 0x3ce   : > { %v2516_v11 = vadd.f32 %v2515_v17, %v2514_v52  ;;  %v2615_v2 = vadd.f32 %v2614_v15, %v2613_v43  ;;  %v2564_v18 = vmul.f32 %v8049_v58, %v8049_v58  ;;  %v2521_v63 = vsel %vm2467_vm7, %v8049_v58, 0.0 }
 0x3cf   : > { %v2616_v27 = vsel %vm2467_vm7, %v2561_v50, 0.0  ;;  %v2517_v0 = vsel %vm2467_vm7, %v8056_v34, 0.0  ;;  %v2562_v14 = vmul.f32 %v8056_v34, %v8056_v34  ;;  %v2620_v8 = vsel %vm2467_vm7, %v2563_v51, 0.0 }
 0x3d0   : > { %v2518_v37 = vadd.f32 %v2517_v0, %v2516_v11  ;;  %v2617_v10 = vadd.f32 %v2616_v27, %v2615_v2  ;;  %v2622_v15 = vsel %vm2467_vm7, %v2564_v18, 0.0 }
 0x3d1   : > { %v2618_v44 = vsel %vm2467_vm7, %v2562_v14, 0.0  ;;  %v5826_v38 = vpop.f32.mrb[32].mxu0 }
 0x3d2   : > { %v2520_v20 = vadd.f32 %v2519_v47, %v2518_v37  ;;  %v8072_v3 = vadd.f32 %v5826_v38, %v7849_v25  ;;  %v2381_v21 = vpop.f32.mrb[33].mxu0  ;;  %v2619_v22 = vadd.f32 %v2618_v44, %v2617_v10 }
 0x3d3   : > { %v8077_v53 = vadd.f32 %v7849_v25, %v2381_v21  ;;  %v5827_v49 = vpop.f32.mrb[34].mxu0 }
 0x3d4   : > { %v2522_v16 = vadd.f32 %v2521_v63, %v2520_v20  ;;  %v8081_v4 = vadd.f32 %v5827_v49, %v7849_v25  ;;  %v2384_v52 = vpop.f32.mrb[35].mxu0  ;;  %v2621_v31 = vadd.f32 %v2620_v8, %v2619_v22  ;;  %v2567_v51 = vmul.f32 %v8072_v3, %v8072_v3 }
 0x3d5   : > { %v2523_v43 = vsel %vm2467_vm7, %v8077_v53, 0.0  ;;  %v2565_v17 = vmul.f32 %v8077_v53, %v8077_v53  ;;  %v8088_v50 = vadd.f32 %v7849_v25, %v2384_v52  ;;  %v2527_v25 = vsel %vm2467_vm7, %v8072_v3, 0.0 }
 0x3d6   : > { %v2524_v11 = vadd.f32 %v2523_v43, %v2522_v16  ;;  %v2623_v2 = vadd.f32 %v2622_v15, %v2621_v31  ;;  %v2529_v38 = vsel %vm2467_vm7, %v8081_v4, 0.0  ;;  %v2568_v18 = vmul.f32 %v8081_v4, %v8081_v4 }
 0x3d7   : > { %v2624_v27 = vsel %vm2467_vm7, %v2565_v17, 0.0  ;;  %v2525_v0 = vsel %vm2467_vm7, %v8088_v50, 0.0  ;;  %v2566_v14 = vmul.f32 %v8088_v50, %v8088_v50  ;;  %v2628_v21 = vsel %vm2467_vm7, %v2567_v51, 0.0 }
 0x3d8   : > { %v2526_v37 = vadd.f32 %v2525_v0, %v2524_v11  ;;  %v2625_v47 = vadd.f32 %v2624_v27, %v2623_v2  ;;  %v2630_v8 = vsel %vm2467_vm7, %v2568_v18, 0.0  ;;  %v6074_v18 = vld [vmem:[%s9620_s9 + $0x70] sm:$0xff]  }
 0x3d9   : > { %v2626_v10 = vsel %vm2467_vm7, %v2566_v14, 0.0 }
 0x3da   : > { %v2528_v44 = vadd.f32 %v2527_v25, %v2526_v37  ;;  %v2627_v20 = vadd.f32 %v2626_v10, %v2625_v47 }
 0x3dc   : > { %v2530_v63 = vadd.f32 %v2529_v38, %v2528_v44  ;;  %v2629_v22 = vadd.f32 %v2628_v21, %v2627_v20  ;;  %v6072_v44 = vld [vmem:[%s9620_s9 + $0x68] sm:$0xff]   ;;  %v6077_v20 = vld [vmem:[%s9620_s9 + $0xd0] sm:$0xff]   ;;  %v6076_v21 = vld [vmem:[%s9620_s9 + $0x78] sm:$0xff]  }
 0x3dd   : > { %v6075_v38 = vld [vmem:[%s9620_s9 + $0xc8] sm:$0xff]  }
 0x3de   : > { %v2531_v49 = vrot.slane %v2530_v63, 4  ;;  %v2631_v52 = vadd.f32 %v2630_v8, %v2629_v22  ;;  %v2796_v22 = vld [vmem:[%s9617_s6] sm:$0x1] }
 0x3df   : > { %v6078_v8 = vld [vmem:[%s9620_s9 + $0x80] sm:$0xff]  }
 0x3e0   : > { %v2532_v16 = vadd.f32 %v2531_v49, %v2530_v63  ;;  %v2632_v43 = vrot.slane %v2631_v52, 4  ;;  %v6079_v63 = vld [vmem:[%s9620_s9 + $0xd8] sm:$0xff]  }
 0x3e2   : > { %v2533_v31 = vrot.slane %v2532_v16, 2  ;;  %v2633_v11 = vadd.f32 %v2632_v43, %v2631_v52 }
 0x3e4   : > { %v2534_v17 = vadd.f32 %v2533_v31, %v2532_v16  ;;  %v2634_v27 = vrot.slane %v2633_v11, 2  ;;  %v6081_v16 = vld [vmem:[%s9620_s9 + $0xe0] sm:$0xff]  }
 0x3e5   : > { %v2798_v31 = vld [vmem:[%s9618_s7] sm:$0x1] }
 0x3e6   : > { %v2535_v15 = vrot.slane %v2534_v17, 1  ;;  %v2635_v0 = vadd.f32 %v2634_v27, %v2633_v11 }
 0x3e8   : > { %v2536_v2 = vadd.f32 %v2535_v15, %v2534_v17  ;;  %v2636_v14 = vrot.slane %v2635_v0, 1  ;;  %v6080_v15 = vld [vmem:[%s9620_s9 + $0x88] sm:$0xff]  }
 0x3ea   : > { %5845 = vmatmul.mubr.msk.f32.vlgmr.msra.gmra.mrb[2].mxu1 %vm2467_vm7, %v2536_v2  ;;  %v2637_v51 = vadd.f32 %v2636_v14, %v2635_v0  ;;  %v6083_v2 = vld [vmem:[%s9620_s9 + $0xe8] sm:$0xff]   ;;  %v6082_v14 = vld [vmem:[%s9620_s9 + $0x90] sm:$0xff]  }
 0x3eb   : > { %5928 = vmatpush3.bf16.msra.mxu1 %v7814_v9  ;;  %5863 = vmatprep.mubr.msk.f32.mxu1 %vm6470_vm0, %v7731_v13 }
 0x3ec   : > { %5929 = vmatprep.subr.bf16.mxu1 %v9641_v60 }
 0x3ef   : > { %5931 = vmatpush3.bf16.msra.mxu1 %v7820_v26  ;;  %v6071_v26 = vld [vmem:[%s9620_s9 + $0x60] sm:$0xff]  }
 0x3f0   : > { %5932 = vmatprep.subr.bf16.mxu1 %v9641_v60 }
 0x3f3   : > { %5934 = vmatpush3.bf16.msra.mxu1 %v7830_v5  ;;  %v6473_v5 = vmov 0  }
 0x3f4   : > { %5935 = vmatprep.subr.bf16.mxu1 %v9641_v60  ;;  %v6073_v60 = vld [vmem:[%s9620_s9 + $0xc0] sm:$0xff]   ;;  %4608 = vmatprep.subr.bf16.mxu0 %v6473_v5 }
 0x3f5   : > { %4609 = vmatpush1.bf16.msra.mxu0 %v6073_v60 }
 0x3f6   : > { %4610 = vmatprep.subr.bf16.mxu0 %v6473_v5 }
 0x3f7   : > { %5937 = vmatpush3.bf16.msra.mxu1 %v7840_v35 }
 0x3f8   : > { %3924 = vmatprep.subr.bf16.mxu1 %v6473_v5 }
 0x3f9   : > { %4611 = vmatpush1.bf16.msra.mxu0 %v6075_v38 }
 0x3fa   : > { %5864 = vmatmul.mubr.msk.f32.vlgmr.msra.gmra.mrb[4].mxu1 %vm2467_vm7, %v2637_v51  ;;  %4612 = vmatprep.subr.bf16.mxu0 %v6473_v5 }
 0x3fb   : > { %3925 = vmatpush1.bf16.msra.mxu1 %v6071_v26 }
 0x3fc   : > { %3926 = vmatprep.subr.bf16.mxu1 %v6473_v5 }
 0x3fd   : > { %4613 = vmatpush1.bf16.msra.mxu0 %v6077_v20 }
 0x3fe   : > { %4614 = vmatprep.subr.bf16.mxu0 %v6473_v5 }
 0x3ff   : > { %3927 = vmatpush1.bf16.msra.mxu1 %v6072_v44 }
 0x400   : > { %3928 = vmatprep.subr.bf16.mxu1 %v6473_v5 }
 0x401   : > { %4615 = vmatpush1.bf16.msra.mxu0 %v6079_v63  ;;  %v6086_v63 = vld [vmem:[%s9620_s9 + $0xa0] sm:$0xff]  }
 0x402   : > { %4616 = vmatprep.subr.bf16.mxu0 %v6473_v5 }
 0x403   : > { %3929 = vmatpush1.bf16.msra.mxu1 %v6074_v18 }
 0x404   : > { %3930 = vmatprep.subr.bf16.mxu1 %v6473_v5 }
 0x405   : > { %4617 = vmatpush1.bf16.msra.mxu0 %v6081_v16 }
 0x406   : > { %4618 = vmatprep.subr.bf16.mxu0 %v6473_v5 }
 0x407   : > { %3931 = vmatpush1.bf16.msra.mxu1 %v6076_v21 }
 0x408   : > { %3932 = vmatprep.subr.bf16.mxu1 %v6473_v5 }
 0x409   : > { %4619 = vmatpush1.bf16.msra.mxu0 %v6083_v2 }
 0x40a   : > { %4620 = vmatprep.subr.bf16.mxu0 %v6473_v5 }
 0x40b   : > { %3933 = vmatpush1.bf16.msra.mxu1 %v6078_v8 }
 0x40c   : > { %3934 = vmatprep.subr.bf16.mxu1 %v6473_v5 }
 0x40f   : > { %3935 = vmatpush1.bf16.msra.mxu1 %v6080_v15 }
 0x410   : > { %3936 = vmatprep.subr.bf16.mxu1 %v6473_v5 }
 0x413   : > { %3937 = vmatpush1.bf16.msra.mxu1 %v6082_v14 }
 0x414   : > { %3938 = vmatprep.subr.bf16.mxu1 %v6473_v5 }
 0x4bd   : > { %v2715_v9 = vpop.f32.mrb[2].mxu1 }
 0x4be   : > { %v5846_v13 = vpop.f32.mrb[3].mxu1  ;;  %v2792_v37 = vmul.f32 %v2715_v9, %v2715_v9 }
 0x4cd   : > { %v2788_v25 = vpop.f32.mrb[4].mxu1 }
 0x4ce   : > { %v2793_v47 = vsub.f32 %v2788_v25, %v2792_v37  ;;  %v5865_v10 = vpop.f32.mrb[5].mxu1 }
 0x4d0   : > { %v2794_v35 = vadd.f32 1e-06, %v2793_v47 }
 0x4d2   : > { %6239 = vrsqrt.f32 %v2794_v35 }
 0x4dc   : > { %v6240_v49 = vpop.eup %6239 }
 0x4dd   : > { %v2797_v52 = vmul.f32 %v6240_v49, %v2796_v22 }
 0x4df   : > { %v2799_v43 = vmul.f32 %v2797_v52, %v2715_v9  ;;  %v8165_v17 = vrot.slane %v2797_v52, %v6943_v57 }
 0x4e1   : > { %v2800_v11 = vsub.f32 %v2798_v31, %v2799_v43  ;;  %v2807_v27 = vmul.f32 %v8165_v17, %v7855_v55  ;;  %v2808_v0 = vmul.f32 %v8165_v17, %v7863_v46  ;;  %v2809_v9 = vmul.f32 %v8165_v17, %v7852_v32 }
 0x4e2   : > { %v2810_v13 = vmul.f32 %v8165_v17, %v7858_v39  ;;  %v2811_v55 = vmul.f32 %v8165_v17, %v7886_v61  ;;  %v2812_v46 = vmul.f32 %v8165_v17, %v7897_v33  ;;  %v2813_v37 = vmul.f32 %v8165_v17, %v7880_v42  ;;  %v6085_v39 = vld [vmem:[%s9620_s9 + $0xf0] sm:$0xff]  }
 0x4e3   : > { %v8183_v51 = vrot.slane %v2800_v11, %v6943_v57  ;;  %v2814_v57 = vmul.f32 %v8165_v17, %v7894_v54  ;;  %v2815_v32 = vmul.f32 %v8165_v17, %v7917_v28  ;;  %v2816_v61 = vmul.f32 %v8165_v17, %v7928_v12  ;;  %4621 = vmatpush1.bf16.msra.mxu0 %v6085_v39 }
 0x4e4   : > { %v2817_v33 = vmul.f32 %v8165_v17, %v7912_v29  ;;  %v2818_v42 = vmul.f32 %v8165_v17, %v7921_v56  ;;  %v2819_v54 = vmul.f32 %v8165_v17, %v7949_v48  ;;  %v2820_v28 = vmul.f32 %v8165_v17, %v7960_v36  ;;  %v6084_v56 = vld [vmem:[%s9620_s9 + $0x98] sm:$0xff]   ;;  %4622 = vmatprep.subr.bf16.mxu0 %v6473_v5 }
 0x4e5   : > { %v2821_v25 = vmul.f32 %v8165_v17, %v7944_v30  ;;  %v2822_v12 = vmul.f32 %v8165_v17, %v7953_v7  ;;  %v2823_v29 = vmul.f32 %v8165_v17, %v7981_v40  ;;  %v2824_v48 = vmul.f32 %v8165_v17, %v7992_v1  ;;  %3939 = vmatpush1.bf16.msra.mxu1 %v6084_v56 }
 0x4e6   : > { %v2825_v36 = vmul.f32 %v8165_v17, %v7976_v62  ;;  %v8228_v47 = vadd.f32 %v8183_v51, %v2808_v0  ;;  %v8231_v30 = vadd.f32 %v8183_v51, %v2807_v27  ;;  %v8235_v7 = vadd.f32 %v8183_v51, %v2810_v13  ;;  %v6087_v62 = vld [vmem:[%s9620_s9 + $0xf8] sm:$0xff]   ;;  %3940 = vmatprep.subr.bf16.mxu1 %v6473_v5  ;;  %v6088_v27 = vld [vmem:[%s9620_s9 + $0xa8] sm:$0xff]  }
 0x4e7   : > { %v8238_v40 = vadd.f32 %v8183_v51, %v2809_v9  ;;  %v8241_v10 = vadd.f32 %v8183_v51, %v2812_v46  ;;  %v8244_v1 = vadd.f32 %v8183_v51, %v2811_v55  ;;  %v8252_v35 = vadd.f32 %v8183_v51, %v2814_v57  ;;  %4623 = vmatpush1.bf16.msra.mxu0 %v6087_v62 }
 0x4e8   : > { %v5372_v26 = vmul.f32 -1.442695, %v8228_v47  ;;  %v5371_v60 = vmul.f32 -1.442695, %v8231_v30  ;;  %v8255_v44 = vadd.f32 %v8183_v51, %v2813_v37  ;;  %v2826_v38 = vmul.f32 %v8165_v17, %v7985_v45  ;;  %4624 = vmatprep.subr.bf16.mxu0 %v6473_v5 }
 0x4e9   : > { %v5374_v18 = vmul.f32 -1.442695, %v8235_v7  ;;  %v5373_v20 = vmul.f32 -1.442695, %v8238_v40  ;;  %v8263_v21 = vadd.f32 %v8183_v51, %v2816_v61  ;;  %v2827_v22 = vmul.f32 %v8165_v17, %v8013_v24  ;;  %3941 = vmatpush1.bf16.msra.mxu1 %v6086_v63 }
 0x4ea   : > { %6241 = vpow2.f32 %v5372_v26  ;;  %v5376_v49 = vmul.f32 -1.442695, %v8241_v10  ;;  %v5375_v45 = vmul.f32 -1.442695, %v8244_v1  ;;  %v5378_v8 = vmul.f32 -1.442695, %v8252_v35  ;;  %3942 = vmatprep.subr.bf16.mxu1 %v6473_v5 }
 0x4eb   : > { %6243 = vpow2.f32 %v5371_v60  ;;  %v8275_v16 = vadd.f32 %v8183_v51, %v2815_v32  ;;  %v8278_v52 = vadd.f32 %v8183_v51, %v2818_v42  ;;  %v8281_v24 = vadd.f32 %v8183_v51, %v2817_v33 }
 0x4ec   : > { %6245 = vpow2.f32 %v5374_v18  ;;  %v8284_v31 = vadd.f32 %v8183_v51, %v2820_v28  ;;  %v8287_v43 = vadd.f32 %v8183_v51, %v2819_v54  ;;  %v2828_v15 = vmul.f32 %v8165_v17, %v8024_v59 }
 0x4ed   : > { %6247 = vpow2.f32 %v5373_v20  ;;  %v5377_v11 = vmul.f32 -1.442695, %v8255_v44  ;;  %v8294_v2 = vadd.f32 %v8183_v51, %v2822_v12  ;;  %v2829_v0 = vmul.f32 %v8165_v17, %v8008_v19  ;;  %3943 = vmatpush1.bf16.msra.mxu1 %v6088_v27 }
 0x4ee   : > { %6249 = vpow2.f32 %v5376_v49  ;;  %v5380_v14 = vmul.f32 -1.442695, %v8263_v21  ;;  %v5379_v9 = vmul.f32 -1.442695, %v8275_v16  ;;  %v5382_v59 = vmul.f32 -1.442695, %v8278_v52  ;;  %3944 = vmatprep.subr.bf16.mxu1 %v6473_v5 }
 0x4ef   : > { %6251 = vpow2.f32 %v5375_v45  ;;  %v8306_v13 = vadd.f32 %v8183_v51, %v2821_v25  ;;  %v8309_v55 = vadd.f32 %v8183_v51, %v2824_v48  ;;  %v8312_v46 = vadd.f32 %v8183_v51, %v2823_v29 }
 0x4f0   : > { %6253 = vpow2.f32 %v5378_v8  ;;  %v8315_v19 = vadd.f32 %v8183_v51, %v2826_v38  ;;  %v8318_v37 = vadd.f32 %v8183_v51, %v2825_v36  ;;  %v2830_v57 = vmul.f32 %v8165_v17, %v8017_v41  ;;  %v6089_v8 = vld [vmem:[%s9620_s9 + $0x100] sm:$0xff]  }
 0x4f1   : > { %6255 = vpow2.f32 %v5377_v11  ;;  %v5381_v32 = vmul.f32 -1.442695, %v8281_v24  ;;  %v8324_v39 = vadd.f32 %v8183_v51, %v2828_v15  ;;  %v2831_v61 = vmul.f32 %v8165_v17, %v8045_v6  ;;  %v6090_v15 = vld [vmem:[%s9620_s9 + $0xb0] sm:$0xff]   ;;  %4625 = vmatpush1.bf16.msra.mxu0 %v6089_v8 }
 0x4f2   : > { %v2832_v33 = vmul.f32 %v8165_v17, %v8056_v34  ;;  %6257 = vpow2.f32 %v5380_v14  ;;  %v5384_v42 = vmul.f32 -1.442695, %v8284_v31  ;;  %v8333_v41 = vadd.f32 %v8183_v51, %v2827_v22  ;;  %3945 = vmatpush1.bf16.msra.mxu1 %v6090_v15  ;;  %4626 = vmatprep.subr.bf16.mxu0 %v6473_v5 }
 0x4f3   : > { %6259 = vpow2.f32 %v5379_v9  ;;  %v8336_v54 = vadd.f32 %v8183_v51, %v2830_v57  ;;  %v8339_v25 = vadd.f32 %v8183_v51, %v2829_v0  ;;  %v8345_v34 = vadd.f32 %v8183_v51, %v2831_v61  ;;  %3946 = vmatprep.subr.bf16.mxu1 %v6473_v5  ;;  %v6091_v61 = vld [vmem:[%s9620_s9 + $0x108] sm:$0xff]  }
 0x4f4   : > { %v6242_v28 = vpop.eup %6241  ;;  %6261 = vpow2.f32 %v5382_v59  ;;  %v8342_v6 = vadd.f32 %v8183_v51, %v2832_v33  ;;  %v2834_v29 = vmul.f32 %v8165_v17, %v8049_v58  ;;  %v2833_v36 = vmul.f32 %v8165_v17, %v8040_v23  ;;  %v6092_v33 = vld [vmem:[%s9620_s9 + $0xb8] sm:$0xff]  }
 0x4f5   : > { %v6244_v12 = vpop.eup %6243  ;;  %v2974_v56 = vadd.f32 1.0, %v6242_v28  ;;  %6263 = vpow2.f32 %v5381_v32  ;;  %v2836_v62 = vmul.f32 %v8165_v17, %v8088_v50  ;;  %v2835_v38 = vmul.f32 %v8165_v17, %v8077_v53  ;;  %4627 = vmatpush1.bf16.msra.mxu0 %v6091_v61 }
 0x4f6   : > { %v6246_v48 = vpop.eup %6245  ;;  %v2973_v26 = vadd.f32 1.0, %v6244_v12  ;;  %6265 = vpow2.f32 %v5384_v42  ;;  %v8356_v20 = vadd.f32 %v8183_v51, %v2834_v29  ;;  %v8359_v22 = vadd.f32 %v8183_v51, %v2833_v36  ;;  %3947 = vmatpush1.bf16.msra.mxu1 %v6092_v33  ;;  %4628 = vmatprep.subr.bf16.mxu0 %v6473_v5 }
 0x4f7   : > { %v6248_v60 = vpop.eup %6247  ;;  %6267 = vrcp.f32 %v2974_v56  ;;  %v2976_v18 = vadd.f32 1.0, %v6246_v48  ;;  %v8362_v23 = vadd.f32 %v8183_v51, %v2836_v62  ;;  %v2838_v49 = vmul.f32 %v8165_v17, %v8081_v4  ;;  %4205 = vmatprep.subr.bf16.mxu1 %v6473_v5 }
 0x4f8   : > { %v6250_v58 = vpop.eup %6249  ;;  %6269 = vrcp.f32 %v2973_v26  ;;  %v2975_v63 = vadd.f32 1.0, %v6248_v60  ;;  %v8367_v45 = vadd.f32 %v8183_v51, %v2835_v38  ;;  %v2837_v27 = vmul.f32 %v8165_v17, %v8072_v3 }
 0x4f9   : > { %v6252_v50 = vpop.eup %6251  ;;  %6271 = vrcp.f32 %v2976_v18  ;;  %v2978_v53 = vadd.f32 1.0, %v6250_v58  ;;  %v8378_v9 = vadd.f32 %v8183_v51, %v2838_v49  ;;  %v5383_v48 = vmul.f32 -1.442695, %v8287_v43  ;;  %v6093_v18 = vld [vmem:[%s9620_s9 + $0x110] sm:$0xff]  }
 0x4fa   : > { %v6254_v11 = vpop.eup %6253  ;;  %6273 = vrcp.f32 %v2975_v63  ;;  %v2977_v0 = vadd.f32 1.0, %v6252_v50  ;;  %v8381_v32 = vadd.f32 %v8183_v51, %v2837_v27  ;;  %v5386_v36 = vmul.f32 -1.442695, %v8294_v2  ;;  %4629 = vmatpush1.bf16.msra.mxu0 %v6093_v18 }
 0x4fb   : > { %v6256_v4 = vpop.eup %6255  ;;  %6275 = vrcp.f32 %v2978_v53  ;;  %v2980_v14 = vadd.f32 1.0, %v6254_v11  ;;  %v5385_v60 = vmul.f32 -1.442695, %v8306_v13  ;;  %v5388_v38 = vmul.f32 -1.442695, %v8309_v55  ;;  %4630 = vmatprep.subr.bf16.mxu0 %v6473_v5 }
 0x4fc   : > { %v6258_v59 = vpop.eup %6257  ;;  %6277 = vrcp.f32 %v2977_v0  ;;  %v2979_v57 = vadd.f32 1.0, %v6256_v4  ;;  %v5387_v50 = vmul.f32 -1.442695, %v8312_v46  ;;  %v8405_v49 = vmul.f32 -1.442695, %v8315_v19 }
 0x4fd   : > { %v6260_v3 = vpop.eup %6259  ;;  %6279 = vrcp.f32 %v2980_v14  ;;  %v2982_v17 = vadd.f32 1.0, %v6258_v59  ;;  %v8411_v15 = vmul.f32 -1.442695, %v8318_v37  ;;  %v8414_v11 = vmul.f32 -1.442695, %v8324_v39 }
 0x4fe   : > { %v6262_v42 = vpop.eup %6261  ;;  %6281 = vrcp.f32 %v2979_v57  ;;  %v2981_v28 = vadd.f32 1.0, %v6260_v3 }
 0x4ff   : > { %v6264_v51 = vpop.eup %6263  ;;  %6283 = vrcp.f32 %v2982_v17  ;;  %v2984_v12 = vadd.f32 1.0, %v6262_v42 }
 0x500   : > { %v6266_v29 = vpop.eup %6265  ;;  %6285 = vrcp.f32 %v2981_v28  ;;  %v2983_v56 = vadd.f32 1.0, %v6264_v51 }
 0x501   : > { %v6268_v62 = vpop.eup %6267  ;;  %6287 = vrcp.f32 %v2984_v12  ;;  %v2986_v26 = vadd.f32 1.0, %v6266_v29 }
 0x502   : > { %v6270_v58 = vpop.eup %6269  ;;  %v8401_v63 = vmul.f32 %v6268_v62, %v8228_v47  ;;  %6289 = vrcp.f32 %v2983_v56 }
 0x503   : > { %v6272_v53 = vpop.eup %6271  ;;  %v8408_v8 = vmul.f32 %v6270_v58, %v8231_v30  ;;  %6291 = vrcp.f32 %v2986_v26  ;;  %v8423_v30 = vmul.f32 -1.442695, %v8333_v41 }
 0x504   : > { %v6274_v47 = vpop.eup %6273  ;;  %3207 = vrot.lane.b32.xlu1 %v8401_v63, %s9642_s30  ;;  %v3451_v27 = vrot.slane %v8401_v63, 1  ;;  %v8420_v0 = vmul.f32 %v6272_v53, %v8235_v7  ;;  %6293 = vpow2.f32 %v5383_v48  ;;  %v3337_v14 = vrot.slane %v8401_v63, 7  ;;  %v6095_v7 = vld [vmem:[%s9620_s9 + $0x118] sm:$0xff]  }
 0x505   : > { %v6276_v4 = vpop.eup %6275  ;;  %3205 = vrot.lane.b32.xlu0 %v8408_v8, %s9642_s30  ;;  %v3450_v59 = vrot.slane %v8408_v8, 1  ;;  %v8431_v57 = vmul.f32 %v6274_v47, %v8238_v40  ;;  %6295 = vpow2.f32 %v5386_v36  ;;  %v3336_v17 = vrot.slane %v8408_v8, 7  ;;  %4631 = vmatpush1.bf16.msra.mxu0 %v6095_v7 }
 0x506   : > { %v6278_v3 = vpop.eup %6277  ;;  %3532 = vst.msk [vmem:[#allocation3 + $0x38] sm:$0x7f] %vm3531_vm8, %v3451_v27  ;;  %v3454_v61 = vrot.slane %v8420_v0, 1  ;;  %v8440_v33 = vmul.f32 %v6276_v4, %v8241_v10  ;;  %6297 = vpow2.f32 %v5385_v60  ;;  %v3340_v28 = vrot.slane %v8420_v0, 7 }
 0x507   : > { %v6280_v42 = vpop.eup %6279  ;;  %v3452_v40 = vsel %vm3449_vm9, %v3450_v59, %v3451_v27  ;;  %v3453_v51 = vrot.slane %v8431_v57, 1  ;;  %v8446_v12 = vmul.f32 %v6278_v3, %v8244_v1  ;;  %v3339_v10 = vrot.slane %v8431_v57, 7 }
 0x508   : > { %v6282_v29 = vpop.eup %6281  ;;  %3530 = vst.msk [vmem:[#allocation3 + $0x28] sm:$0xff] %vm2467_vm7, %v3452_v40  ;;  %3211 = vrot.lane.b32.xlu1 %v8420_v0, %s9642_s30  ;;  %v3457_v56 = vrot.slane %v8440_v33, 1  ;;  %v8455_v48 = vmul.f32 %v6280_v42, %v8252_v35  ;;  %6299 = vpow2.f32 %v5388_v38  ;;  %v3343_v62 = vrot.slane %v8440_v33, 7 }
 0x509   : > { %3534 = vst.msk [vmem:[#allocation3 + $0x58] sm:$0x7f] %vm3531_vm8, %v3454_v61  ;;  %v6284_v36 = vpop.eup %6283  ;;  %v3455_v1 = vsel %vm3449_vm9, %v3453_v51, %v3454_v61  ;;  %3209 = vrot.lane.b32.xlu0 %v8431_v57, %s9642_s30  ;;  %v3456_v26 = vrot.slane %v8446_v12, 1  ;;  %v8463_v60 = vmul.f32 %v6282_v29, %v8255_v44  ;;  %v3342_v35 = vrot.slane %v8446_v12, 7  ;;  %v6094_v57 = vld [vmem:[%s9620_s9] sm:$0xff]  }
 0x50a   : > { %v6286_v18 = vpop.eup %6285  ;;  %3533 = vst.msk [vmem:[#allocation3 + $0x48] sm:$0xff] %vm2467_vm7, %v3455_v1  ;;  %v3460_v38 = vrot.slane %v8455_v48, 1  ;;  %v8470_v58 = vmul.f32 %v6284_v36, %v8263_v21  ;;  %6301 = vpow2.f32 %v5387_v50  ;;  %v3346_v27 = vrot.slane %v8455_v48, 7 }
 0x50b   : > { %3536 = vst.msk [vmem:[#allocation3 + $0x78] sm:$0x7f] %vm3531_vm8, %v3457_v56  ;;  %v6288_v53 = vpop.eup %6287  ;;  %v3458_v47 = vsel %vm3449_vm9, %v3456_v26, %v3457_v56  ;;  %v3459_v44 = vrot.slane %v8463_v60, 1  ;;  %v8476_v4 = vmul.f32 %v6286_v18, %v8275_v16  ;;  %v3345_v21 = vrot.slane %v8463_v60, 7 }
 0x50c   : > { %v6290_v59 = vpop.eup %6289  ;;  %3215 = vrot.lane.b32.xlu1 %v8440_v33, %s9642_s30  ;;  %3535 = vst.msk [vmem:[#allocation3 + $0x68] sm:$0xff] %vm2467_vm7, %v3458_v47  ;;  %v3463_v50 = vrot.slane %v8470_v58, 1  ;;  %v8485_v7 = vmul.f32 %v6288_v53, %v8278_v52  ;;  %6303 = vpow2.f32 %v8405_v49  ;;  %v3349_v42 = vrot.slane %v8470_v58, 7 }
 0x50d   : > { %3538 = vst.msk [vmem:[#allocation3 + $0x98] sm:$0x7f] %vm3531_vm8, %v3460_v38  ;;  %v6292_v3 = vpop.eup %6291  ;;  %3213 = vrot.lane.b32.xlu0 %v8446_v12, %s9642_s30  ;;  %v3461_v16 = vsel %vm3449_vm9, %v3459_v44, %v3460_v38  ;;  %v3686_v61 = vld [vmem:[#allocation3 + $0x38] sm:$0xff]  ;;  %v3462_v40 = vrot.slane %v8476_v4, 1  ;;  %v8494_v51 = vmul.f32 %v6290_v59, %v8281_v24  ;;  %v3348_v52 = vrot.slane %v8476_v4, 7 }
 0x50e   : > { %v6294_v29 = vpop.eup %6293  ;;  %3537 = vst.msk [vmem:[#allocation3 + $0x88] sm:$0xff] %vm2467_vm7, %v3461_v16  ;;  %v3466_v49 = vrot.slane %v8485_v7, 1  ;;  %v8501_v56 = vmul.f32 %v6292_v3, %v8284_v31  ;;  %6305 = vpow2.f32 %v8411_v15  ;;  %v3352_v18 = vrot.slane %v8485_v7, 7 }
 0x50f   : > { %3540 = vst.msk [vmem:[#allocation3 + $0xb8] sm:$0x7f] %vm3531_vm8, %v3463_v50  ;;  %v6296_v36 = vpop.eup %6295  ;;  %v3684_v1 = vld [vmem:[#allocation3 + $0x28] sm:$0xff]  ;;  %v3464_v24 = vsel %vm3449_vm9, %v3462_v40, %v3463_v50  ;;  %v3465_v38 = vrot.slane %v8494_v51, 1  ;;  %v2985_v53 = vadd.f32 1.0, %v6294_v29  ;;  %v3351_v31 = vrot.slane %v8494_v51, 7 }
 0x510   : > { %v4370_v26 = vld [vmem:[#allocation3 + $0x58] sm:$0xff]  ;;  %v6298_v47 = vpop.eup %6297  ;;  %3219 = vrot.lane.b32.xlu1 %v8455_v48, %s9642_s30  ;;  %v3748_v44 = vpack.c.bf16 %v3686_v61, %v3684_v1  ;;  %3539 = vst.msk [vmem:[#allocation3 + $0xa8] sm:$0xff] %vm2467_vm7, %v3464_v24  ;;  %v3469_v15 = vrot.slane %v8501_v56, 1  ;;  %v2988_v59 = vadd.f32 1.0, %v6296_v36  ;;  %v8521_v48 = vsel %vm3335_vm10, %v3336_v17, %v3337_v14 }
 0x511   : > { %3542 = vst.msk [vmem:[#allocation3 + $0xd8] sm:$0x7f] %vm3531_vm8, %v3466_v49  ;;  %3217 = vrot.lane.b32.xlu0 %v8463_v60, %s9642_s30  ;;  %v4368_v50 = vld [vmem:[#allocation3 + $0x48] sm:$0xff]  ;;  %v3467_v3 = vsel %vm3449_vm9, %v3465_v38, %v3466_v49  ;;  %6307 = vrcp.f32 %v2985_v53  ;;  %v2987_v16 = vadd.f32 1.0, %v6298_v47  ;;  %v8535_v63 = vsel %vm3335_vm10, %v3339_v10, %v3340_v28  ;;  %v6097_v60 = vld [vmem:[%s9620_s9 + $0x10] sm:$0xff]  }
 0x512   : > { %v6300_v61 = vpop.eup %6299  ;;  %5439 = vmatprep.mubr.msk.bf16.mxu1 %vm2467_vm7, %v3748_v44  ;;  %v8524_v40 = vpack.c.bf16 %v4370_v26, %v4368_v50  ;;  %3541 = vst.msk [vmem:[#allocation3 + $0xc8] sm:$0xff] %vm2467_vm7, %v3467_v3  ;;  %6309 = vrcp.f32 %v2988_v59  ;;  %v8542_v14 = vsel %vm3335_vm10, %v3342_v35, %v3343_v62  ;;  %v8547_v49 = vsel %vm3335_vm10, %v3345_v21, %v3346_v27 }
 0x513   : > { %3544 = vst.msk [vmem:[#allocation3 + $0xf8] sm:$0x7f] %vm3531_vm8, %v3469_v15  ;;  %6311 = vrcp.f32 %v2987_v16  ;;  %v2990_v29 = vadd.f32 1.0, %v6300_v61  ;;  %v8552_v0 = vsel %vm3335_vm10, %v3348_v52, %v3349_v42  ;;  %v5394_v33 = vmul.f32 -1.442695, %v8336_v54 }
 0x514   : > { %v6302_v28 = vpop.eup %6301  ;;  %5519 = vmatprep.mubr.msk.bf16.mxu0 %vm2467_vm7, %v8524_v40  ;;  %3223 = vrot.lane.b32.xlu1 %v8470_v58, %s9642_s30  ;;  %6313 = vpow2.f32 %v8414_v11  ;;  %v8563_v62 = vsel %vm3335_vm10, %v3351_v31, %v3352_v18  ;;  %v5393_v36 = vmul.f32 -1.442695, %v8339_v25  ;;  %v5396_v1 = vmul.f32 -1.442695, %v8342_v6 }
 0x515   : > { %3221 = vrot.lane.b32.xlu0 %v8476_v4, %s9642_s30  ;;  %6315 = vrcp.f32 %v2990_v29  ;;  %v2989_v27 = vadd.f32 1.0, %v6302_v28  ;;  %v5395_v24 = vmul.f32 -1.442695, %v8345_v34  ;;  %v5397_v38 = vmul.f32 -1.442695, %v8359_v22  ;;  %v6098_v4 = vld [vmem:[%s9620_s9 + $0x18] sm:$0xff]  }
 0x516   : > { %v6304_v42 = vpop.eup %6303  ;;  %6317 = vpow2.f32 %v8423_v30  ;;  %v5398_v30 = vmul.f32 -1.442695, %v8356_v20  ;;  %v3355_v44 = vrot.slane %v8501_v56, 7  ;;  %v5400_v50 = vmul.f32 -1.442695, %v8362_v23 }
 0x517   : > { %6319 = vrcp.f32 %v2989_v27  ;;  %v2992_v58 = vadd.f32 1.0, %v6304_v42 }
 0x518   : > { %v6306_v11 = vpop.eup %6305  ;;  %3227 = vrot.lane.b32.xlu1 %v8485_v7, %s9642_s30  ;;  %6321 = vpow2.f32 %v5394_v33 }
 0x519   : > { %3225 = vrot.lane.b32.xlu0 %v8494_v51, %s9642_s30  ;;  %6323 = vrcp.f32 %v2992_v58  ;;  %v2991_v26 = vadd.f32 1.0, %v6306_v11  ;;  %v6099_v51 = vld [vmem:[%s9620_s9 + $0x20] sm:$0xff]  }
 0x51a   : > { %6325 = vpow2.f32 %v5393_v36 }
 0x51b   : > { %v6308_v18 = vpop.eup %6307  ;;  %6327 = vrcp.f32 %v2991_v26 }
 0x51c   : > { %v6310_v53 = vpop.eup %6309  ;;  %3231 = vrot.lane.b32.xlu1 %v8501_v56, %s9642_s30  ;;  %v8580_v7 = vmul.f32 %v6308_v18, %v8287_v43  ;;  %6329 = vpow2.f32 %v5396_v1 }
 0x51d   : > { %v6312_v47 = vpop.eup %6311  ;;  %v3084_v59 = vmul.f32 %v6310_v53, %v8294_v2  ;;  %6331 = vpow2.f32 %v5395_v24 }
 0x51e   : > { %v6314_v3 = vpop.eup %6313  ;;  %v3354_v16 = vrot.slane %v8580_v7, 7  ;;  %v3468_v61 = vrot.slane %v8580_v7, 1  ;;  %3229 = vrot.lane.b32.xlu0 %v8580_v7, %s9642_s30  ;;  %v8590_v43 = vmul.f32 %v6312_v47, %v8306_v13  ;;  %6333 = vpow2.f32 %v5398_v30  ;;  %v6100_v7 = vld [vmem:[%s9620_s9 + $0x28] sm:$0xff]  }
 0x51f   : > { %v6316_v29 = vpop.eup %6315  ;;  %v3358_v28 = vrot.slane %v3084_v59, 7  ;;  %v3472_v33 = vrot.slane %v3084_v59, 1  ;;  %v2994_v27 = vadd.f32 1.0, %v6314_v3  ;;  %6335 = vpow2.f32 %v5397_v38 }
 0x520   : > { %v6318_v2 = vpop.eup %6317  ;;  %v3470_v42 = vsel %vm3449_vm9, %v3468_v61, %v3469_v15  ;;  %3235 = vrot.lane.b32.xlu1 %v3084_v59, %s9642_s30  ;;  %v3357_v36 = vrot.slane %v8590_v43, 7  ;;  %v3471_v58 = vrot.slane %v8590_v43, 1  ;;  %v3086_v13 = vmul.f32 %v6316_v29, %v8309_v55 }
 0x521   : > { %v6320_v11 = vpop.eup %6319  ;;  %3543 = vst.msk [vmem:[#allocation3 + $0xe8] sm:$0xff] %vm2467_vm7, %v3470_v42  ;;  %6337 = vrcp.f32 %v2994_v27  ;;  %v2993_v1 = vadd.f32 1.0, %v6318_v2  ;;  %v8604_v56 = vsel %vm3335_vm10, %v3354_v16, %v3355_v44  ;;  %v5399_v30 = vmul.f32 -1.442695, %v8367_v45 }
 0x522   : > { %3546 = vst.msk [vmem:[#allocation3 + $0x118] sm:$0x7f] %vm3531_vm8, %v3472_v33  ;;  %v6322_v15 = vpop.eup %6321  ;;  %v3473_v26 = vsel %vm3449_vm9, %v3471_v58, %v3472_v33  ;;  %3233 = vrot.lane.b32.xlu0 %v8590_v43, %s9642_s30  ;;  %v3475_v24 = vrot.slane %v3086_v13, 1  ;;  %v8610_v55 = vmul.f32 %v6320_v11, %v8312_v46  ;;  %v3361_v38 = vrot.slane %v3086_v13, 7  ;;  %v6101_v43 = vld [vmem:[%s9620_s9 + $0x30] sm:$0xff]  }
 0x523   : > { %v6324_v18 = vpop.eup %6323  ;;  %3545 = vst.msk [vmem:[#allocation3 + $0x108] sm:$0xff] %vm2467_vm7, %v3473_v26  ;;  %6339 = vrcp.f32 %v2993_v1  ;;  %v2996_v53 = vadd.f32 1.0, %v6322_v15  ;;  %v8617_v47 = vsel %vm3335_vm10, %v3357_v36, %v3358_v28 }
 0x524   : > { %v6326_v44 = vpop.eup %6325  ;;  %3548 = vst.msk [vmem:[#allocation3 + $0x138] sm:$0x7f] %vm3531_vm8, %v3475_v24  ;;  %3239 = vrot.lane.b32.xlu1 %v3086_v13, %s9642_s30  ;;  %v3360_v46 = vrot.slane %v8610_v55, 7  ;;  %v3474_v59 = vrot.slane %v8610_v55, 1  ;;  %v3088_v3 = vmul.f32 %v6324_v18, %v8315_v19  ;;  %6341 = vpow2.f32 %v5400_v50 }
 0x525   : > { %v6328_v61 = vpop.eup %6327  ;;  %6343 = vrcp.f32 %v2996_v53  ;;  %v2995_v29 = vadd.f32 1.0, %v6326_v44  ;;  %v5401_v18 = vmul.f32 -1.442695, %v8381_v32 }
 0x526   : > { %v6330_v33 = vpop.eup %6329  ;;  %v3476_v27 = vsel %vm3449_vm9, %v3474_v59, %v3475_v24  ;;  %3237 = vrot.lane.b32.xlu0 %v8610_v55, %s9642_s30  ;;  %v3364_v28 = vrot.slane %v3088_v3, 7  ;;  %v3478_v2 = vrot.slane %v3088_v3, 1  ;;  %v8628_v42 = vmul.f32 %v6328_v61, %v8318_v37  ;;  %v6102_v55 = vld [vmem:[%s9620_s9 + $0x38] sm:$0xff]  }
 0x527   : > { %v6332_v58 = vpop.eup %6331  ;;  %3547 = vst.msk [vmem:[#allocation3 + $0x128] sm:$0xff] %vm2467_vm7, %v3476_v27  ;;  %6345 = vrcp.f32 %v2995_v29  ;;  %v2998_v19 = vadd.f32 1.0, %v6330_v33  ;;  %v8634_v50 = vsel %vm3335_vm10, %v3360_v46, %v3361_v38  ;;  %v5402_v24 = vmul.f32 -1.442695, %v8378_v9 }
 0x528   : > { %v6334_v13 = vpop.eup %6333  ;;  %3550 = vst.msk [vmem:[#allocation3 + $0x158] sm:$0x7f] %vm3531_vm8, %v3478_v2  ;;  %3243 = vrot.lane.b32.xlu1 %v3088_v3, %s9642_s30  ;;  %v3363_v11 = vrot.slane %v8628_v42, 7  ;;  %v3477_v37 = vrot.slane %v8628_v42, 1  ;;  %v2997_v1 = vadd.f32 1.0, %v6332_v58  ;;  %6347 = vpow2.f32 %v5399_v30 }
 0x529   : > { %v6336_v15 = vpop.eup %6335  ;;  %6349 = vrcp.f32 %v2998_v19  ;;  %v3000_v26 = vadd.f32 1.0, %v6334_v13 }
 0x52a   : > { %v3479_v38 = vsel %vm3449_vm9, %v3477_v37, %v3478_v2  ;;  %3241 = vrot.lane.b32.xlu0 %v8628_v42, %s9642_s30  ;;  %6351 = vrcp.f32 %v2997_v1  ;;  %v2999_v53 = vadd.f32 1.0, %v6336_v15  ;;  %v8648_v44 = vsel %vm3335_vm10, %v3363_v11, %v3364_v28 }
 0x52b   : > { %v6338_v30 = vpop.eup %6337  ;;  %3549 = vst.msk [vmem:[#allocation3 + $0x148] sm:$0xff] %vm2467_vm7, %v3479_v38  ;;  %6353 = vrcp.f32 %v3000_v26 }
 0x52c   : > { %v3090_v59 = vmul.f32 %v6338_v30, %v8324_v39  ;;  %6355 = vrcp.f32 %v2999_v53 }
 0x52d   : > { %v6340_v3 = vpop.eup %6339  ;;  %6357 = vpow2.f32 %v5402_v24 }
 0x52e   : > { %v6342_v61 = vpop.eup %6341  ;;  %v3481_v29 = vrot.slane %v3090_v59, 1  ;;  %3247 = vrot.lane.b32.xlu1 %v3090_v59, %s9642_s30  ;;  %v8654_v33 = vmul.f32 %v6340_v3, %v8333_v41  ;;  %6359 = vpow2.f32 %v5401_v18  ;;  %v3367_v28 = vrot.slane %v3090_v59, 7 }
 0x52f   : > { %v6344_v27 = vpop.eup %6343  ;;  %v3002_v2 = vadd.f32 1.0, %v6342_v61 }
 0x530   : > { %3552 = vst.msk [vmem:[#allocation3 + $0x178] sm:$0x7f] %vm3531_vm8, %v3481_v29  ;;  %v3366_v58 = vrot.slane %v8654_v33, 7  ;;  %v3480_v39 = vrot.slane %v8654_v33, 1  ;;  %3245 = vrot.lane.b32.xlu0 %v8654_v33, %s9642_s30  ;;  %v3092_v19 = vmul.f32 %v6344_v27, %v8336_v54 }
 0x531   : > { %v6346_v13 = vpop.eup %6345  ;;  %6361 = vrcp.f32 %v3002_v2 }
 0x532   : > { %v6348_v37 = vpop.eup %6347  ;;  %v3482_v41 = vsel %vm3449_vm9, %v3480_v39, %v3481_v29  ;;  %v3484_v1 = vrot.slane %v3092_v19, 1  ;;  %3251 = vrot.lane.b32.xlu1 %v3092_v19, %s9642_s30  ;;  %v8665_v15 = vmul.f32 %v6346_v13, %v8339_v25  ;;  %v3370_v24 = vrot.slane %v3092_v19, 7 }
 0x533   : > { %v6350_v26 = vpop.eup %6349  ;;  %3551 = vst.msk [vmem:[#allocation3 + $0x168] sm:$0xff] %vm2467_vm7, %v3482_v41  ;;  %v3001_v18 = vadd.f32 1.0, %v6348_v37  ;;  %v8671_v54 = vsel %vm3335_vm10, %v3366_v58, %v3367_v28 }
 0x534   : > { %v6352_v38 = vpop.eup %6351  ;;  %3554 = vst.msk [vmem:[#allocation3 + $0x198] sm:$0x7f] %vm3531_vm8, %v3484_v1  ;;  %v3369_v53 = vrot.slane %v8665_v15, 7  ;;  %v3483_v30 = vrot.slane %v8665_v15, 1  ;;  %3249 = vrot.lane.b32.xlu0 %v8665_v15, %s9642_s30  ;;  %v3094_v25 = vmul.f32 %v6350_v26, %v8342_v6 }
 0x535   : > { %v6354_v59 = vpop.eup %6353  ;;  %v8680_v3 = vmul.f32 %v6352_v38, %v8345_v34  ;;  %6363 = vrcp.f32 %v3001_v18 }
 0x536   : > { %v6356_v61 = vpop.eup %6355  ;;  %v3485_v29 = vsel %vm3449_vm9, %v3483_v30, %v3484_v1  ;;  %v3373_v27 = vrot.slane %v3094_v25, 7  ;;  %v3487_v28 = vrot.slane %v3094_v25, 1  ;;  %3255 = vrot.lane.b32.xlu1 %v3094_v25, %s9642_s30  ;;  %v3096_v2 = vmul.f32 %v6354_v59, %v8356_v20 }
 0x537   : > { %v6358_v39 = vpop.eup %6357  ;;  %3553 = vst.msk [vmem:[#allocation3 + $0x188] sm:$0xff] %vm2467_vm7, %v3485_v29  ;;  %v3372_v19 = vrot.slane %v8680_v3, 7  ;;  %v3486_v6 = vrot.slane %v8680_v3, 1  ;;  %v8689_v34 = vmul.f32 %v6356_v61, %v8359_v22  ;;  %v8694_v13 = vsel %vm3335_vm10, %v3369_v53, %v3370_v24 }
 0x538   : > { %v6360_v37 = vpop.eup %6359  ;;  %3556 = vst.msk [vmem:[#allocation3 + $0x1b8] sm:$0x7f] %vm3531_vm8, %v3487_v28  ;;  %3253 = vrot.lane.b32.xlu0 %v8680_v3, %s9642_s30  ;;  %v3376_v20 = vrot.slane %v3096_v2, 7  ;;  %v3490_v41 = vrot.slane %v3096_v2, 1  ;;  %v3004_v1 = vadd.f32 1.0, %v6358_v39 }
 0x539   : > { %v3488_v26 = vsel %vm3449_vm9, %v3486_v6, %v3487_v28  ;;  %v3375_v18 = vrot.slane %v8689_v34, 7  ;;  %v3489_v22 = vrot.slane %v8689_v34, 1  ;;  %v3003_v38 = vadd.f32 1.0, %v6360_v37 }
 0x53a   : > { %3555 = vst.msk [vmem:[#allocation3 + $0x1a8] sm:$0xff] %vm2467_vm7, %v3488_v26  ;;  %3259 = vrot.lane.b32.xlu1 %v3096_v2, %s9642_s30  ;;  %6365 = vrcp.f32 %v3004_v1  ;;  %v8708_v24 = vsel %vm3335_vm10, %v3372_v19, %v3373_v27 }
 0x53b   : > { %3558 = vst.msk [vmem:[#allocation3 + $0x1d8] sm:$0x7f] %vm3531_vm8, %v3490_v41  ;;  %v6362_v30 = vpop.eup %6361  ;;  %v3491_v25 = vsel %vm3449_vm9, %v3489_v22, %v3490_v41  ;;  %6367 = vrcp.f32 %v3003_v38  ;;  %v8714_v59 = vsel %vm3335_vm10, %v3375_v18, %v3376_v20 }
 0x53c   : > { %3557 = vst.msk [vmem:[#allocation3 + $0x1c8] sm:$0xff] %vm2467_vm7, %v3491_v25  ;;  %3257 = vrot.lane.b32.xlu0 %v8689_v34, %s9642_s30  ;;  %v3098_v61 = vmul.f32 %v6362_v30, %v8362_v23  ;;  %v4398_v34 = vld [vmem:[#allocation3 + $0x138] sm:$0xff] }
 0x53e   : > { %v3493_v29 = vrot.slane %v3098_v61, 1  ;;  %3263 = vrot.lane.b32.xlu1 %v3098_v61, %s9642_s30  ;;  %v3379_v28 = vrot.slane %v3098_v61, 7 }
 0x53f   : > { %v6364_v27 = vpop.eup %6363 }
 0x540   : > { %3560 = vst.msk [vmem:[#allocation3 + $0x1f8] sm:$0x7f] %vm3531_vm8, %v3493_v29  ;;  %v8723_v2 = vmul.f32 %v6364_v27, %v8367_v45 }
 0x542   : > { %v3378_v39 = vrot.slane %v8723_v2, 7  ;;  %v3492_v6 = vrot.slane %v8723_v2, 1  ;;  %3261 = vrot.lane.b32.xlu0 %v8723_v2, %s9642_s30  ;;  %v4400_v2 = vld [vmem:[#allocation3 + $0x148] sm:$0xff] }
 0x544   : > { %v6366_v37 = vpop.eup %6365  ;;  %v3494_v23 = vsel %vm3449_vm9, %v3492_v6, %v3493_v29  ;;  %v8733_v20 = vsel %vm3335_vm10, %v3378_v39, %v3379_v28 }
 0x545   : > { %v6368_v41 = vpop.eup %6367  ;;  %3559 = vst.msk [vmem:[#allocation3 + $0x1e8] sm:$0xff] %vm2467_vm7, %v3494_v23  ;;  %v3100_v45 = vmul.f32 %v6366_v37, %v8378_v9  ;;  %v4372_v23 = vld [vmem:[#allocation3 + $0x68] sm:$0xff] }
 0x546   : > { %v8738_v1 = vmul.f32 %v6368_v41, %v8381_v32  ;;  %v4374_v41 = vld [vmem:[#allocation3 + $0x78] sm:$0xff] }
 0x547   : > { %v3382_v26 = vrot.slane %v3100_v45, 7  ;;  %v3496_v22 = vrot.slane %v3100_v45, 1  ;;  %3267 = vrot.lane.b32.xlu1 %v3100_v45, %s9642_s30 }
 0x548   : > { %v3381_v38 = vrot.slane %v8738_v1, 7  ;;  %v3495_v30 = vrot.slane %v8738_v1, 1  ;;  %3265 = vrot.lane.b32.xlu0 %v8738_v1, %s9642_s30  ;;  %v4406_v1 = vld [vmem:[#allocation3 + $0x178] sm:$0xff] }
 0x549   : > { %3562 = vst.msk [vmem:[#allocation3 + $0x218] sm:$0x7f] %vm3531_vm8, %v3496_v22 }
 0x54a   : > { %v3497_v25 = vsel %vm3449_vm9, %v3495_v30, %v3496_v22  ;;  %v8750_v9 = vsel %vm3335_vm10, %v3381_v38, %v3382_v26  ;;  %v8801_v26 = vpack.c.bf16 %v4374_v41, %v4372_v23  ;;  %v4386_v23 = vld [vmem:[#allocation3 + $0xd8] sm:$0xff] }
 0x54b   : > { %3561 = vst.msk [vmem:[#allocation3 + $0x208] sm:$0xff] %vm2467_vm7, %v3497_v25 }
 0x576   : > { %v3208_v32 = vpop.permute.xlu1 %3207 }
 0x577   : > { %3304 = vst.msk [vmem:[#allocation3 + $0x30] sm:$0xff] %vm3302_vm11, %v3208_v32  ;;  %v3206_v61 = vpop.permute.xlu0 %3205  ;;  %v4376_v32 = vld [vmem:[#allocation3 + $0x88] sm:$0xff] }
 0x578   : > { %3418 = vst.msk [vmem:[#allocation3 + $0x30] sm:$0xff] %vm2467_vm7, %v8521_v48 }
 0x579   : > { %3303 = vst.msk [vmem:[#allocation3 + $0x20] sm:$0xff] %vm3302_vm11, %v3206_v61  ;;  %v4378_v61 = vld [vmem:[#allocation3 + $0x98] sm:$0xff] }
 0x57a   : > { %3417 = vst.msk [vmem:[#allocation3 + $0x20] sm:$0xfe] %vm3416_vm12, %v3336_v17  ;;  %v3212_v29 = vpop.permute.xlu1 %3211  ;;  %v8771_v17 = vld [vmem:[%s9622_s11] sm:$0xff]  }
 0x57b   : > { %3306 = vst.msk [vmem:[#allocation3 + $0x50] sm:$0xff] %vm3302_vm11, %v3212_v29  ;;  %v3210_v27 = vpop.permute.xlu0 %3209  ;;  %5866 = vmatprep.subr.bf16.mxu0 %v8771_v17  ;;  %v8841_v29 = vpack.c.bf16 %v4378_v61, %v4376_v32  ;;  %v4394_v61 = vld [vmem:[#allocation3 + $0x118] sm:$0xff] }
 0x57c   : > { %3420 = vst.msk [vmem:[#allocation3 + $0x50] sm:$0xff] %vm2467_vm7, %v8535_v63 }
 0x57d   : > { %3305 = vst.msk [vmem:[#allocation3 + $0x40] sm:$0xff] %vm3302_vm11, %v3210_v27 }
 0x57e   : > { %3419 = vst.msk [vmem:[#allocation3 + $0x40] sm:$0xfe] %vm3416_vm12, %v3339_v10  ;;  %v3216_v48 = vpop.permute.xlu1 %3215 }
 0x57f   : > { %3308 = vst.msk [vmem:[#allocation3 + $0x70] sm:$0xff] %vm3302_vm11, %v3216_v48  ;;  %v3214_v28 = vpop.permute.xlu0 %3213  ;;  %v3685_v8 = vld [vmem:[#allocation3 + $0x30] sm:$0xff] }
 0x580   : > { %3422 = vst.msk [vmem:[#allocation3 + $0x70] sm:$0xff] %vm2467_vm7, %v8542_v14 }
 0x581   : > { %3307 = vst.msk [vmem:[#allocation3 + $0x60] sm:$0xff] %vm3302_vm11, %v3214_v28  ;;  %v3683_v63 = vld [vmem:[#allocation3 + $0x20] sm:$0xff]  ;;  %v4380_v28 = vld [vmem:[#allocation3 + $0xa8] sm:$0xff] }
 0x582   : > { %3421 = vst.msk [vmem:[#allocation3 + $0x60] sm:$0xfe] %vm3416_vm12, %v3342_v35  ;;  %v8782_v10 = vpack.c.bf16 %v3685_v8, %v3683_v63  ;;  %v3220_v6 = vpop.permute.xlu1 %3219  ;;  %v6096_v35 = vld [vmem:[%s9620_s9 + $0x8] sm:$0xff]   ;;  %v4382_v8 = vld [vmem:[#allocation3 + $0xb8] sm:$0xff] }
 0x583   : > { %3310 = vst.msk [vmem:[#allocation3 + $0x90] sm:$0xff] %vm3302_vm11, %v3220_v6  ;;  %v3218_v37 = vpop.permute.xlu0 %3217  ;;  %v4369_v14 = vld [vmem:[#allocation3 + $0x50] sm:$0xff] }
 0x584   : > { %3957 = vmatmul.mubr.bf16.vlgmr.msra.gmra.mrb[8].mxu1 %v8782_v10  ;;  %3424 = vst.msk [vmem:[#allocation3 + $0x90] sm:$0xff] %vm2467_vm7, %v8547_v49 }
 0x585   : > { %3309 = vst.msk [vmem:[#allocation3 + $0x80] sm:$0xff] %vm3302_vm11, %v3218_v37  ;;  %4206 = vmatpush1.bf16.msra.mxu1 %v6094_v57  ;;  %5440 = vmatprep.mubr.msk.bf16.mxu1 %vm2467_vm7, %v8524_v40  ;;  %v4367_v12 = vld [vmem:[#allocation3 + $0x40] sm:$0xff]  ;;  %v8806_v40 = vld [vmem:[%s9622_s11 + $0x8] sm:$0xff]   ;;  %v8873_v57 = vpack.c.bf16 %v4382_v8, %v4380_v28 }
 0x586   : > { %3423 = vst.msk [vmem:[#allocation3 + $0x80] sm:$0xfe] %vm3416_vm12, %v3345_v21  ;;  %v8798_v45 = vpack.c.bf16 %v4369_v14, %v4367_v12  ;;  %4207 = vmatprep.subr.bf16.mxu1 %v6473_v5  ;;  %v3224_v49 = vpop.permute.xlu1 %3223  ;;  %v4384_v14 = vld [vmem:[#allocation3 + $0xc8] sm:$0xff] }
 0x587   : > { %3312 = vst.msk [vmem:[#allocation3 + $0xb0] sm:$0xff] %vm3302_vm11, %v3224_v49  ;;  %v3222_v22 = vpop.permute.xlu0 %3221  ;;  %v4373_v30 = vld [vmem:[#allocation3 + $0x70] sm:$0xff] }
 0x588   : > { %4641 = vmatmul.mubr.bf16.vlgmr.msra.gmra.mrb[36].mxu0 %v8798_v45  ;;  %3426 = vst.msk [vmem:[#allocation3 + $0xb0] sm:$0xff] %vm2467_vm7, %v8552_v0 }
 0x589   : > { %3311 = vst.msk [vmem:[#allocation3 + $0xa0] sm:$0xff] %vm3302_vm11, %v3222_v22  ;;  %5520 = vmatprep.mubr.msk.bf16.mxu0 %vm2467_vm7, %v8801_v26  ;;  %4208 = vmatpush1.bf16.msra.mxu1 %v6096_v35  ;;  %v4371_v0 = vld [vmem:[#allocation3 + $0x60] sm:$0xff]  ;;  %v4388_v22 = vld [vmem:[#allocation3 + $0xe8] sm:$0xff] }
 0x58a   : > { %3425 = vst.msk [vmem:[#allocation3 + $0xa0] sm:$0xfe] %vm3416_vm12, %v3348_v52  ;;  %4209 = vmatprep.subr.bf16.mxu1 %v6473_v5  ;;  %5867 = vmatpush3.bf16.msra.mxu0 %v8771_v17  ;;  %v3228_v21 = vpop.permute.xlu1 %3227  ;;  %v8837_v52 = vpack.c.bf16 %v4373_v30, %v4371_v0  ;;  %v6103_v35 = vld [vmem:[%s9620_s9 + $0x40] sm:$0xff]  }
 0x58b   : > { %5868 = vmatprep.subr.bf16.mxu0 %v8806_v40  ;;  %3314 = vst.msk [vmem:[#allocation3 + $0xd0] sm:$0xff] %vm3302_vm11, %v3228_v21  ;;  %v3226_v25 = vpop.permute.xlu0 %3225 }
 0x58c   : > { %3965 = vmatmul.mubr.bf16.gmra.mrb[12].mxu1 %v8798_v45  ;;  %3428 = vst.msk [vmem:[#allocation3 + $0xd0] sm:$0xff] %vm2467_vm7, %v8563_v62 }
 0x58d   : > { %3313 = vst.msk [vmem:[#allocation3 + $0xc0] sm:$0xff] %vm3302_vm11, %v3226_v25  ;;  %5441 = vmatprep.mubr.msk.bf16.mxu1 %vm2467_vm7, %v8801_v26  ;;  %4210 = vmatpush1.bf16.msra.mxu1 %v6097_v60  ;;  %v4375_v48 = vld [vmem:[#allocation3 + $0x80] sm:$0xff]  ;;  %v4390_v60 = vld [vmem:[#allocation3 + $0xf8] sm:$0xff] }
 0x58e   : > { %3427 = vst.msk [vmem:[#allocation3 + $0xc0] sm:$0xfe] %vm3416_vm12, %v3351_v31  ;;  %4211 = vmatprep.subr.bf16.mxu1 %v6473_v5  ;;  %5869 = vmatpush3.bf16.msra.mxu0 %v8806_v40  ;;  %v3232_v62 = vpop.permute.xlu1 %3231 }
 0x58f   : > { %3316 = vst.msk [vmem:[#allocation3 + $0xf0] sm:$0xff] %vm3302_vm11, %v3232_v62 }
 0x590   : > { %4649 = vmatmul.mubr.bf16.gmra.mrb[40].mxu0 %v8837_v52  ;;  %3430 = vst.msk [vmem:[#allocation3 + $0xf0] sm:$0xff] %vm2467_vm7, %v8604_v56  ;;  %v3230_v27 = vpop.permute.xlu0 %3229  ;;  %v4377_v56 = vld [vmem:[#allocation3 + $0x90] sm:$0xff] }
 0x591   : > { %5521 = vmatprep.mubr.msk.bf16.mxu0 %vm2467_vm7, %v8841_v29  ;;  %4212 = vmatpush1.bf16.msra.mxu1 %v6098_v4  ;;  %3315 = vst.msk [vmem:[#allocation3 + $0xe0] sm:$0xff] %vm3302_vm11, %v3230_v27  ;;  %v4379_v37 = vld [vmem:[#allocation3 + $0xa0] sm:$0xff] }
 0x592   : > { %4213 = vmatprep.subr.bf16.mxu1 %v6473_v5  ;;  %3429 = vst.msk [vmem:[#allocation3 + $0xe0] sm:$0xfe] %vm3416_vm12, %v3354_v16  ;;  %v3236_v31 = vpop.permute.xlu1 %3235  ;;  %v8867_v16 = vpack.c.bf16 %v4377_v56, %v4375_v48 }
 0x593   : > { %3318 = vst.msk [vmem:[#allocation3 + $0x110] sm:$0xff] %vm3302_vm11, %v3236_v31  ;;  %v4385_v49 = vld [vmem:[#allocation3 + $0xd0] sm:$0xff] }
 0x594   : > { %3973 = vmatmul.mubr.bf16.gmra.mrb[16].mxu1 %v8837_v52  ;;  %3432 = vst.msk [vmem:[#allocation3 + $0x110] sm:$0xff] %vm2467_vm7, %v8617_v47  ;;  %v3234_v63 = vpop.permute.xlu0 %3233 }
 0x595   : > { %5442 = vmatprep.mubr.msk.bf16.mxu1 %vm2467_vm7, %v8841_v29  ;;  %4214 = vmatpush1.bf16.msra.mxu1 %v6099_v51  ;;  %3317 = vst.msk [vmem:[#allocation3 + $0x100] sm:$0xff] %vm3302_vm11, %v3234_v63  ;;  %v4396_v51 = vld [vmem:[#allocation3 + $0x128] sm:$0xff] }
 0x596   : > { %4215 = vmatprep.subr.bf16.mxu1 %v6473_v5  ;;  %3431 = vst.msk [vmem:[#allocation3 + $0x100] sm:$0xfe] %vm3416_vm12, %v3357_v36  ;;  %v3240_v47 = vpop.permute.xlu1 %3239  ;;  %v8987_v48 = vpack.c.bf16 %v4398_v34, %v4396_v51  ;;  %v4428_v51 = vld [vmem:[#allocation3 + $0x228] sm:$0xff]  ;;  %v4430_v34 = vld [vmem:[#allocation3 + $0x238] sm:$0xff] }
 0x597   : > { %3320 = vst.msk [vmem:[#allocation3 + $0x130] sm:$0xff] %vm3302_vm11, %v3240_v47  ;;  %v4389_v32 = vld [vmem:[#allocation3 + $0xf0] sm:$0xff] }
 0x598   : > { %4657 = vmatmul.mubr.bf16.gmra.mrb[44].mxu0 %v8867_v16  ;;  %3434 = vst.msk [vmem:[#allocation3 + $0x130] sm:$0xff] %vm2467_vm7, %v8634_v50  ;;  %v3238_v6 = vpop.permute.xlu0 %3237  ;;  %v4381_v50 = vld [vmem:[#allocation3 + $0xb0] sm:$0xff] }
 0x599   : > { %5522 = vmatprep.mubr.msk.bf16.mxu0 %vm2467_vm7, %v8873_v57  ;;  %4216 = vmatpush1.bf16.msra.mxu1 %v6100_v7  ;;  %3319 = vst.msk [vmem:[#allocation3 + $0x120] sm:$0xff] %vm3302_vm11, %v3238_v6  ;;  %v4387_v15 = vld [vmem:[#allocation3 + $0xe0] sm:$0xff]  ;;  %v4404_v6 = vld [vmem:[#allocation3 + $0x168] sm:$0xff] }
 0x59a   : > { %4217 = vmatprep.subr.bf16.mxu1 %v6473_v5  ;;  %3433 = vst.msk [vmem:[#allocation3 + $0x120] sm:$0xfe] %vm3416_vm12, %v3360_v46  ;;  %v3244_v36 = vpop.permute.xlu1 %3243  ;;  %v8899_v46 = vpack.c.bf16 %v4381_v50, %v4379_v37  ;;  %v8960_v62 = vpack.c.bf16 %v4389_v32, %v4387_v15  ;;  %v4408_v50 = vld [vmem:[#allocation3 + $0x188] sm:$0xff]  ;;  %v4422_v32 = vld [vmem:[#allocation3 + $0x1f8] sm:$0xff] }
 0x59b   : > { %3322 = vst.msk [vmem:[#allocation3 + $0x150] sm:$0xff] %vm3302_vm11, %v3244_v36  ;;  %v4420_v15 = vld [vmem:[#allocation3 + $0x1e8] sm:$0xff] }
 0x59c   : > { %3981 = vmatmul.mubr.bf16.gmra.mrb[20].mxu1 %v8867_v16  ;;  %3436 = vst.msk [vmem:[#allocation3 + $0x150] sm:$0xff] %vm2467_vm7, %v8648_v44  ;;  %v3242_v41 = vpop.permute.xlu0 %3241  ;;  %v8905_v44 = vpack.c.bf16 %v4386_v23, %v4384_v14  ;;  %v4410_v14 = vld [vmem:[#allocation3 + $0x198] sm:$0xff] }
 0x59d   : > { %5443 = vmatprep.mubr.msk.bf16.mxu1 %vm2467_vm7, %v8873_v57  ;;  %4218 = vmatpush1.bf16.msra.mxu1 %v6101_v43  ;;  %3321 = vst.msk [vmem:[#allocation3 + $0x140] sm:$0xff] %vm3302_vm11, %v3242_v41  ;;  %v9014_v43 = vpack.c.bf16 %v4406_v1, %v4404_v6  ;;  %v9024_v41 = vpack.c.bf16 %v4410_v14, %v4408_v50  ;;  %v6372_v6 = vld [vmem:[%s6656_s24] sm:$0xff]  ;;  %v6373_v1 = vld [vmem:[%s6656_s24 + $0x8] sm:$0xff]  ;;  %v3570_v50 = vld [vmem:[#allocation3 + $0x38] sm:$0xff] }
 0x59e   : > { %4219 = vmatprep.subr.bf16.mxu1 %v6473_v5  ;;  %3435 = vst.msk [vmem:[#allocation3 + $0x140] sm:$0xfe] %vm3416_vm12, %v3363_v11  ;;  %v4383_v11 = vld [vmem:[#allocation3 + $0xc0] sm:$0xff] }
 0x59f   : > { %v8928_v0 = vpack.c.bf16 %v4385_v49, %v4383_v11  ;;  %v4397_v8 = vld [vmem:[#allocation3 + $0x130] sm:$0xff] }
 0x5a0   : > { %4665 = vmatmul.mubr.bf16.gmra.mrb[48].mxu0 %v8899_v46  ;;  %v3248_v12 = vpop.permute.xlu1 %3247 }
 0x5a1   : > { %5523 = vmatprep.mubr.msk.bf16.mxu0 %vm2467_vm7, %v8905_v44  ;;  %4220 = vmatpush1.bf16.msra.mxu1 %v6102_v55  ;;  %3324 = vst.msk [vmem:[#allocation3 + $0x170] sm:$0xff] %vm3302_vm11, %v3248_v12  ;;  %v4395_v28 = vld [vmem:[#allocation3 + $0x120] sm:$0xff] }
 0x5a2   : > { %4221 = vmatprep.subr.bf16.mxu1 %v6473_v5  ;;  %3438 = vst.msk [vmem:[#allocation3 + $0x170] sm:$0xff] %vm2467_vm7, %v8671_v54  ;;  %v3246_v42 = vpop.permute.xlu0 %3245  ;;  %v6104_v54 = vld [vmem:[%s9620_s9 + $0x48] sm:$0xff]   ;;  %v9002_v63 = vpack.c.bf16 %v4397_v8, %v4395_v28 }
 0x5a3   : > { %3323 = vst.msk [vmem:[#allocation3 + $0x160] sm:$0xff] %vm3302_vm11, %v3246_v42  ;;  %v4401_v47 = vld [vmem:[#allocation3 + $0x150] sm:$0xff]  ;;  %v4414_v42 = vld [vmem:[#allocation3 + $0x1b8] sm:$0xff]  ;;  %v3564_v8 = vld [vmem:[#allocation3 + $0x8] sm:$0xff] }
 0x5a4   : > { %3989 = vmatmul.mubr.bf16.gmra.mrb[24].mxu1 %v8899_v46  ;;  %3437 = vst.msk [vmem:[#allocation3 + $0x160] sm:$0xfe] %vm3416_vm12, %v3366_v58  ;;  %v3252_v21 = vpop.permute.xlu1 %3251  ;;  %v8933_v58 = vpack.c.bf16 %v4390_v60, %v4388_v22 }
 0x5a5   : > { %5444 = vmatprep.mubr.msk.bf16.mxu1 %vm2467_vm7, %v8905_v44  ;;  %4222 = vmatpush1.bf16.msra.mxu1 %v6103_v35  ;;  %3326 = vst.msk [vmem:[#allocation3 + $0x190] sm:$0xff] %vm3302_vm11, %v3252_v21  ;;  %v4412_v35 = vld [vmem:[#allocation3 + $0x1a8] sm:$0xff] }
 0x5a6   : > { %4223 = vmatprep.subr.bf16.mxu1 %v6473_v5  ;;  %3440 = vst.msk [vmem:[#allocation3 + $0x190] sm:$0xff] %vm2467_vm7, %v8694_v13  ;;  %v3250_v33 = vpop.permute.xlu0 %3249  ;;  %v6105_v13 = vld [vmem:[%s9620_s9 + $0x50] sm:$0xff]   ;;  %v9034_v49 = vpack.c.bf16 %v4414_v42, %v4412_v35  ;;  %v4416_v21 = vld [vmem:[#allocation3 + $0x1c8] sm:$0xff]  ;;  %v6376_v42 = vld [vmem:[%s6656_s24 + $0x20] sm:$0xff] }
 0x5a7   : > { %3325 = vst.msk [vmem:[#allocation3 + $0x180] sm:$0xff] %vm3302_vm11, %v3250_v33 }
 0x5a8   : > { %4673 = vmatmul.mubr.bf16.gmra.mrb[52].mxu0 %v8928_v0  ;;  %3439 = vst.msk [vmem:[#allocation3 + $0x180] sm:$0xfe] %vm3416_vm12, %v3369_v53  ;;  %v3256_v30 = vpop.permute.xlu1 %3255  ;;  %v4392_v53 = vld [vmem:[#allocation3 + $0x108] sm:$0xff] }
 0x5a9   : > { %5524 = vmatprep.mubr.msk.bf16.mxu0 %vm2467_vm7, %v8933_v58  ;;  %4224 = vmatpush1.bf16.msra.mxu1 %v6104_v54  ;;  %3328 = vst.msk [vmem:[#allocation3 + $0x1b0] sm:$0xff] %vm3302_vm11, %v3256_v30  ;;  %v4405_v37 = vld [vmem:[#allocation3 + $0x170] sm:$0xff]  ;;  %v4418_v54 = vld [vmem:[#allocation3 + $0x1d8] sm:$0xff] }
 0x5aa   : > { %4225 = vmatprep.subr.bf16.mxu1 %v6473_v5  ;;  %3442 = vst.msk [vmem:[#allocation3 + $0x1b0] sm:$0xff] %vm2467_vm7, %v8708_v24  ;;  %v3254_v25 = vpop.permute.xlu0 %3253  ;;  %v6106_v24 = vld [vmem:[%s9620_s9 + $0x58] sm:$0xff]   ;;  %v9044_v30 = vpack.c.bf16 %v4418_v54, %v4416_v21  ;;  %v3572_v21 = vld [vmem:[#allocation3 + $0x48] sm:$0xff] }
 0x5ab   : > { %3327 = vst.msk [vmem:[#allocation3 + $0x1a0] sm:$0xff] %vm3302_vm11, %v3254_v25  ;;  %v4403_v36 = vld [vmem:[#allocation3 + $0x160] sm:$0xff]  ;;  %v3574_v54 = vld [vmem:[#allocation3 + $0x58] sm:$0xff] }
 0x5ac   : > { %3997 = vmatmul.mubr.bf16.gmra.mrb[28].mxu1 %v8928_v0  ;;  %3441 = vst.msk [vmem:[#allocation3 + $0x1a0] sm:$0xfe] %vm3416_vm12, %v3372_v19  ;;  %v3260_v4 = vpop.permute.xlu1 %3259  ;;  %v8965_v19 = vpack.c.bf16 %v4394_v61, %v4392_v53  ;;  %v9022_v23 = vpack.c.bf16 %v4405_v37, %v4403_v36  ;;  %v9054_v61 = vpack.c.bf16 %v4422_v32, %v4420_v15  ;;  %v3568_v37 = vld [vmem:[#allocation3 + $0x28] sm:$0xff]  ;;  %v6380_v32 = vld [vmem:[%s6656_s24 + $0x40] sm:$0xff] }
 0x5ad   : > { %5445 = vmatprep.mubr.msk.bf16.mxu1 %vm2467_vm7, %v8933_v58  ;;  %4226 = vmatpush1.bf16.msra.mxu1 %v6105_v13  ;;  %3330 = vst.msk [vmem:[#allocation3 + $0x1d0] sm:$0xff] %vm3302_vm11, %v3260_v4  ;;  %v4409_v12 = vld [vmem:[#allocation3 + $0x190] sm:$0xff]  ;;  %v4840_v36 = vpack.c.bf16 %v6373_v1, %v6372_v6  ;;  %v3630_v14 = vpack.c.bf16 %v3570_v50, %v3568_v37 }
 0x5ae   : > { %4227 = vmatprep.subr.bf16.mxu1 %v6473_v5  ;;  %3444 = vst.msk [vmem:[#allocation3 + $0x1d0] sm:$0xff] %vm2467_vm7, %v8714_v59  ;;  %v3258_v3 = vpop.permute.xlu0 %3257  ;;  %v4391_v5 = vld [vmem:[#allocation3 + $0x100] sm:$0xff]  ;;  %v4393_v59 = vld [vmem:[#allocation3 + $0x110] sm:$0xff] }
 0x5af   : > { %3329 = vst.msk [vmem:[#allocation3 + $0x1c0] sm:$0xff] %vm3302_vm11, %v3258_v3  ;;  %v4407_v55 = vld [vmem:[#allocation3 + $0x180] sm:$0xff]  ;;  %v4424_v3 = vld [vmem:[#allocation3 + $0x208] sm:$0xff] }
 0x5b0   : > { %4681 = vmatmul.mubr.bf16.gmra.mrb[56].mxu0 %v8960_v62  ;;  %3443 = vst.msk [vmem:[#allocation3 + $0x1c0] sm:$0xfe] %vm3416_vm12, %v3375_v18  ;;  %v3264_v27 = vpop.permute.xlu1 %3263  ;;  %v8982_v18 = vpack.c.bf16 %v4393_v59, %v4391_v5  ;;  %v9032_v11 = vpack.c.bf16 %v4409_v12, %v4407_v55  ;;  %v6374_v55 = vld [vmem:[%s6656_s24 + $0x10] sm:$0xff]  ;;  %v6375_v12 = vld [vmem:[%s6656_s24 + $0x18] sm:$0xff] }
 0x5b1   : > { %5525 = vmatprep.mubr.msk.bf16.mxu0 %vm2467_vm7, %v8965_v19  ;;  %4228 = vmatpush1.bf16.msra.mxu1 %v6106_v24  ;;  %3332 = vst.msk [vmem:[#allocation3 + $0x1f0] sm:$0xff] %vm3302_vm11, %v3264_v27  ;;  %v4413_v60 = vld [vmem:[#allocation3 + $0x1b0] sm:$0xff]  ;;  %v4426_v27 = vld [vmem:[#allocation3 + $0x218] sm:$0xff]  ;;  %v4841_v35 = vpack.c.bf16 %v6375_v12, %v6374_v55 }
 0x5b2   : > { %5938 = vmatprep.subr.bf16.mxu1 %v8771_v17  ;;  %3446 = vst.msk [vmem:[#allocation3 + $0x1f0] sm:$0xff] %vm2467_vm7, %v8733_v20  ;;  %v4460_v59 = vpack.c.bf16 %v4426_v27, %v4424_v3  ;;  %v6382_v3 = vld [vmem:[%s6656_s24 + $0x50] sm:$0xff]  ;;  %v6383_v27 = vld [vmem:[%s6656_s24 + $0x58] sm:$0xff] }
 0x5b3   : > { %v4411_v22 = vld [vmem:[#allocation3 + $0x1a0] sm:$0xff]  ;;  %v6386_v55 = vld [vmem:[%s6656_s24 + $0x70] sm:$0xff]  ;;  %v6387_v12 = vld [vmem:[%s6656_s24 + $0x78] sm:$0xff] }
 0x5b4   : > { %4005 = vmatmul.mubr.bf16.gmra.mrb[32].mxu1 %v8960_v62  ;;  %v3262_v31 = vpop.permute.xlu0 %3261  ;;  %v9042_v33 = vpack.c.bf16 %v4413_v60, %v4411_v22  ;;  %v6377_v22 = vld [vmem:[%s6656_s24 + $0x28] sm:$0xff] }
 0x5b5   : > { %5446 = vmatprep.mubr.msk.bf16.mxu1 %vm2467_vm7, %v8965_v19  ;;  %3331 = vst.msk [vmem:[#allocation3 + $0x1e0] sm:$0xff] %vm3302_vm11, %v3262_v31  ;;  %v4417_v25 = vld [vmem:[#allocation3 + $0x1d0] sm:$0xff]  ;;  %v4842_v60 = vpack.c.bf16 %v6377_v22, %v6376_v42  ;;  %v6388_v22 = vld [vmem:[%s6656_s24 + $0x80] sm:$0xff] }
 0x5b6   : > { %3445 = vst.msk [vmem:[#allocation3 + $0x1e0] sm:$0xfe] %vm3416_vm12, %v3378_v39  ;;  %v4402_v39 = vld [vmem:[#allocation3 + $0x158] sm:$0xff] }
 0x5b7   : > { %v9004_v7 = vpack.c.bf16 %v4402_v39, %v4400_v2  ;;  %v4415_v13 = vld [vmem:[#allocation3 + $0x1c0] sm:$0xff]  ;;  %v3566_v2 = vld [vmem:[#allocation3 + $0x18] sm:$0xff] }
 0x5b8   : > { %4689 = vmatmul.mubr.bf16.gmra.mrb[60].mxu0 %v8982_v18  ;;  %v9052_v53 = vpack.c.bf16 %v4417_v25, %v4415_v13  ;;  %v3628_v39 = vpack.c.bf16 %v3566_v2, %v3564_v8  ;;  %v6378_v13 = vld [vmem:[%s6656_s24 + $0x30] sm:$0xff]  ;;  %v6379_v25 = vld [vmem:[%s6656_s24 + $0x38] sm:$0xff] }
 0x5b9   : > { %5526 = vmatprep.mubr.msk.bf16.mxu0 %vm2467_vm7, %v8987_v48  ;;  %v3268_v20 = vpop.permute.xlu1 %3267  ;;  %v4421_v24 = vld [vmem:[#allocation3 + $0x1f0] sm:$0xff]  ;;  %v4843_v15 = vpack.c.bf16 %v6379_v25, %v6378_v13 }
 0x5ba   : > { %3334 = vst.msk [vmem:[#allocation3 + $0x210] sm:$0xff] %vm3302_vm11, %v3268_v20  ;;  %v3266_v56 = vpop.permute.xlu0 %3265 }
 0x5bb   : > { %3448 = vst.msk [vmem:[#allocation3 + $0x210] sm:$0xff] %vm2467_vm7, %v8750_v9  ;;  %v4399_v9 = vld [vmem:[#allocation3 + $0x140] sm:$0xff] }
 0x5bc   : > { %3333 = vst.msk [vmem:[#allocation3 + $0x200] sm:$0xff] %vm3302_vm11, %v3266_v56  ;;  %4013 = vmatmul.mubr.bf16.gmra.mrb[36].mxu1 %v8982_v18  ;;  %v4462_v56 = vpack.c.bf16 %v4430_v34, %v4428_v51 }
 0x5bd   : > { %3447 = vst.msk [vmem:[#allocation3 + $0x200] sm:$0xfe] %vm3416_vm12, %v3381_v38  ;;  %5447 = vmatprep.mubr.msk.bf16.mxu1 %vm2467_vm7, %v8987_v48  ;;  %v9012_v38 = vpack.c.bf16 %v4401_v47, %v4399_v9  ;;  %v4419_v4 = vld [vmem:[#allocation3 + $0x1e0] sm:$0xff] }
 0x5be   : > { %v9062_v5 = vpack.c.bf16 %v4421_v24, %v4419_v4  ;;  %v6371_v9 = vld [vmem:[#allocation3] sm:$0xff]  ;;  %v6381_v4 = vld [vmem:[%s6656_s24 + $0x48] sm:$0xff] }
 0x5bf   : > { %v4461_v47 = vpack.c.bf16 %v6371_v9, %v6371_v9  ;;  %v4844_v24 = vpack.c.bf16 %v6381_v4, %v6380_v32  ;;  %v6384_v9 = vld [vmem:[%s6656_s24 + $0x60] sm:$0xff]  ;;  %v6390_v4 = vld [vmem:[%s6656_s24 + $0x90] sm:$0xff] }
 0x5c0   : > { %4697 = vmatmul.mubr.bf16.gmra.mrb[64].mxu0 %v9002_v63 }
 0x5c1   : > { %5527 = vmatprep.mubr.msk.bf16.mxu0 %vm2467_vm7, %v9004_v7 }
 0x5c2   : > { %v4425_v20 = vld [vmem:[#allocation3 + $0x210] sm:$0xff] }
 0x5c4   : > { %4021 = vmatmul.mubr.bf16.gmra.mrb[40].mxu1 %v9002_v63  ;;  %v4423_v31 = vld [vmem:[#allocation3 + $0x200] sm:$0xff] }
 0x5c5   : > { %5448 = vmatprep.mubr.msk.bf16.mxu1 %vm2467_vm7, %v9004_v7  ;;  %v4459_v28 = vpack.c.bf16 %v4425_v20, %v4423_v31 }
 0x5c8   : > { %4705 = vmatmul.mubr.bf16.gmra.mrb[68].mxu0 %v9012_v38 }
 0x5c9   : > { %5528 = vmatprep.mubr.msk.bf16.mxu0 %vm2467_vm7, %v9014_v43 }
 0x5cc   : > { %4029 = vmatmul.mubr.bf16.gmra.mrb[44].mxu1 %v9012_v38 }
 0x5cd   : > { %5449 = vmatprep.mubr.msk.bf16.mxu1 %vm2467_vm7, %v9014_v43 }
 0x5d0   : > { %4713 = vmatmul.mubr.bf16.gmra.mrb[72].mxu0 %v9022_v23 }
 0x5d1   : > { %5529 = vmatprep.mubr.msk.bf16.mxu0 %vm2467_vm7, %v9024_v41 }
 0x5d4   : > { %4037 = vmatmul.mubr.bf16.gmra.mrb[48].mxu1 %v9022_v23 }
 0x5d5   : > { %5450 = vmatprep.mubr.msk.bf16.mxu1 %vm2467_vm7, %v9024_v41 }
 0x5d8   : > { %4721 = vmatmul.mubr.bf16.gmra.mrb[76].mxu0 %v9032_v11 }
 0x5d9   : > { %5530 = vmatprep.mubr.msk.bf16.mxu0 %vm2467_vm7, %v9034_v49 }
 0x5dc   : > { %4045 = vmatmul.mubr.bf16.gmra.mrb[52].mxu1 %v9032_v11 }
 0x5dd   : > { %5451 = vmatprep.mubr.msk.bf16.mxu1 %vm2467_vm7, %v9034_v49 }
 0x5e0   : > { %4729 = vmatmul.mubr.bf16.gmra.mrb[80].mxu0 %v9042_v33 }
 0x5e1   : > { %5531 = vmatprep.mubr.msk.bf16.mxu0 %vm2467_vm7, %v9044_v30 }
 0x5e4   : > { %4053 = vmatmul.mubr.bf16.gmra.mrb[56].mxu1 %v9042_v33 }
 0x5e5   : > { %5452 = vmatprep.mubr.msk.bf16.mxu1 %vm2467_vm7, %v9044_v30 }
 0x5e8   : > { %4737 = vmatmul.mubr.bf16.gmra.mrb[84].mxu0 %v9052_v53 }
 0x5e9   : > { %5532 = vmatprep.mubr.msk.bf16.mxu0 %vm2467_vm7, %v9054_v61 }
 0x5ec   : > { %4061 = vmatmul.mubr.bf16.gmra.mrb[60].mxu1 %v9052_v53 }
 0x5ed   : > { %5453 = vmatprep.mubr.msk.bf16.mxu1 %vm2467_vm7, %v9054_v61 }
 0x5f0   : > { %4745 = vmatmul.mubr.bf16.gmra.mrb[88].mxu0 %v9062_v5 }
 0x5f1   : > { %5533 = vmatprep.mubr.msk.bf16.mxu0 %vm2467_vm7, %v4460_v59 }
 0x5f4   : > { %4069 = vmatmul.mubr.bf16.gmra.mrb[64].mxu1 %v9062_v5 }
 0x5f5   : > { %5454 = vmatprep.mubr.msk.bf16.mxu1 %vm2467_vm7, %v4460_v59 }
 0x5f8   : > { %4753 = vmatmul.mubr.bf16.gmra.mrb[92].mxu0 %v4459_v28 }
 0x5f9   : > { %5534 = vmatprep.mubr.msk.bf16.mxu0 %vm2467_vm7, %v4462_v56 }
 0x5fc   : > { %4077 = vmatmul.mubr.bf16.gmra.mrb[68].mxu1 %v4459_v28 }
 0x5fd   : > { %5467 = vmatprep.mubr.msk.bf16.mxu1 %vm2467_vm7, %v3628_v39 }
 0x600   : > { %4761 = vmatmul.mubr.bf16.gmra.mrb[96].mxu0 %v4461_v47 }
 0x601   : > { %5870 = vmatprep.mubr.msk.bf16.mxu0 %vm486_vm1, %v4840_v36 }
 0x604   : > { %4238 = vmatmul.mubr.bf16.vlgmr.msra.gmra.mrb[72].mxu1 %v4461_v47  ;;  %v6385_v47 = vld [vmem:[%s6656_s24 + $0x68] sm:$0xff] }
 0x605   : > { %5940 = vmatpush3.bf16.msra.mxu1 %v8771_v17  ;;  %5468 = vmatprep.mubr.msk.bf16.mxu1 %vm2467_vm7, %v3630_v14  ;;  %v3632_v17 = vpack.c.bf16 %v3574_v54, %v3572_v21  ;;  %v4846_v6 = vpack.c.bf16 %v6385_v47, %v6384_v9 }
 0x606   : > { %5939 = vmatprep.subr.bf16.mxu1 %v8806_v40 }
 0x608   : > { %5871 = vmatmul.mubr.msk.bf16.vlgmr.msra.gmra.mrb[100].mxu0 %vm486_vm1, %v4841_v35  ;;  %v4847_v35 = vpack.c.bf16 %v6387_v12, %v6386_v55  ;;  %v6399_v55 = vld [vmem:[%s6656_s24 + $0xd8] sm:$0xff] }
 0x609   : > { %5874 = vmatprep.mubr.msk.bf16.mxu0 %vm486_vm1, %v4842_v60  ;;  %5941 = vmatpush3.bf16.msra.mxu1 %v8806_v40  ;;  %v4845_v40 = vpack.c.bf16 %v6383_v27, %v6382_v3  ;;  %v6389_v60 = vld [vmem:[%s6656_s24 + $0x88] sm:$0xff] }
 0x60c   : > { %4246 = vmatmul.mubr.bf16.gmra.mrb[76].mxu1 %v8782_v10 }
 0x60d   : > { %5469 = vmatprep.mubr.msk.bf16.mxu1 %vm2467_vm7, %v3632_v17 }
 0x610   : > { %5875 = vmatmul.mubr.msk.bf16.gmra.mrb[104].mxu0 %vm486_vm1, %v4843_v15 }
 0x611   : > { %5878 = vmatprep.mubr.msk.bf16.mxu0 %vm486_vm1, %v4844_v24  ;;  %v6391_v24 = vld [vmem:[%s6656_s24 + $0x98] sm:$0xff] }
 0x612   : > { %v4849_v3 = vpack.c.bf16 %v6391_v24, %v6390_v4 }
 0x614   : > { %4254 = vmatmul.mubr.bf16.gmra.mrb[80].mxu1 %v8798_v45 }
 0x615   : > { %5470 = vmatprep.mubr.msk.bf16.mxu1 %vm2467_vm7, %v8801_v26 }
 0x618   : > { %5879 = vmatmul.mubr.msk.bf16.gmra.mrb[108].mxu0 %vm486_vm1, %v4845_v40  ;;  %v6392_v40 = vld [vmem:[%s6656_s24 + $0xa0] sm:$0xff] }
 0x61c   : > { %4262 = vmatmul.mubr.bf16.gmra.mrb[84].mxu1 %v8837_v52 }
 0x61d   : > { %5471 = vmatprep.mubr.msk.bf16.mxu1 %vm2467_vm7, %v8841_v29 }
 0x624   : > { %4270 = vmatmul.mubr.bf16.gmra.mrb[88].mxu1 %v8867_v16 }
 0x625   : > { %5472 = vmatprep.mubr.msk.bf16.mxu1 %vm2467_vm7, %v8873_v57 }
 0x62c   : > { %4278 = vmatmul.mubr.bf16.gmra.mrb[92].mxu1 %v8899_v46 }
 0x62d   : > { %5473 = vmatprep.mubr.msk.bf16.mxu1 %vm2467_vm7, %v8905_v44 }
 0x634   : > { %4286 = vmatmul.mubr.bf16.gmra.mrb[96].mxu1 %v8928_v0 }
 0x635   : > { %5474 = vmatprep.mubr.msk.bf16.mxu1 %vm2467_vm7, %v8933_v58 }
 0x63c   : > { %4294 = vmatmul.mubr.bf16.gmra.mrb[100].mxu1 %v8960_v62 }
 0x63d   : > { %5475 = vmatprep.mubr.msk.bf16.mxu1 %vm2467_vm7, %v8965_v19 }
 0x644   : > { %4302 = vmatmul.mubr.bf16.gmra.mrb[104].mxu1 %v8982_v18 }
 0x645   : > { %5476 = vmatprep.mubr.msk.bf16.mxu1 %vm2467_vm7, %v8987_v48 }
 0x64c   : > { %4310 = vmatmul.mubr.bf16.gmra.mrb[108].mxu1 %v9002_v63 }
 0x64d   : > { %5477 = vmatprep.mubr.msk.bf16.mxu1 %vm2467_vm7, %v9004_v7 }
 0x654   : > { %4318 = vmatmul.mubr.bf16.gmra.mrb[112].mxu1 %v9012_v38 }
 0x655   : > { %5478 = vmatprep.mubr.msk.bf16.mxu1 %vm2467_vm7, %v9014_v43 }
 0x657   : > { %v9121_v10 = vpop.f32.mrb[8].mxu1 }
 0x658   : > { %v3960_v45 = vpop.f32.mrb[9].mxu1 }
 0x659   : > { %v9123_v26 = vpop.f32.mrb[10].mxu1  ;;  %v6393_v45 = vld [vmem:[%s6656_s24 + $0xa8] sm:$0xff] }
 0x65a   : > { %v3963_v52 = vpop.f32.mrb[11].mxu1 }
 0x65b   : > { %v9125_v29 = vpop.f32.mrb[36].mxu0  ;;  %v4850_v52 = vpack.c.bf16 %v6393_v45, %v6392_v40  ;;  %v6402_v40 = vld [vmem:[%s6656_s24 + $0xf0] sm:$0xff]  ;;  %v6403_v45 = vld [vmem:[%s6656_s24 + $0xf8] sm:$0xff] }
 0x65c   : > { %4326 = vmatmul.mubr.bf16.gmra.mrb[116].mxu1 %v9022_v23  ;;  %v4644_v16 = vpop.f32.mrb[37].mxu0 }
 0x65d   : > { %5479 = vmatprep.mubr.msk.bf16.mxu1 %vm2467_vm7, %v9024_v41  ;;  %v9130_v57 = vpop.f32.mrb[38].mxu0 }
 0x65e   : > { %v4647_v46 = vpop.f32.mrb[39].mxu0 }
 0x65f   : > { %v9132_v44 = vpop.f32.mrb[12].mxu1 }
 0x660   : > { %v3968_v0 = vpop.f32.mrb[13].mxu1 }
 0x661   : > { %v9134_v58 = vpop.f32.mrb[14].mxu1 }
 0x662   : > { %v3971_v62 = vpop.f32.mrb[15].mxu1 }
 0x663   : > { %v9136_v19 = vpop.f32.mrb[40].mxu0 }
 0x664   : > { %4334 = vmatmul.mubr.bf16.gmra.mrb[120].mxu1 %v9032_v11  ;;  %v4652_v18 = vpop.f32.mrb[41].mxu0 }
 0x665   : > { %5480 = vmatprep.mubr.msk.bf16.mxu1 %vm2467_vm7, %v9034_v49  ;;  %v9141_v48 = vpop.f32.mrb[42].mxu0 }
 0x666   : > { %v4655_v63 = vpop.f32.mrb[43].mxu0 }
 0x667   : > { %v9143_v7 = vpop.f32.mrb[16].mxu1 }
 0x668   : > { %v3976_v38 = vpop.f32.mrb[17].mxu1 }
 0x669   : > { %v9145_v43 = vpop.f32.mrb[18].mxu1 }
 0x66a   : > { %v3979_v23 = vpop.f32.mrb[19].mxu1 }
 0x66b   : > { %v9147_v41 = vpop.f32.mrb[44].mxu0  ;;  %v6394_v23 = vld [vmem:[%s6656_s24 + $0xb0] sm:$0xff] }
 0x66c   : > { %4342 = vmatmul.mubr.bf16.gmra.mrb[124].mxu1 %v9042_v33  ;;  %v4660_v59 = vpop.f32.mrb[45].mxu0 }
 0x66d   : > { %5481 = vmatprep.mubr.msk.bf16.mxu1 %vm2467_vm7, %v9044_v30  ;;  %v9152_v11 = vpop.f32.mrb[46].mxu0  ;;  %v6395_v59 = vld [vmem:[%s6656_s24 + $0xb8] sm:$0xff] }
 0x66e   : > { %v4663_v49 = vpop.f32.mrb[47].mxu0 }
 0x66f   : > { %v9154_v51 = vpop.f32.mrb[20].mxu1  ;;  %v4851_v49 = vpack.c.bf16 %v6395_v59, %v6394_v23 }
 0x670   : > { %v3984_v34 = vpop.f32.mrb[21].mxu1 }
 0x671   : > { %v9156_v31 = vpop.f32.mrb[22].mxu1 }
 0x672   : > { %v3987_v20 = vpop.f32.mrb[23].mxu1 }
 0x673   : > { %v9158_v56 = vpop.f32.mrb[48].mxu0  ;;  %v6396_v20 = vld [vmem:[%s6656_s24 + $0xc0] sm:$0xff] }
 0x674   : > { %4350 = vmatmul.mubr.bf16.gmra.mrb[128].mxu1 %v9052_v53  ;;  %v4668_v33 = vpop.f32.mrb[49].mxu0 }
 0x675   : > { %5482 = vmatprep.mubr.msk.bf16.mxu1 %vm2467_vm7, %v9054_v61  ;;  %v9163_v30 = vpop.f32.mrb[50].mxu0  ;;  %v6397_v33 = vld [vmem:[%s6656_s24 + $0xc8] sm:$0xff] }
 0x676   : > { %v4671_v28 = vpop.f32.mrb[51].mxu0 }
 0x677   : > { %v9165_v8 = vpop.f32.mrb[24].mxu1  ;;  %v4852_v28 = vpack.c.bf16 %v6397_v33, %v6396_v20 }
 0x678   : > { %v3992_v2 = vpop.f32.mrb[25].mxu1 }
 0x679   : > { %v9167_v39 = vpop.f32.mrb[26].mxu1 }
 0x67a   : > { %v3995_v53 = vpop.f32.mrb[27].mxu1 }
 0x67b   : > { %v9171_v1 = vpop.f32.mrb[52].mxu0 }
 0x67c   : > { %4358 = vmatmul.mubr.bf16.gmra.mrb[132].mxu1 %v9062_v5  ;;  %v4676_v61 = vpop.f32.mrb[53].mxu0  ;;  %v4848_v5 = vpack.c.bf16 %v6389_v60, %v6388_v22  ;;  %v6400_v22 = vld [vmem:[%s6656_s24 + $0xe0] sm:$0xff]  ;;  %v6401_v60 = vld [vmem:[%s6656_s24 + $0xe8] sm:$0xff] }
 0x67d   : > { %v9174_v36 = vpop.f32.mrb[54].mxu0  ;;  %5882 = vmatprep.mubr.msk.bf16.mxu1 %vm486_vm1, %v4846_v6 }
 0x67e   : > { %v4679_v37 = vpop.f32.mrb[55].mxu0 }
 0x67f   : > { %v9177_v50 = vpop.f32.mrb[28].mxu1 }
 0x680   : > { %v4000_v14 = vpop.f32.mrb[29].mxu1 }
 0x681   : > { %v9181_v42 = vpop.f32.mrb[30].mxu1  ;;  %v6398_v14 = vld [vmem:[%s6656_s24 + $0xd0] sm:$0xff]  ;;  %s442_s24 = sand.u32 1, %s6458_s26  }
 0x682   : > { %v4003_v21 = vpop.f32.mrb[31].mxu1  ;;  %v4853_v12 = vpack.c.bf16 %v6399_v55, %v6398_v14  ;;  %s5241_s16 = sshll.u32 %s442_s24, 8  ;;  %s9570_s15 = scalar_lea.sflag [#allocation5], %s442_s24 }
 0x683   : > { %v9185_v54 = vpop.f32.mrb[56].mxu0  ;;  %s9314_s30 = scalar_lea.vmem [#allocation4], %s5241_s16  ;;  %s6408_s16 = sshll.u32 %s6474_s1, 4  ;;  %s6409_s16 = int_to_ptr.vmem [resolvable:$false] %s6408_s16 }
 0x684   : > { %v4684_v17 = vpop.f32.mrb[57].mxu0  ;;  %5883 = vmatmul.mubr.msk.bf16.vlgmr.msra.gmra.mrb[136].mxu1 %vm486_vm1, %v4847_v35  ;;  %s5166_s21 = sshll.u32 %s9314_s30, 4  ;;  %s6410_s23 = scalar_lea.vmem %s6409_s16, 8192  ;;  %s9560_s21 = int_to_ptr.vmem [resolvable:$true] %s5166_s21 }
 0x685   : > { %v9188_v13 = vpop.f32.mrb[58].mxu0  ;;  %5886 = vmatprep.mubr.msk.bf16.mxu1 %vm486_vm1, %v4848_v5  ;;  %v4854_v5 = vpack.c.bf16 %v6401_v60, %v6400_v22  ;;  %s6404_s0 = scalar_lea.vmem %s9560_s21, 4096  ;;  %p6411_p0 = scmp.lt.s32.totalorder %s9560_s21, %s6409_s16 }
 0x686   : > { %v4687_v25 = vpop.f32.mrb[59].mxu0  ;;  %p6405_p11 = scmp.ne.s32.totalorder %s9560_s21, %s6404_s0  ;;  %p6412_p1 = scmp.lt.s32.totalorder %s6410_s23, %s6404_s0 }
 0x687   : > { %v9191_v15 = vpop.f32.mrb[32].mxu1 }
 0x688   : > { %v4008_v32 = vpop.f32.mrb[33].mxu1  ;;  %p6406_p12 = pnand %p6405_p11, %p6585_p5  ;;  %p6413_p2 = por %p6412_p1, %p6411_p0 }
 0x689   : > { %v9195_v27 = vpop.f32.mrb[34].mxu1 }
 0x68a   : > { %v4011_v16 = vpop.f32.mrb[35].mxu1  ;;  %p6407_p13 = pneg %p6406_p12 }
 0x68b   : > { %v9199_v46 = vpop.f32.mrb[60].mxu0 }
 0x68c   : > { %v4692_v0 = vpop.f32.mrb[61].mxu0  ;;  %5887 = vmatmul.mubr.msk.bf16.gmra.mrb[140].mxu1 %vm486_vm1, %v4849_v3  ;;  %p6414_p3 = pnand %p6413_p2, %p6407_p13 }
 0x68d   : > { %v9202_v62 = vpop.f32.mrb[62].mxu0  ;;  %5890 = vmatprep.mubr.msk.bf16.mxu1 %vm486_vm1, %v4850_v52  ;;  %v4855_v52 = vpack.c.bf16 %v6403_v45, %v6402_v40 }
 0x68e   : > { %v4695_v18 = vpop.f32.mrb[63].mxu0 }
 0x68f   : > { %v9205_v63 = vpop.f32.mrb[36].mxu1 }
 0x690   : > { %v4016_v38 = vpop.f32.mrb[37].mxu1 }
 0x691   : > { %v9209_v34 = vpop.f32.mrb[38].mxu1 }
 0x692   : > { %v4019_v2 = vpop.f32.mrb[39].mxu1 }
 0x693   : > { %v9213_v9 = vpop.f32.mrb[64].mxu0 }
 0x694   : > { %v4700_v47 = vpop.f32.mrb[65].mxu0  ;;  %5891 = vmatmul.mubr.msk.bf16.gmra.mrb[144].mxu1 %vm486_vm1, %v4851_v49 }
 0x695   : > { %v9216_v6 = vpop.f32.mrb[66].mxu0  ;;  %5894 = vmatprep.mubr.msk.bf16.mxu1 %vm486_vm1, %v4852_v28 }
 0x696   : > { %v4703_v53 = vpop.f32.mrb[67].mxu0 }
 0x697   : > { %v9219_v61 = vpop.f32.mrb[40].mxu1 }
 0x698   : > { %v4024_v37 = vpop.f32.mrb[41].mxu1 }
 0x699   : > { %v9223_v35 = vpop.f32.mrb[42].mxu1 }
 0x69a   : > { %v4027_v21 = vpop.f32.mrb[43].mxu1 }
 0x69b   : > { %v9227_v17 = vpop.f32.mrb[68].mxu0 }
 0x69c   : > { %v4708_v25 = vpop.f32.mrb[69].mxu0  ;;  %5895 = vmatmul.mubr.msk.bf16.gmra.mrb[148].mxu1 %vm486_vm1, %v4853_v12 }
 0x69d   : > { %v9230_v32 = vpop.f32.mrb[70].mxu0  ;;  %5898 = vmatprep.mubr.msk.bf16.mxu1 %vm486_vm1, %v4854_v5 }
 0x69e   : > { %v4711_v4 = vpop.f32.mrb[71].mxu0 }
 0x69f   : > { %v9233_v24 = vpop.f32.mrb[44].mxu1 }
 0x6a0   : > { %v4032_v3 = vpop.f32.mrb[45].mxu1 }
 0x6a1   : > { %v9237_v16 = vpop.f32.mrb[46].mxu1 }
 0x6a2   : > { %v4035_v0 = vpop.f32.mrb[47].mxu1 }
 0x6a3   : > { %v9239_v18 = vpop.f32.mrb[72].mxu0 }
 0x6a4   : > { %v4716_v38 = vpop.f32.mrb[73].mxu0  ;;  %5899 = vmatmul.mubr.msk.bf16.gmra.mrb[152].mxu1 %vm486_vm1, %v4855_v52 }
 0x6a5   : > { %v9242_v23 = vpop.f32.mrb[74].mxu0 }
 0x6a6   : > { %v4719_v59 = vpop.f32.mrb[75].mxu0 }
 0x6a7   : > { %v9244_v49 = vpop.f32.mrb[48].mxu1 }
 0x6a8   : > { %v4040_v20 = vpop.f32.mrb[49].mxu1 }
 0x6a9   : > { %v9246_v33 = vpop.f32.mrb[50].mxu1 }
 0x6aa   : > { %v4043_v28 = vpop.f32.mrb[51].mxu1 }
 0x6ab   : > { %v9248_v2 = vpop.f32.mrb[76].mxu0 }
 0x6ac   : > { %v4724_v47 = vpop.f32.mrb[77].mxu0 }
 0x6ad   : > { %v9250_v53 = vpop.f32.mrb[78].mxu0 }
 0x6ae   : > { %v4727_v37 = vpop.f32.mrb[79].mxu0 }
 0x6af   : > { %v9252_v14 = vpop.f32.mrb[52].mxu1 }
 0x6b0   : > { %v4048_v55 = vpop.f32.mrb[53].mxu1 }
 0x6b1   : > { %v9254_v12 = vpop.f32.mrb[54].mxu1 }
 0x6b2   : > { %v4051_v22 = vpop.f32.mrb[55].mxu1 }
 0x6b3   : > { %v9256_v60 = vpop.f32.mrb[80].mxu0 }
 0x6b4   : > { %v4732_v5 = vpop.f32.mrb[81].mxu0 }
 0x6b5   : > { %v9258_v21 = vpop.f32.mrb[82].mxu0 }
 0x6b6   : > { %v4735_v25 = vpop.f32.mrb[83].mxu0 }
 0x6b7   : > { %v9260_v4 = vpop.f32.mrb[56].mxu1 }
 0x6b8   : > { %v4056_v3 = vpop.f32.mrb[57].mxu1 }
 0x6b9   : > { %v9262_v40 = vpop.f32.mrb[58].mxu1 }
 0x6ba   : > { %9643 = vst [vmem:[#allocation7_spill] sm:$0xff] %v9262_v40  ;;  %v4059_v45 = vpop.f32.mrb[59].mxu1 }
 0x6bb   : > { %v9264_v52 = vpop.f32.mrb[84].mxu0 }
 0x6bc   : > { %v4740_v0 = vpop.f32.mrb[85].mxu0 }
 0x6bd   : > { %v9266_v38 = vpop.f32.mrb[86].mxu0 }
 0x6be   : > { %9644 = vst [vmem:[#allocation8_spill] sm:$0xff] %v9266_v38  ;;  %v4743_v59 = vpop.f32.mrb[87].mxu0 }
 0x6bf   : > { %v9268_v20 = vpop.f32.mrb[60].mxu1 }
 0x6c0   : > { %9645 = vst [vmem:[#allocation9_spill] sm:$0xff] %v9268_v20  ;;  %v4064_v28 = vpop.f32.mrb[61].mxu1 }
 0x6c1   : > { %v9270_v47 = vpop.f32.mrb[62].mxu1 }
 0x6c2   : > { %9646 = vst [vmem:[#allocation10_spill] sm:$0xff] %v9270_v47  ;;  %v4067_v37 = vpop.f32.mrb[63].mxu1 }
 0x6c3   : > { %v9272_v55 = vpop.f32.mrb[88].mxu0 }
 0x6c4   : > { %9647 = vst [vmem:[#allocation11_spill] sm:$0xff] %v9272_v55  ;;  %v4748_v22 = vpop.f32.mrb[89].mxu0 }
 0x6c5   : > { %v9274_v5 = vpop.f32.mrb[90].mxu0 }
 0x6c6   : > { %9648 = vst [vmem:[#allocation12_spill] sm:$0xff] %v9274_v5  ;;  %v4751_v25 = vpop.f32.mrb[91].mxu0 }
 0x6c7   : > { %v9276_v3 = vpop.f32.mrb[64].mxu1 }
 0x6c8   : > { %9649 = vst [vmem:[#allocation13_spill] sm:$0xff] %v9276_v3  ;;  %v4072_v45 = vpop.f32.mrb[65].mxu1 }
 0x6c9   : > { %v9278_v40 = vpop.f32.mrb[66].mxu1 }
 0x6ca   : > { %9650 = vst [vmem:[#allocation14_spill] sm:$0xff] %v9278_v40  ;;  %v4075_v0 = vpop.f32.mrb[67].mxu1 }
 0x6cb   : > { %v9280_v59 = vpop.f32.mrb[92].mxu0 }
 0x6cc   : > { %9651 = vst [vmem:[#allocation15_spill] sm:$0xff] %v9280_v59  ;;  %v4756_v20 = vpop.f32.mrb[93].mxu0 }
 0x6cd   : > { %v9282_v28 = vpop.f32.mrb[94].mxu0 }
 0x6ce   : > { %9652 = vst [vmem:[#allocation16_spill] sm:$0xff] %v9282_v28  ;;  %v4759_v47 = vpop.f32.mrb[95].mxu0 }
 0x6cf   : > { %v9284_v37 = vpop.f32.mrb[68].mxu1  ;;  %v9297_v47 = vld [vmem:[%s9621_s10] ss:$0 sm:$0xff] }
 0x6d0   : > { %9653 = vst [vmem:[#allocation17_spill] sm:$0xff] %v9284_v37  ;;  %v4080_v55 = vpop.f32.mrb[69].mxu1 }
 0x6d1   : > { %v9286_v22 = vpop.f32.mrb[70].mxu1 }
 0x6d2   : > { %9654 = vst [vmem:[#allocation18_spill] sm:$0xff] %v9286_v22  ;;  %v4083_v5 = vpop.f32.mrb[71].mxu1 }
 0x6d3   : > { %v9288_v25 = vpop.f32.mrb[96].mxu0 }
 0x6d4   : > { %9655 = vst [vmem:[#allocation19_spill] sm:$0xff] %v9288_v25  ;;  %v4764_v45 = vpop.f32.mrb[97].mxu0 }
 0x6d5   : > { %v9290_v3 = vpop.f32.mrb[98].mxu0  ;;  %v9304_v45 = vld [vmem:[%s9623_s12] ss:$0 sm:$0xff] }
 0x6d6   : > { %9656 = vst [vmem:[#allocation20_spill] sm:$0xff] %v9290_v3  ;;  %v4767_v0 = vpop.f32.mrb[99].mxu0 }
 0x6d7   : > { %v4239_v40 = vpop.f32.mrb[72].mxu1 }
 0x6d8   : > { %v4240_v59 = vadd.f32 %v4239_v40, %v9121_v10  ;;  %v4241_v20 = vpop.f32.mrb[73].mxu1 }
 0x6d9   : > { %v4242_v28 = vpop.f32.mrb[74].mxu1 }
 0x6da   : > { %v4769_v55 = vadd.f32 %v9125_v29, %v4240_v59  ;;  %v4243_v5 = vadd.f32 %v4242_v28, %v9123_v26  ;;  %v4244_v22 = vpop.f32.mrb[75].mxu1 }
 0x6db   : > { %v5872_v0 = vpop.f32.mrb[100].mxu0 }
 0x6dc   : > { %v4770_v10 = vadd.f32 %v9130_v57, %v4243_v5  ;;  %v4808_v40 = vadd.f32 %v9297_v47, %v4769_v55  ;;  %v4961_v20 = vpop.f32.mrb[101].mxu0  ;;  %v4970_v5 = vadd.f32 %v5872_v0, %v9304_v45 }
 0x6dd   : > { %v4962_v3 = vadd.f32 %v9304_v45, %v4961_v20  ;;  %v5873_v25 = vpop.f32.mrb[102].mxu0 }
 0x6de   : > { %v4809_v29 = vadd.f32 %v9297_v47, %v4770_v10  ;;  %v4964_v26 = vpop.f32.mrb[103].mxu0 }
 0x6df   : > { %v5088_v59 = vadd.f32 %v4962_v3, %v4808_v40  ;;  %v4965_v28 = vadd.f32 %v9304_v45, %v4964_v26  ;;  %v4247_v22 = vpop.f32.mrb[76].mxu1 }
 0x6e0   : > { %v4248_v37 = vadd.f32 %v4247_v22, %v9132_v44  ;;  %v4249_v38 = vpop.f32.mrb[77].mxu1 }
 0x6e1   : > { %5120 = vst.msk [vmem:[%s9314_s30] sm:$0xff] %vm2467_vm7, %v5088_v59  ;;  %v5089_v57 = vadd.f32 %v4965_v28, %v4809_v29  ;;  %v4250_v55 = vpop.f32.mrb[78].mxu1  ;;  %v4973_v38 = vadd.f32 %v5873_v25, %v9304_v45 }
 0x6e2   : > { %v4771_v10 = vadd.f32 %v9136_v19, %v4248_v37  ;;  %v4251_v3 = vadd.f32 %v4250_v55, %v9134_v58  ;;  %v4252_v40 = vpop.f32.mrb[79].mxu1 }
 0x6e3   : > { %5121 = vst.msk [vmem:[%s9314_s30 + $0x8] sm:$0xff] %vm2467_vm7, %v5089_v57  ;;  %v5876_v44 = vpop.f32.mrb[104].mxu0 }
 0x6e4   : > { %v4810_v20 = vadd.f32 %v9297_v47, %v4771_v10  ;;  %v4772_v26 = vadd.f32 %v9141_v48, %v4251_v3  ;;  %v4977_v29 = vpop.f32.mrb[105].mxu0 }
 0x6e5   : > { %v5877_v59 = vpop.f32.mrb[106].mxu0 }
 0x6e6   : > { %v5090_v28 = vadd.f32 %v4970_v5, %v4810_v20  ;;  %v4811_v0 = vadd.f32 %v9297_v47, %v4772_v26  ;;  %v4980_v22 = vpop.f32.mrb[107].mxu0  ;;  %v4978_v5 = vadd.f32 %v9304_v45, %v4977_v29 }
 0x6e7   : > { %v4255_v19 = vpop.f32.mrb[80].mxu1 }
 0x6e8   : > { %5122 = vst.msk [vmem:[%s9314_s30 + $0x10] sm:$0xff] %vm2467_vm7, %v5090_v28  ;;  %v5091_v58 = vadd.f32 %v4973_v38, %v4811_v0  ;;  %v4256_v37 = vadd.f32 %v4255_v19, %v9143_v7  ;;  %v4257_v57 = vpop.f32.mrb[81].mxu1  ;;  %v4981_v7 = vadd.f32 %v9304_v45, %v4980_v22 }
 0x6e9   : > { %v4258_v55 = vpop.f32.mrb[82].mxu1 }
 0x6ea   : > { %5123 = vst.msk [vmem:[%s9314_s30 + $0x18] sm:$0xff] %vm2467_vm7, %v5091_v58  ;;  %v4773_v25 = vadd.f32 %v9147_v41, %v4256_v37  ;;  %v4259_v48 = vadd.f32 %v4258_v55, %v9145_v43  ;;  %v4260_v10 = vpop.f32.mrb[83].mxu1 }
 0x6eb   : > { %v5880_v3 = vpop.f32.mrb[108].mxu0 }
 0x6ec   : > { %v4774_v40 = vadd.f32 %v9152_v11, %v4259_v48  ;;  %v4812_v38 = vadd.f32 %v9297_v47, %v4773_v25  ;;  %v4993_v20 = vpop.f32.mrb[109].mxu0  ;;  %v4986_v11 = vadd.f32 %v5876_v44, %v9304_v45  ;;  %v4989_v25 = vadd.f32 %v5877_v59, %v9304_v45 }
 0x6ed   : > { %v5881_v26 = vpop.f32.mrb[110].mxu0 }
 0x6ee   : > { %v5092_v28 = vadd.f32 %v4978_v5, %v4812_v38  ;;  %v4813_v0 = vadd.f32 %v9297_v47, %v4774_v40  ;;  %v4996_v19 = vpop.f32.mrb[111].mxu0 }
 0x6ef   : > { %v4263_v41 = vpop.f32.mrb[84].mxu1 }
 0x6f0   : > { %5124 = vst.msk [vmem:[%s9314_s30 + $0x20] sm:$0xff] %vm2467_vm7, %v5092_v28  ;;  %v5093_v43 = vadd.f32 %v4981_v7, %v4813_v0  ;;  %v4264_v29 = vadd.f32 %v4263_v41, %v9154_v51  ;;  %v4265_v58 = vpop.f32.mrb[85].mxu1  ;;  %v4994_v28 = vadd.f32 %v9304_v45, %v4993_v20  ;;  %v5002_v20 = vadd.f32 %v5880_v3, %v9304_v45 }
 0x6f1   : > { %v4266_v37 = vpop.f32.mrb[86].mxu1 }
 0x6f2   : > { %5125 = vst.msk [vmem:[%s9314_s30 + $0x28] sm:$0xff] %vm2467_vm7, %v5093_v43  ;;  %v4775_v22 = vadd.f32 %v9158_v56, %v4264_v29  ;;  %v4267_v57 = vadd.f32 %v4266_v37, %v9156_v31  ;;  %v4268_v55 = vpop.f32.mrb[87].mxu1  ;;  %v4997_v43 = vadd.f32 %v9304_v45, %v4996_v19 }
 0x6f4   : > { %v4814_v48 = vadd.f32 %v9297_v47, %v4775_v22  ;;  %v4776_v10 = vadd.f32 %v9163_v30, %v4267_v57  ;;  %v5005_v57 = vadd.f32 %v5881_v26, %v9304_v45 }
 0x6f6   : > { %v5094_v5 = vadd.f32 %v4986_v11, %v4814_v48  ;;  %v4815_v51 = vadd.f32 %v9297_v47, %v4776_v10 }
 0x6f7   : > { %v4271_v40 = vpop.f32.mrb[88].mxu1 }
 0x6f8   : > { %5126 = vst.msk [vmem:[%s9314_s30 + $0x30] sm:$0xff] %vm2467_vm7, %v5094_v5  ;;  %v5095_v44 = vadd.f32 %v4989_v25, %v4815_v51  ;;  %v4272_v38 = vadd.f32 %v4271_v40, %v9165_v8  ;;  %v4273_v56 = vpop.f32.mrb[89].mxu1 }
 0x6f9   : > { %v4274_v7 = vpop.f32.mrb[90].mxu1 }
 0x6fa   : > { %5127 = vst.msk [vmem:[%s9314_s30 + $0x38] sm:$0xff] %vm2467_vm7, %v5095_v44  ;;  %v4777_v31 = vadd.f32 %v9171_v1, %v4272_v38  ;;  %v4275_v59 = vadd.f32 %v4274_v7, %v9167_v39  ;;  %v4276_v30 = vpop.f32.mrb[91].mxu1 }
 0x6fc   : > { %v4778_v0 = vadd.f32 %v9174_v36, %v4275_v59  ;;  %v4816_v41 = vadd.f32 %v9297_v47, %v4777_v31 }
 0x6fe   : > { %v5096_v29 = vadd.f32 %v4994_v28, %v4816_v41  ;;  %v4817_v8 = vadd.f32 %v9297_v47, %v4778_v0 }
 0x6ff   : > { %v4279_v58 = vpop.f32.mrb[92].mxu1 }
 0x700   : > { %5128 = vst.msk [vmem:[%s9314_s30 + $0x40] sm:$0xff] %vm2467_vm7, %v5096_v29  ;;  %v5097_v1 = vadd.f32 %v4997_v43, %v4817_v8  ;;  %v4280_v37 = vadd.f32 %v4279_v58, %v9177_v50  ;;  %v4281_v39 = vpop.f32.mrb[93].mxu1 }
 0x701   : > { %v4282_v11 = vpop.f32.mrb[94].mxu1 }
 0x702   : > { %5129 = vst.msk [vmem:[%s9314_s30 + $0x48] sm:$0xff] %vm2467_vm7, %v5097_v1  ;;  %v4779_v36 = vadd.f32 %v9185_v54, %v4280_v37  ;;  %v4283_v19 = vadd.f32 %v4282_v11, %v9181_v42  ;;  %v4284_v22 = vpop.f32.mrb[95].mxu1 }
 0x704   : > { %v4818_v55 = vadd.f32 %v9297_v47, %v4779_v36  ;;  %v4780_v25 = vadd.f32 %v9188_v13, %v4283_v19 }
 0x706   : > { %v5098_v48 = vadd.f32 %v5002_v20, %v4818_v55  ;;  %v4819_v50 = vadd.f32 %v9297_v47, %v4780_v25 }
 0x707   : > { %v4287_v10 = vpop.f32.mrb[96].mxu1 }
 0x708   : > { %5130 = vst.msk [vmem:[%s9314_s30 + $0x50] sm:$0xff] %vm2467_vm7, %v5098_v48  ;;  %v5099_v3 = vadd.f32 %v5005_v57, %v4819_v50  ;;  %v4288_v5 = vadd.f32 %v4287_v10, %v9191_v15  ;;  %v4289_v51 = vpop.f32.mrb[97].mxu1  ;;  %v9658_v10 = vld [vmem:[#allocation8_spill] sm:$0xff] }
 0x709   : > { %v4290_v54 = vpop.f32.mrb[98].mxu1 }
 0x70a   : > { %5131 = vst.msk [vmem:[%s9314_s30 + $0x58] sm:$0xff] %vm2467_vm7, %v5099_v3  ;;  %v9381_v42 = vadd.f32 %v9199_v46, %v4288_v5  ;;  %v4291_v26 = vadd.f32 %v4290_v54, %v9195_v27  ;;  %v4292_v40 = vpop.f32.mrb[99].mxu1  ;;  %v9660_v54 = vld [vmem:[#allocation11_spill] sm:$0xff] }
 0x70c   : > { %v9385_v13 = vadd.f32 %v9202_v62, %v4291_v26 }
 0x70f   : > { %v4295_v44 = vpop.f32.mrb[100].mxu1 }
 0x710   : > { %v4296_v38 = vadd.f32 %v4295_v44, %v9205_v63  ;;  %v4297_v56 = vpop.f32.mrb[101].mxu1 }
 0x711   : > { %v4298_v7 = vpop.f32.mrb[102].mxu1 }
 0x712   : > { %v9389_v15 = vadd.f32 %v9213_v9, %v4296_v38  ;;  %v4299_v31 = vadd.f32 %v4298_v7, %v9209_v34  ;;  %v4300_v59 = vpop.f32.mrb[103].mxu1  ;;  %v9662_v38 = vld [vmem:[#allocation12_spill] sm:$0xff]  ;;  %v9663_v7 = vld [vmem:[#allocation13_spill] sm:$0xff] }
 0x714   : > { %v9393_v46 = vadd.f32 %v9216_v6, %v4299_v31 }
 0x717   : > { %v4303_v30 = vpop.f32.mrb[104].mxu1 }
 0x718   : > { %v4304_v27 = vadd.f32 %v4303_v30, %v9219_v61  ;;  %v4305_v28 = vpop.f32.mrb[105].mxu1 }
 0x719   : > { %v4306_v62 = vpop.f32.mrb[106].mxu1 }
 0x71a   : > { %v9397_v0 = vadd.f32 %v9227_v17, %v4304_v27  ;;  %v4307_v63 = vadd.f32 %v4306_v62, %v9223_v35  ;;  %v4308_v41 = vpop.f32.mrb[107].mxu1  ;;  %v9664_v27 = vld [vmem:[#allocation15_spill] sm:$0xff]  ;;  %v9665_v62 = vld [vmem:[#allocation14_spill] sm:$0xff] }
 0x71c   : > { %v9401_v9 = vadd.f32 %v9230_v32, %v4307_v63 }
 0x71f   : > { %v4311_v43 = vpop.f32.mrb[108].mxu1 }
 0x720   : > { %v4312_v34 = vadd.f32 %v4311_v43, %v9233_v24  ;;  %v4313_v29 = vpop.f32.mrb[109].mxu1  ;;  %v9666_v43 = vld [vmem:[#allocation16_spill] sm:$0xff] }
 0x721   : > { %v4314_v6 = vpop.f32.mrb[110].mxu1 }
 0x722   : > { %v9405_v8 = vadd.f32 %v9239_v18, %v4312_v34  ;;  %v4315_v61 = vadd.f32 %v4314_v6, %v9237_v16  ;;  %v4316_v58 = vpop.f32.mrb[111].mxu1  ;;  %v9667_v6 = vld [vmem:[#allocation17_spill] sm:$0xff] }
 0x724   : > { %v9409_v17 = vadd.f32 %v9242_v23, %v4315_v61 }
 0x727   : > { %v4319_v1 = vpop.f32.mrb[112].mxu1 }
 0x728   : > { %v4320_v35 = vadd.f32 %v4319_v1, %v9244_v49  ;;  %v4321_v37 = vpop.f32.mrb[113].mxu1 }
 0x729   : > { %v4322_v32 = vpop.f32.mrb[114].mxu1 }
 0x72a   : > { %v9413_v39 = vadd.f32 %v9248_v2, %v4320_v35  ;;  %v4323_v24 = vadd.f32 %v4322_v32, %v9246_v33  ;;  %v4324_v11 = vpop.f32.mrb[115].mxu1  ;;  %v9668_v35 = vld [vmem:[#allocation19_spill] sm:$0xff]  ;;  %v9669_v32 = vld [vmem:[#allocation18_spill] sm:$0xff] }
 0x72c   : > { %v9417_v18 = vadd.f32 %v9250_v53, %v4323_v24 }
 0x72f   : > { %v4327_v20 = vpop.f32.mrb[116].mxu1 }
 0x730   : > { %v4328_v16 = vadd.f32 %v4327_v20, %v9252_v14  ;;  %v4329_v36 = vpop.f32.mrb[117].mxu1  ;;  %v9657_v14 = vld [vmem:[#allocation7_spill] sm:$0xff]  ;;  %v9670_v20 = vld [vmem:[#allocation20_spill] sm:$0xff] }
 0x731   : > { %v4330_v23 = vpop.f32.mrb[118].mxu1 }
 0x732   : > { %v9421_v19 = vadd.f32 %v9256_v60, %v4328_v16  ;;  %v4331_v49 = vadd.f32 %v4330_v23, %v9254_v12  ;;  %v4332_v22 = vpop.f32.mrb[119].mxu1  ;;  %v9659_v12 = vld [vmem:[#allocation9_spill] sm:$0xff]  ;;  %v4822_v23 = vadd.f32 %v9297_v47, %v9389_v15  ;;  %v4821_v15 = vadd.f32 %v9297_v47, %v9385_v13 }
 0x734   : > { %v9425_v2 = vadd.f32 %v9258_v21, %v4331_v49 }
 0x737   : > { %v4335_v57 = vpop.f32.mrb[120].mxu1 }
 0x738   : > { %v4336_v33 = vadd.f32 %v4335_v57, %v9260_v4  ;;  %v4337_v55 = vpop.f32.mrb[121].mxu1  ;;  %v9661_v4 = vld [vmem:[#allocation10_spill] sm:$0xff]  ;;  %v4820_v57 = vadd.f32 %v9297_v47, %v9381_v42 }
 0x739   : > { %v4338_v53 = vpop.f32.mrb[122].mxu1 }
 0x73a   : > { %v9429_v25 = vadd.f32 %v9264_v52, %v4336_v33  ;;  %v4339_v48 = vadd.f32 %v4338_v53, %v9657_v14  ;;  %v4340_v50 = vpop.f32.mrb[123].mxu1  ;;  %v4823_v14 = vadd.f32 %v9297_v47, %v9393_v46 }
 0x73c   : > { %v9433_v60 = vadd.f32 %v9658_v10, %v4339_v48 }
 0x73f   : > { %v4343_v3 = vpop.f32.mrb[124].mxu1 }
 0x740   : > { %v4344_v5 = vadd.f32 %v4343_v3, %v9659_v12  ;;  %v4345_v51 = vpop.f32.mrb[125].mxu1 }
 0x741   : > { %v4346_v21 = vpop.f32.mrb[126].mxu1 }
 0x742   : > { %v9437_v26 = vadd.f32 %v9660_v54, %v4344_v5  ;;  %v4347_v40 = vadd.f32 %v4346_v21, %v9661_v4  ;;  %v4348_v44 = vpop.f32.mrb[127].mxu1  ;;  %v4826_v5 = vadd.f32 %v9297_v47, %v9405_v8  ;;  %v4824_v21 = vadd.f32 %v9297_v47, %v9397_v0 }
 0x743   : > { %v4827_v44 = vadd.f32 %v9297_v47, %v9409_v17  ;;  %v4825_v8 = vadd.f32 %v9297_v47, %v9401_v9 }
 0x744   : > { %v9441_v52 = vadd.f32 %v9662_v38, %v4347_v40 }
 0x747   : > { %v4351_v56 = vpop.f32.mrb[128].mxu1 }
 0x748   : > { %v4352_v31 = vadd.f32 %v4351_v56, %v9663_v7  ;;  %v4353_v59 = vpop.f32.mrb[129].mxu1 }
 0x749   : > { %v4354_v30 = vpop.f32.mrb[130].mxu1 }
 0x74a   : > { %v9445_v28 = vadd.f32 %v9664_v27, %v4352_v31  ;;  %v4355_v63 = vadd.f32 %v4354_v30, %v9665_v62  ;;  %v4356_v41 = vpop.f32.mrb[131].mxu1  ;;  %v4830_v30 = vadd.f32 %v9297_v47, %v9421_v19  ;;  %v4828_v62 = vadd.f32 %v9297_v47, %v9413_v39 }
 0x74b   : > { %v4829_v19 = vadd.f32 %v9297_v47, %v9417_v18 }
 0x74c   : > { %v9449_v34 = vadd.f32 %v9666_v43, %v4355_v63 }
 0x74f   : > { %v4359_v29 = vpop.f32.mrb[132].mxu1 }
 0x750   : > { %v4360_v61 = vadd.f32 %v4359_v29, %v9667_v6  ;;  %v4361_v58 = vpop.f32.mrb[133].mxu1  ;;  %v4831_v29 = vadd.f32 %v9297_v47, %v9425_v2 }
 0x751   : > { %v4362_v1 = vpop.f32.mrb[134].mxu1 }
 0x752   : > { %v9453_v37 = vadd.f32 %v9668_v35, %v4360_v61  ;;  %v4363_v24 = vadd.f32 %v4362_v1, %v9669_v32  ;;  %v4364_v11 = vpop.f32.mrb[135].mxu1  ;;  %v4834_v32 = vadd.f32 %v9297_v47, %v9437_v26  ;;  %v4833_v26 = vadd.f32 %v9297_v47, %v9433_v60 }
 0x753   : > { %v4832_v11 = vadd.f32 %v9297_v47, %v9429_v25 }
 0x754   : > { %v9457_v16 = vadd.f32 %v9670_v20, %v4363_v24 }
 0x757   : > { %v5884_v36 = vpop.f32.mrb[136].mxu1 }
 0x758   : > { %v5018_v49 = vadd.f32 %v5884_v36, %v9304_v45  ;;  %v5009_v22 = vpop.f32.mrb[137].mxu1 }
 0x759   : > { %v5010_v33 = vadd.f32 %v9304_v45, %v5009_v22  ;;  %v5885_v55 = vpop.f32.mrb[138].mxu1 }
 0x75a   : > { %v5102_v53 = vadd.f32 %v5018_v49, %v4822_v23  ;;  %v5021_v48 = vadd.f32 %v5885_v55, %v9304_v45  ;;  %v5012_v50 = vpop.f32.mrb[139].mxu1  ;;  %v4835_v49 = vadd.f32 %v9297_v47, %v9441_v52 }
 0x75b   : > { %v5100_v10 = vadd.f32 %v5010_v33, %v4820_v57  ;;  %v5013_v3 = vadd.f32 %v9304_v45, %v5012_v50  ;;  %v4836_v50 = vadd.f32 %v9297_v47, %v9445_v28  ;;  %v4837_v28 = vadd.f32 %v9297_v47, %v9449_v34 }
 0x75c   : > { %5134 = vst.msk [vmem:[%s9314_s30 + $0x70] sm:$0xff] %vm2467_vm7, %v5102_v53  ;;  %v5103_v12 = vadd.f32 %v5021_v48, %v4823_v14  ;;  %v4838_v14 = vadd.f32 %v9297_v47, %v9453_v37 }
 0x75d   : > { %5132 = vst.msk [vmem:[%s9314_s30 + $0x60] sm:$0xff] %vm2467_vm7, %v5100_v10  ;;  %v5101_v42 = vadd.f32 %v5013_v3, %v4821_v15 }
 0x75e   : > { %5135 = vst.msk [vmem:[%s9314_s30 + $0x78] sm:$0xff] %vm2467_vm7, %v5103_v12  ;;  %v4839_v12 = vadd.f32 %v9297_v47, %v9457_v16 }
 0x75f   : > { %5133 = vst.msk [vmem:[%s9314_s30 + $0x68] sm:$0xff] %vm2467_vm7, %v5101_v42  ;;  %v5888_v46 = vpop.f32.mrb[140].mxu1 }
 0x760   : > { %v5034_v13 = vadd.f32 %v5888_v46, %v9304_v45  ;;  %v5025_v51 = vpop.f32.mrb[141].mxu1 }
 0x761   : > { %v5026_v54 = vadd.f32 %v9304_v45, %v5025_v51  ;;  %v5889_v4 = vpop.f32.mrb[142].mxu1 }
 0x762   : > { %v5106_v40 = vadd.f32 %v5034_v13, %v4826_v5  ;;  %v5037_v38 = vadd.f32 %v5889_v4, %v9304_v45  ;;  %v5028_v56 = vpop.f32.mrb[143].mxu1 }
 0x763   : > { %v5104_v7 = vadd.f32 %v5026_v54, %v4824_v21  ;;  %v5029_v31 = vadd.f32 %v9304_v45, %v5028_v56 }
 0x764   : > { %5138 = vst.msk [vmem:[%s9314_s30 + $0x90] sm:$0xff] %vm2467_vm7, %v5106_v40  ;;  %v5107_v59 = vadd.f32 %v5037_v38, %v4827_v44 }
 0x765   : > { %5136 = vst.msk [vmem:[%s9314_s30 + $0x80] sm:$0xff] %vm2467_vm7, %v5104_v7  ;;  %v5105_v0 = vadd.f32 %v5029_v31, %v4825_v8 }
 0x766   : > { %5139 = vst.msk [vmem:[%s9314_s30 + $0x98] sm:$0xff] %vm2467_vm7, %v5107_v59 }
 0x767   : > { %5137 = vst.msk [vmem:[%s9314_s30 + $0x88] sm:$0xff] %vm2467_vm7, %v5105_v0  ;;  %v5892_v17 = vpop.f32.mrb[144].mxu1 }
 0x768   : > { %v5050_v9 = vadd.f32 %v5892_v17, %v9304_v45  ;;  %v5041_v27 = vpop.f32.mrb[145].mxu1 }
 0x769   : > { %v5042_v63 = vadd.f32 %v9304_v45, %v5041_v27  ;;  %v5893_v41 = vpop.f32.mrb[146].mxu1 }
 0x76a   : > { %v5110_v43 = vadd.f32 %v5050_v9, %v4830_v30  ;;  %v5053_v6 = vadd.f32 %v5893_v41, %v9304_v45  ;;  %v5044_v61 = vpop.f32.mrb[147].mxu1 }
 0x76b   : > { %v5108_v58 = vadd.f32 %v5042_v63, %v4828_v62  ;;  %v5045_v1 = vadd.f32 %v9304_v45, %v5044_v61 }
 0x76c   : > { %5142 = vst.msk [vmem:[%s9314_s30 + $0xb0] sm:$0xff] %vm2467_vm7, %v5110_v43  ;;  %v5111_v35 = vadd.f32 %v5053_v6, %v4831_v29 }
 0x76d   : > { %5140 = vst.msk [vmem:[%s9314_s30 + $0xa0] sm:$0xff] %vm2467_vm7, %v5108_v58  ;;  %v5109_v39 = vadd.f32 %v5045_v1, %v4829_v19 }
 0x76e   : > { %5143 = vst.msk [vmem:[%s9314_s30 + $0xb8] sm:$0xff] %vm2467_vm7, %v5111_v35 }
 0x76f   : > { %5141 = vst.msk [vmem:[%s9314_s30 + $0xa8] sm:$0xff] %vm2467_vm7, %v5109_v39  ;;  %v5896_v2 = vpop.f32.mrb[148].mxu1 }
 0x770   : > { %v5066_v18 = vadd.f32 %v5896_v2, %v9304_v45  ;;  %v5057_v24 = vpop.f32.mrb[149].mxu1 }
 0x771   : > { %v5058_v20 = vadd.f32 %v9304_v45, %v5057_v24  ;;  %v5897_v36 = vpop.f32.mrb[150].mxu1 }
 0x772   : > { %v5114_v23 = vadd.f32 %v5066_v18, %v4834_v32  ;;  %v5069_v22 = vadd.f32 %v5897_v36, %v9304_v45  ;;  %v5060_v57 = vpop.f32.mrb[151].mxu1 }
 0x773   : > { %v5112_v33 = vadd.f32 %v5058_v20, %v4832_v11  ;;  %v5061_v55 = vadd.f32 %v9304_v45, %v5060_v57 }
 0x774   : > { %5146 = vst.msk [vmem:[%s9314_s30 + $0xd0] sm:$0xff] %vm2467_vm7, %v5114_v23  ;;  %v5115_v25 = vadd.f32 %v5069_v22, %v4835_v49 }
 0x775   : > { %5144 = vst.msk [vmem:[%s9314_s30 + $0xc0] sm:$0xff] %vm2467_vm7, %v5112_v33  ;;  %v5113_v53 = vadd.f32 %v5061_v55, %v4833_v26 }
 0x776   : > { %5147 = vst.msk [vmem:[%s9314_s30 + $0xd8] sm:$0xff] %vm2467_vm7, %v5115_v25 }
 0x777   : > { %5145 = vst.msk [vmem:[%s9314_s30 + $0xc8] sm:$0xff] %vm2467_vm7, %v5113_v53  ;;  %v5900_v52 = vpop.f32.mrb[152].mxu1 }
 0x778   : > { %v5082_v60 = vadd.f32 %v5900_v52, %v9304_v45  ;;  %v5073_v48 = vpop.f32.mrb[153].mxu1 }
 0x779   : > { %v5074_v10 = vadd.f32 %v9304_v45, %v5073_v48  ;;  %v5901_v15 = vpop.f32.mrb[154].mxu1 }
 0x77a   : > { %v5118_v3 = vadd.f32 %v5082_v60, %v4838_v14  ;;  %v5085_v37 = vadd.f32 %v5901_v15, %v9304_v45  ;;  %v5076_v42 = vpop.f32.mrb[155].mxu1 }
 0x77b   : > { %v5116_v46 = vadd.f32 %v5074_v10, %v4836_v50  ;;  %v5077_v5 = vadd.f32 %v9304_v45, %v5076_v42 }
 0x77c   : > { %5150 = vst.msk [vmem:[%s9314_s30 + $0xf0] sm:$0xff] %vm2467_vm7, %v5118_v3  ;;  %v5119_v13 = vadd.f32 %v5085_v37, %v4839_v12 }
 0x77d   : > { %5148 = vst.msk [vmem:[%s9314_s30 + $0xe0] sm:$0xff] %vm2467_vm7, %v5116_v46  ;;  %v5117_v16 = vadd.f32 %v5077_v5, %v4837_v28 }
 0x77e   : > { %5151 = vst.msk [vmem:[%s9314_s30 + $0xf8] sm:$0xff] %vm2467_vm7, %v5119_v13 }
 0x77f   : > { %5149 = vst.msk [vmem:[%s9314_s30 + $0xe8] sm:$0xff] %vm2467_vm7, %v5117_v16 }
 0x780   : > { %6417 = shalt.err (!%p6414_p3)
}
 0x781   : > { %s6418_s24 = scalar_lea.hbm %s9558_s20, 4096  ;;  %s6422_s22 = scalar_lea.hbm %s9624_s13, 8192 }
 0x782   : > { %p6419_p4 = scmp.ne.s32.totalorder %s9558_s20, %s6418_s24  ;;  %p6423_p9 = scmp.lt.u32.totalorder %s9558_s20, %s9624_s13 }
 0x783   : > { %p6424_p10 = scmp.lt.u32.totalorder %s6422_s22, %s6418_s24  ;;  %p6426_p12 = scmp.lt.u32.totalorder %s6418_s24, %s9558_s20 }
 0x784   : > { %p6420_p7 = pnand %p6419_p4, %p6585_p5 }
 0x785   : > { %p6425_p11 = por %p6424_p10, %p6423_p9 }
 0x786   : > { %p6421_p8 = pneg %p6420_p7 }
 0x787   : > { %p6427_p13 = por %p6426_p12, %p6425_p11 }
 0x789   : > { %p6428_p0 = pnand %p6427_p13, %p6421_p8 }
 0x78b   : > { %6431 = shalt.err (!%p6428_p0)
}
 0x78c   : > { %s6475_s0 = smov 128   ;;  %s6476_s23 = smov 8  }
 0x78d   : > { %6006 = dma.vmem_to_hbm [thread:$0]  (%p6585_p5), %s9560_s21, 4096, %s9558_s20, %s9570_s15, %s6475_s0, %s6475_s0, %s6476_s23  }
 0x78e PF: > { %p6012_p1 = scmp.ge.s32.totalorder %s6466_s28, 2  ;;  %s5181_s30 = sand.u32 1, %s6454_s25  }
 0x78f   : > { %s5182_s24 = scalar_lea.sflag [#allocation5], %s5181_s30 }
 0x790   : > { %p6009_p2 = pnand %p6012_p1, %p6589_p6 }
 0x792   : > { %6449 = dma.done.wait (!%p6009_p2), %s5182_s24, 4096  }
 0x793   : > { %6451 = vsyncadd (!%p6009_p2), %s5182_s24, 4294963200  ;;  %p23_p3 = scmp.ge.s32.totalorder %s6572_s14, 4   ;;  %s9671_s25 = smov %s6458_s26 }
 0x794   : > { %s9672_s26 = smov %s6462_s27  ;;  %s9673_s27 = smov %s6583_s17 }
 0x795   : > { %s9674_s28 = smov %s6572_s14  ;;  %25 = sbr.rel (!%p23_p3) target bundleno = 6 (0x6), region = 118 }
 0x79c   :  { %5187 = vsyncpa [#allocation5], 1 }
 0x79d   :  { %5189 = vsyncpa [#allocation5 + $0x1], 1 }

</bundles_post_ra>
